<compile_context>
chip_gen: v6e
topology: v6e:2x2x1
jax: 0.10.0
libtpu: 0.0.40
codegen_flags: <defaults>
</compile_context>

<pallas_src>
import functools

import numpy as np
import jax
import jax.numpy as jnp
from jax.experimental import pallas as pl
from jax.experimental.pallas import tpu as pltpu


# ----------------------------------------------------------------------------
# One-time weight preprocessing: convs -> band matrices on a packed layout
# ----------------------------------------------------------------------------
def _band_matrices(w_conv, w_in, pad):
    """w_conv: (O, C, 3, 3) numpy array in plain-conv orientation.

    Returns M of shape (3, w_in*C, w_out*O) such that, for a packed activation
    P[y, x*C + c], the (column-zero-padded by `pad`) valid 3x3 convolution is
        Q[y_out, x_out*O + o] = sum_i  P_rowpad[y_out + i, :] @ M[i]
    where P_rowpad is P zero-padded by `pad` rows on top/bottom.
    Column padding is folded into the band matrices themselves.
    """
    O, C, kh, kw = w_conv.shape
    w_out = w_in + 2 * pad - kw + 1
    M = np.zeros((kh, w_in * C, w_out * O), np.float32)
    for i in range(kh):
        for j in range(kw):
            for xo in range(w_out):
                xi = xo + j - pad
                if 0 <= xi < w_in:
                    M[i, xi * C:(xi + 1) * C, xo * O:(xo + 1) * O] = \
                        w_conv[:, :, i, j].T
    return M


def _packed_bias(b, w_out):
    """Per-output-channel bias tiled to the packed lane layout (1, w_out*O)."""
    return np.tile(np.asarray(b, np.float32), w_out)[None, :]


def init_params(key, H, W, latent_dim):
    """Raw PyTorch-layout parameters."""
    reduced_dim = 8 * (H - 4) * (W - 4)
    keys = jax.random.split(key, 14)
    s = 0.1
    return {
        "encConv1_w": jax.random.normal(keys[0], (4, 1, 3, 3), jnp.float32) * s,
        "encConv1_b": jax.random.normal(keys[1], (4,), jnp.float32) * s,
        "encConv2_w": jax.random.normal(keys[2], (8, 4, 3, 3), jnp.float32) * s,
        "encConv2_b": jax.random.normal(keys[3], (8,), jnp.float32) * s,
        "encMean_w": jax.random.normal(keys[4], (latent_dim, reduced_dim), jnp.float32) * s,
        "encMean_b": jax.random.normal(keys[5], (latent_dim,), jnp.float32) * s,
        "encLogVar_w": jax.random.normal(keys[6], (latent_dim, reduced_dim), jnp.float32) * s,
        "encLogVar_b": jax.random.normal(keys[7], (latent_dim,), jnp.float32) * s,
        "decLin_w": jax.random.normal(keys[8], (reduced_dim, latent_dim), jnp.float32) * s,
        "decLin_b": jax.random.normal(keys[9], (reduced_dim,), jnp.float32) * s,
        # ConvTranspose2d weights: (in_channels, out_channels, kh, kw)
        "decConvT1_w": jax.random.normal(keys[10], (8, 4, 3, 3), jnp.float32) * s,
        "decConvT1_b": jax.random.normal(keys[12], (4,), jnp.float32) * s,
        "decConvT2_w": jax.random.normal(keys[11], (4, 1, 3, 3), jnp.float32) * s,
        "decConvT2_b": jax.random.normal(keys[13], (1,), jnp.float32) * s,
    }


def preprocess_params(raw, H, W, latent_dim):
    """All reshapes / flips / reorders done ONCE (host side, outside forward)."""
    # NOTE: like the PyTorch spec, only well defined when width == height.
    L = latent_dim
    Hs, Ws = H - 4, W - 4

    def g(name):
        return np.asarray(jax.device_get(raw[name]), np.float32)

    # encoder convs (valid, no padding)
    m1 = _band_matrices(g("encConv1_w"), W, 0)               # (3, W, (W-2)*4)
    b1 = _packed_bias(g("encConv1_b"), W - 2)
    m2 = _band_matrices(g("encConv2_w"), W - 2, 0)            # (3, (W-2)*4, Ws*8)
    b2 = _packed_bias(g("encConv2_b"), Ws)

    # fused mean|logvar linear: PyTorch flattens CHW; reorder per spatial row y
    # into the packed lane order x*8 + c.
    wm = g("encMean_w").reshape(L, 8, Hs, Ws).transpose(2, 3, 1, 0).reshape(Hs, Ws * 8, L)
    wl = g("encLogVar_w").reshape(L, 8, Hs, Ws).transpose(2, 3, 1, 0).reshape(Hs, Ws * 8, L)
    wml = np.concatenate([wm, wl], axis=-1)                   # (Hs, Ws*8, 2L)
    bml = np.concatenate([g("encMean_b"), g("encLogVar_b")])[None, :]

    # decoder linear: emit one packed spatial row (96 lanes) per matmul
    wd = g("decLin_w").reshape(8, Hs, Ws, L).transpose(1, 3, 2, 0).reshape(Hs, L, Ws * 8)
    bd = g("decLin_b").reshape(8, Hs, Ws).transpose(1, 2, 0).reshape(Hs, Ws * 8)

    # deconvs: flip kernel + swap in/out channels -> plain conv with pad=2
    wc1 = g("decConvT1_w")[:, :, ::-1, ::-1].transpose(1, 0, 2, 3)   # (4,8,3,3)
    m3 = _band_matrices(wc1, Ws, 2)                           # (3, Ws*8, (Ws+2)*4)
    b3 = _packed_bias(g("decConvT1_b"), Ws + 2)
    wc2 = g("decConvT2_w")[:, :, ::-1, ::-1].transpose(1, 0, 2, 3)   # (1,4,3,3)
    m4 = _band_matrices(wc2, Ws + 2, 2)                       # (3, (Ws+2)*4, W)
    b4 = _packed_bias(g("decConvT2_b"), W)

    model = dict(m1=m1, b1=b1, m2=m2, b2=b2, wml=wml, bml=bml,
                 wd=wd, bd=bd, m3=m3, b3=b3, m4=m4, b4=b4)
    return {k: jnp.asarray(v) for k, v in model.items()}


# ----------------------------------------------------------------------------
# Fused encoder: one pallas_call, grid over batch
# ----------------------------------------------------------------------------
def _encoder_call(model, x):
    B, H, W = x.shape
    L = model["bml"].shape[1] // 2
    Ho1, Wc1 = H - 2, model["b1"].shape[1]       # (W-2)*4
    Ho2, Wc2 = H - 4, model["b2"].shape[1]       # (W-4)*8

    def kernel(x_ref, m1_ref, b1_ref, m2_ref, b2_ref, wml_ref, bml_ref,
               mean_ref, logvar_ref, t1_ref, t2_ref):
        f32 = jnp.float32
        # encConv1 + ReLU: 3 band matmuls over row-shifted windows
        acc = jnp.dot(x_ref[0, pl.ds(0, Ho1), :], m1_ref[0], preferred_element_type=f32)
        acc += jnp.dot(x_ref[0, pl.ds(1, Ho1), :], m1_ref[1], preferred_element_type=f32)
        acc += jnp.dot(x_ref[0, pl.ds(2, Ho1), :], m1_ref[2], preferred_element_type=f32)
        t1_ref[...] = jnp.maximum(acc + b1_ref[...], 0.0)
        # encConv2 + ReLU
        acc = jnp.dot(t1_ref[pl.ds(0, Ho2), :], m2_ref[0], preferred_element_type=f32)
        acc += jnp.dot(t1_ref[pl.ds(1, Ho2), :], m2_ref[1], preferred_element_type=f32)
        acc += jnp.dot(t1_ref[pl.ds(2, Ho2), :], m2_ref[2], preferred_element_type=f32)
        t2_ref[...] = jnp.maximum(acc + b2_ref[...], 0.0)
        # encMean | encLogVar (fused): one small matmul per packed spatial row
        ml = bml_ref[...]                                    # (1, 2L)
        for y in range(Ho2):
            ml = ml + jnp.dot(t2_ref[pl.ds(y, 1), :], wml_ref[y],
                              preferred_element_type=f32)
        mean_ref[0] = ml[:, 0:L]
        logvar_ref[0] = ml[:, L:2 * L]

    def full(a):
        return pl.BlockSpec(a.shape, lambda b: (0,) * a.ndim)

    mean, logvar = pl.pallas_call(
        kernel,
        out_shape=(jax.ShapeDtypeStruct((B, 1, L), jnp.float32),
                   jax.ShapeDtypeStruct((B, 1, L), jnp.float32)),
        grid=(B,),
        in_specs=[pl.BlockSpec((1, H, W), lambda b: (b, 0, 0)),
                  full(model["m1"]), full(model["b1"]),
                  full(model["m2"]), full(model["b2"]),
                  full(model["wml"]), full(model["bml"])],
        out_specs=(pl.BlockSpec((1, 1, L), lambda b: (b, 0, 0)),
                   pl.BlockSpec((1, 1, L), lambda b: (b, 0, 0))),
        scratch_shapes=[pltpu.VMEM((Ho1, Wc1), jnp.float32),
                        pltpu.VMEM((Ho2, Wc2), jnp.float32)],
        compiler_params=pltpu.CompilerParams(dimension_semantics=("parallel",)),
    )(x, model["m1"], model["b1"], model["m2"], model["b2"],
      model["wml"], model["bml"])
    return mean, logvar


# ----------------------------------------------------------------------------
# Fused decoder: one pallas_call, grid over the k*B samples
# ----------------------------------------------------------------------------
def _decoder_call(model, mean3, logvar3, eps_flat, H, W):
    kB = eps_flat.shape[0]
    B, _, L = mean3.shape
    Hs = H - 4
    Wc1 = model["bd"].shape[1]                  # Ws*8
    Hp1 = Hs + 4                                # row-padded linear output
    Ho3, Wo3 = Hs + 2, model["b3"].shape[1]     # convT1 out: rows, (Ws+2)*4
    Hp2 = Ho3 + 4                               # row-padded convT1 output

    def kernel(mean_ref, logvar_ref, eps_ref, wd_ref, bd_ref,
               m3_ref, b3_ref, m4_ref, b4_ref,
               h_ref, out_ref, pad1_ref, pad2_ref):
        f32 = jnp.float32
        # reparameterization (exp runs on the EUP slot)
        h = mean_ref[0] + jnp.exp(0.5 * logvar_ref[0]) * eps_ref[0]    # (1, L)
        h_ref[0] = h
        # zero the row-padded scratches (column padding is folded into m3/m4;
        # interiors are fully overwritten below)
        pad1_ref[...] = jnp.zeros((Hp1, Wc1), f32)
        pad2_ref[...] = jnp.zeros((Hp2, Wo3), f32)
        # decoder Linear + ReLU: one packed spatial row per matmul (no reshape)
        for y in range(Hs):
            row = jnp.dot(h, wd_ref[y], preferred_element_type=f32) \
                  + bd_ref[pl.ds(y, 1), :]
            pad1_ref[pl.ds(2 + y, 1), :] = jnp.maximum(row, 0.0)
        # decConvT1 + ReLU
        acc = jnp.dot(pad1_ref[pl.ds(0, Ho3), :], m3_ref[0], preferred_element_type=f32)
        acc += jnp.dot(pad1_ref[pl.ds(1, Ho3), :], m3_ref[1], preferred_element_type=f32)
        acc += jnp.dot(pad1_ref[pl.ds(2, Ho3), :], m3_ref[2], preferred_element_type=f32)
        pad2_ref[pl.ds(2, Ho3), :] = jnp.maximum(acc + b3_ref[...], 0.0)
        # decConvT2 + Sigmoid -> the (H, W) image itself (out channels == 1)
        acc = jnp.dot(pad2_ref[pl.ds(0, H), :], m4_ref[0], preferred_element_type=f32)
        acc += jnp.dot(pad2_ref[pl.ds(1, H), :], m4_ref[1], preferred_element_type=f32)
        acc += jnp.dot(pad2_ref[pl.ds(2, H), :], m4_ref[2], preferred_element_type=f32)
        out_ref[0] = jax.nn.sigmoid(acc + b4_ref[...])

    def full(a):
        return pl.BlockSpec(a.shape, lambda s: (0,) * a.ndim)

    h_flat, out_flat = pl.pallas_call(
        kernel,
        out_shape=(jax.ShapeDtypeStruct((kB, 1, L), jnp.float32),
                   jax.ShapeDtypeStruct((kB, H, W), jnp.float32)),
        grid=(kB,),
        in_specs=[pl.BlockSpec((1, 1, L), lambda s: (s % B, 0, 0)),
                  pl.BlockSpec((1, 1, L), lambda s: (s % B, 0, 0)),
                  pl.BlockSpec((1, 1, L), lambda s: (s, 0, 0)),
                  full(model["wd"]), full(model["bd"]),
                  full(model["m3"]), full(model["b3"]),
                  full(model["m4"]), full(model["b4"])],
        out_specs=(pl.BlockSpec((1, 1, L), lambda s: (s, 0, 0)),
                   pl.BlockSpec((1, H, W), lambda s: (s, 0, 0))),
        scratch_shapes=[pltpu.VMEM((Hp1, Wc1), jnp.float32),
                        pltpu.VMEM((Hp2, Wo3), jnp.float32)],
        compiler_params=pltpu.CompilerParams(dimension_semantics=("parallel",)),
    )(mean3, logvar3, eps_flat, model["wd"], model["bd"],
      model["m3"], model["b3"], model["m4"], model["b4"])
    return h_flat, out_flat


# ----------------------------------------------------------------------------
# autoencoder forward: 2 pallas_calls total, stacked (k, B, ...) outputs
# ----------------------------------------------------------------------------
def autoencoder_forward(model, x_nchw, eps):
    k, B, L = eps.shape
    _, C, H, W = x_nchw.shape
    x = x_nchw.reshape(B, H, W)                 # C == 1: free reshape
    mean3, logvar3 = _encoder_call(model, x)                       # (B,1,L) each
    h_flat, out_flat = _decoder_call(model, mean3, logvar3,
                                     eps.reshape(k * B, 1, L), H, W)
    mean = mean3.reshape(B, L)
    logvar = logvar3.reshape(B, L)
    h_all = h_flat.reshape(k, B, L)
    out_all = out_flat.reshape(k, B, 1, H, W)
    return h_all, out_all, mean, logvar


# ----------------------------------------------------------------------------
# Pure-JAX (NCHW, CHW-flatten) reference for numerical cross-check
# ----------------------------------------------------------------------------
def _ref_conv(x, w, b):
    out = jax.lax.conv_general_dilated(
        x, w, window_strides=(1, 1), padding="VALID",
        dimension_numbers=("NCHW", "OIHW", "NCHW"),
        precision=jax.lax.Precision.HIGHEST)
    return out + b.reshape(1, -1, 1, 1)


def _ref_convT(x, w, b):
    xp = jnp.pad(x, ((0, 0), (0, 0), (2, 2), (2, 2)))
    w_conv = w[:, :, ::-1, ::-1].transpose(1, 0, 2, 3)
    return _ref_conv(xp, w_conv, b)


def reference_forward(raw, x, eps):
    k, B, latent = eps.shape
    _, _, H, W = x.shape
    hi = jax.lax.Precision.HIGHEST
    t = jax.nn.relu(_ref_conv(x, raw["encConv1_w"], raw["encConv1_b"]))
    t = jax.nn.relu(_ref_conv(t, raw["encConv2_w"], raw["encConv2_b"]))
    feat = t.reshape(B, -1)
    mean = jnp.dot(feat, raw["encMean_w"].T, precision=hi) + raw["encMean_b"]
    logvar = jnp.dot(feat, raw["encLogVar_w"].T, precision=hi) + raw["encLogVar_b"]
    hs, outs = [], []
    for i in range(k):
        h = mean + jnp.exp(0.5 * logvar) * eps[i]
        d = jax.nn.relu(jnp.dot(h, raw["decLin_w"].T, precision=hi) + raw["decLin_b"])
        d = d.reshape(B, 8, H - 4, W - 4)
        d = jax.nn.relu(_ref_convT(d, raw["decConvT1_w"], raw["decConvT1_b"]))
        d = jax.nn.sigmoid(_ref_convT(d, raw["decConvT2_w"], raw["decConvT2_b"]))
        hs.append(h)
        outs.append(d)
    return hs, outs, mean, logvar


# ----------------------------------------------------------------------------
if __name__ == "__main__":
    B, C, H, W = 2, 1, 16, 16
    hyperparameters = {"sampleTimes_train": 2, "latent_dim_train": 8}
    mode = "train"
    k = hyperparameters["sampleTimes_" + mode]
    latent_dim = hyperparameters["latent_dim_" + mode]

    key = jax.random.PRNGKey(0)
    x_key, p_key, eps_key = jax.random.split(key, 3)
    x = jax.random.uniform(x_key, (B, C, H, W), jnp.float32)
    # epsilon supplied explicitly (deterministic) instead of torch.randn_like
    eps = jax.random.normal(eps_key, (k, B, latent_dim), jnp.float32)

    raw = init_params(p_key, H, W, latent_dim)
    model = preprocess_params(raw, H, W, latent_dim)

    fwd = jax.jit(autoencoder_forward)
    h_all, out_all, mean, logvar = fwd(model, x, eps)
    jax.block_until_ready((h_all, out_all, mean, logvar))

    # module-style list outputs (outside the hot, jitted path)
    h_list = [h_all[i] for i in range(k)]
    out_list = [out_all[i] for i in range(k)]

    # ---- correctness check against a pure-JAX reference ----
    h_r, out_r, mean_r, logvar_r = reference_forward(raw, x, eps)

    def _md(a, b):
        return float(jnp.max(jnp.abs(a - b)))

    assert mean.shape == (B, latent_dim) and logvar.shape == (B, latent_dim)
    assert _md(mean, mean_r) < 2e-3 and _md(logvar, logvar_r) < 2e-3
    assert len(h_list) == k and len(out_list) == k
    for i in range(k):
        assert h_list[i].shape == (B, latent_dim)
        assert out_list[i].shape == (B, 1, H, W)
        assert _md(h_list[i], h_r[i]) < 2e-3
        assert _md(out_list[i], out_r[i]) < 2e-3
        assert bool(jnp.all((out_list[i] >= 0.0) & (out_list[i] <= 1.0)))

    print("KERNEL_OK")
</pallas_src>

<mosaic_0001>
module attributes {stable_mosaic.version = 11 : i64} {
  func.func @kernel(%arg0: i32, %arg1: memref<1x16x16xf32, #tpu.memory_space<vmem>>, %arg2: memref<3x16x56xf32, #tpu.memory_space<vmem>>, %arg3: memref<1x56xf32, #tpu.memory_space<vmem>>, %arg4: memref<3x56x96xf32, #tpu.memory_space<vmem>>, %arg5: memref<1x96xf32, #tpu.memory_space<vmem>>, %arg6: memref<12x96x16xf32, #tpu.memory_space<vmem>>, %arg7: memref<1x16xf32, #tpu.memory_space<vmem>>, %arg8: memref<1x1x8xf32, #tpu.memory_space<vmem>>, %arg9: memref<1x1x8xf32, #tpu.memory_space<vmem>>, %arg10: memref<14x56xf32, #tpu.memory_space<vmem>>, %arg11: memref<12x96xf32, #tpu.memory_space<vmem>>) attributes {dimension_semantics = [#tpu.dimension_semantics<parallel>], iteration_bounds = array<i64: 2>, scalar_prefetch = 0 : i64, scratch_operands = 2 : i64, tpu.core_type = #tpu.core_type<tc>, window_params = [{transform_indices = @transform_0, window_bounds = array<i64: 1, 16, 16>}, {pipeline_mode = #tpu.pipeline_mode<synchronous>, transform_indices = @transform_1, window_bounds = array<i64: 3, 16, 56>}, {pipeline_mode = #tpu.pipeline_mode<synchronous>, transform_indices = @transform_2, window_bounds = array<i64: 1, 56>}, {pipeline_mode = #tpu.pipeline_mode<synchronous>, transform_indices = @transform_3, window_bounds = array<i64: 3, 56, 96>}, {pipeline_mode = #tpu.pipeline_mode<synchronous>, transform_indices = @transform_4, window_bounds = array<i64: 1, 96>}, {pipeline_mode = #tpu.pipeline_mode<synchronous>, transform_indices = @transform_5, window_bounds = array<i64: 12, 96, 16>}, {pipeline_mode = #tpu.pipeline_mode<synchronous>, transform_indices = @transform_6, window_bounds = array<i64: 1, 16>}, {transform_indices = @transform_7, window_bounds = array<i64: 1, 1, 8>}, {transform_indices = @transform_8, window_bounds = array<i64: 1, 1, 8>}]} {
    %c0 = arith.constant 0 : index
    %c0_0 = arith.constant 0 : index
    %c0_1 = arith.constant 0 : index
    %0 = vector.load %arg1[%c0, %c0_0, %c0_1] : memref<1x16x16xf32, #tpu.memory_space<vmem>>, vector<1x14x16xf32>
    %1 = vector.shape_cast %0 : vector<1x14x16xf32> to vector<14x16xf32>
    %c0_2 = arith.constant 0 : index
    %c0_3 = arith.constant 0 : index
    %c0_4 = arith.constant 0 : index
    %2 = vector.load %arg2[%c0_2, %c0_3, %c0_4] : memref<3x16x56xf32, #tpu.memory_space<vmem>>, vector<1x16x56xf32>
    %3 = vector.shape_cast %2 : vector<1x16x56xf32> to vector<16x56xf32>
    %cst = arith.constant dense<0.000000e+00> : vector<14x56xf32>
    %4 = tpu.matmul %1, %3, %cst {dimension_numbers = #tpu.dot_dimension_numbers<[1], [0], [0], [1], [0, 0, 1, 1], [], []>} : vector<14x16xf32>, vector<16x56xf32>, vector<14x56xf32> -> vector<14x56xf32>
    %c0_5 = arith.constant 0 : index
    %c1 = arith.constant 1 : index
    %c0_6 = arith.constant 0 : index
    %5 = vector.load %arg1[%c0_5, %c1, %c0_6] : memref<1x16x16xf32, #tpu.memory_space<vmem>>, vector<1x14x16xf32>
    %6 = vector.shape_cast %5 : vector<1x14x16xf32> to vector<14x16xf32>
    %c1_7 = arith.constant 1 : index
    %c0_8 = arith.constant 0 : index
    %c0_9 = arith.constant 0 : index
    %7 = vector.load %arg2[%c1_7, %c0_8, %c0_9] : memref<3x16x56xf32, #tpu.memory_space<vmem>>, vector<1x16x56xf32>
    %8 = vector.shape_cast %7 : vector<1x16x56xf32> to vector<16x56xf32>
    %cst_10 = arith.constant dense<0.000000e+00> : vector<14x56xf32>
    %9 = tpu.matmul %6, %8, %cst_10 {dimension_numbers = #tpu.dot_dimension_numbers<[1], [0], [0], [1], [0, 0, 1, 1], [], []>} : vector<14x16xf32>, vector<16x56xf32>, vector<14x56xf32> -> vector<14x56xf32>
    %10 = arith.addf %4, %9 : vector<14x56xf32>
    %c0_11 = arith.constant 0 : index
    %c2 = arith.constant 2 : index
    %c0_12 = arith.constant 0 : index
    %11 = vector.load %arg1[%c0_11, %c2, %c0_12] : memref<1x16x16xf32, #tpu.memory_space<vmem>>, vector<1x14x16xf32>
    %12 = vector.shape_cast %11 : vector<1x14x16xf32> to vector<14x16xf32>
    %c2_13 = arith.constant 2 : index
    %c0_14 = arith.constant 0 : index
    %c0_15 = arith.constant 0 : index
    %13 = vector.load %arg2[%c2_13, %c0_14, %c0_15] : memref<3x16x56xf32, #tpu.memory_space<vmem>>, vector<1x16x56xf32>
    %14 = vector.shape_cast %13 : vector<1x16x56xf32> to vector<16x56xf32>
    %cst_16 = arith.constant dense<0.000000e+00> : vector<14x56xf32>
    %15 = tpu.matmul %12, %14, %cst_16 {dimension_numbers = #tpu.dot_dimension_numbers<[1], [0], [0], [1], [0, 0, 1, 1], [], []>} : vector<14x16xf32>, vector<16x56xf32>, vector<14x56xf32> -> vector<14x56xf32>
    %16 = arith.addf %10, %15 : vector<14x56xf32>
    %c0_17 = arith.constant 0 : index
    %c0_18 = arith.constant 0 : index
    %17 = vector.load %arg3[%c0_17, %c0_18] : memref<1x56xf32, #tpu.memory_space<vmem>>, vector<1x56xf32>
    %18 = vector.broadcast %17 : vector<1x56xf32> to vector<14x56xf32>
    %19 = arith.addf %16, %18 : vector<14x56xf32>
    %cst_19 = arith.constant 0.000000e+00 : f32
    %20 = vector.broadcast %cst_19 : f32 to vector<14x56xf32>
    %21 = arith.maximumf %19, %20 : vector<14x56xf32>
    %c0_20 = arith.constant 0 : index
    %c0_21 = arith.constant 0 : index
    %22 = vector.load %arg10[%c0_20, %c0_21] : memref<14x56xf32, #tpu.memory_space<vmem>>, vector<14x56xf32>
    tpu.vector_store %arg10[%c0_20, %c0_21], %21 {strides = array<i32>} : memref<14x56xf32, #tpu.memory_space<vmem>>, vector<14x56xf32>,
    %c0_22 = arith.constant 0 : index
    %c0_23 = arith.constant 0 : index
    %23 = vector.load %arg10[%c0_22, %c0_23] : memref<14x56xf32, #tpu.memory_space<vmem>>, vector<12x56xf32>
    %c0_24 = arith.constant 0 : index
    %c0_25 = arith.constant 0 : index
    %c0_26 = arith.constant 0 : index
    %24 = vector.load %arg4[%c0_24, %c0_25, %c0_26] : memref<3x56x96xf32, #tpu.memory_space<vmem>>, vector<1x56x96xf32>
    %25 = vector.shape_cast %24 : vector<1x56x96xf32> to vector<56x96xf32>
    %cst_27 = arith.constant dense<0.000000e+00> : vector<12x96xf32>
    %26 = tpu.matmul %23, %25, %cst_27 {dimension_numbers = #tpu.dot_dimension_numbers<[1], [0], [0], [1], [0, 0, 1, 1], [], []>} : vector<12x56xf32>, vector<56x96xf32>, vector<12x96xf32> -> vector<12x96xf32>
    %c1_28 = arith.constant 1 : index
    %c0_29 = arith.constant 0 : index
    %27 = vector.load %arg10[%c1_28, %c0_29] : memref<14x56xf32, #tpu.memory_space<vmem>>, vector<12x56xf32>
    %c1_30 = arith.constant 1 : index
    %c0_31 = arith.constant 0 : index
    %c0_32 = arith.constant 0 : index
    %28 = vector.load %arg4[%c1_30, %c0_31, %c0_32] : memref<3x56x96xf32, #tpu.memory_space<vmem>>, vector<1x56x96xf32>
    %29 = vector.shape_cast %28 : vector<1x56x96xf32> to vector<56x96xf32>
    %cst_33 = arith.constant dense<0.000000e+00> : vector<12x96xf32>
    %30 = tpu.matmul %27, %29, %cst_33 {dimension_numbers = #tpu.dot_dimension_numbers<[1], [0], [0], [1], [0, 0, 1, 1], [], []>} : vector<12x56xf32>, vector<56x96xf32>, vector<12x96xf32> -> vector<12x96xf32>
    %31 = arith.addf %26, %30 : vector<12x96xf32>
    %c2_34 = arith.constant 2 : index
    %c0_35 = arith.constant 0 : index
    %32 = vector.load %arg10[%c2_34, %c0_35] : memref<14x56xf32, #tpu.memory_space<vmem>>, vector<12x56xf32>
    %c2_36 = arith.constant 2 : index
    %c0_37 = arith.constant 0 : index
    %c0_38 = arith.constant 0 : index
    %33 = vector.load %arg4[%c2_36, %c0_37, %c0_38] : memref<3x56x96xf32, #tpu.memory_space<vmem>>, vector<1x56x96xf32>
    %34 = vector.shape_cast %33 : vector<1x56x96xf32> to vector<56x96xf32>
    %cst_39 = arith.constant dense<0.000000e+00> : vector<12x96xf32>
    %35 = tpu.matmul %32, %34, %cst_39 {dimension_numbers = #tpu.dot_dimension_numbers<[1], [0], [0], [1], [0, 0, 1, 1], [], []>} : vector<12x56xf32>, vector<56x96xf32>, vector<12x96xf32> -> vector<12x96xf32>
    %36 = arith.addf %31, %35 : vector<12x96xf32>
    %c0_40 = arith.constant 0 : index
    %c0_41 = arith.constant 0 : index
    %37 = vector.load %arg5[%c0_40, %c0_41] : memref<1x96xf32, #tpu.memory_space<vmem>>, vector<1x96xf32>
    %38 = vector.broadcast %37 : vector<1x96xf32> to vector<12x96xf32>
    %39 = arith.addf %36, %38 : vector<12x96xf32>
    %cst_42 = arith.constant 0.000000e+00 : f32
    %40 = vector.broadcast %cst_42 : f32 to vector<12x96xf32>
    %41 = arith.maximumf %39, %40 : vector<12x96xf32>
    %c0_43 = arith.constant 0 : index
    %c0_44 = arith.constant 0 : index
    %42 = vector.load %arg11[%c0_43, %c0_44] : memref<12x96xf32, #tpu.memory_space<vmem>>, vector<12x96xf32>
    tpu.vector_store %arg11[%c0_43, %c0_44], %41 {strides = array<i32>} : memref<12x96xf32, #tpu.memory_space<vmem>>, vector<12x96xf32>,
    %c0_45 = arith.constant 0 : index
    %c0_46 = arith.constant 0 : index
    %43 = vector.load %arg7[%c0_45, %c0_46] : memref<1x16xf32, #tpu.memory_space<vmem>>, vector<1x16xf32>
    %c0_47 = arith.constant 0 : index
    %c0_48 = arith.constant 0 : index
    %44 = vector.load %arg11[%c0_47, %c0_48] : memref<12x96xf32, #tpu.memory_space<vmem>>, vector<1x96xf32>
    %c0_49 = arith.constant 0 : index
    %c0_50 = arith.constant 0 : index
    %c0_51 = arith.constant 0 : index
    %45 = vector.load %arg6[%c0_49, %c0_50, %c0_51] : memref<12x96x16xf32, #tpu.memory_space<vmem>>, vector<1x96x16xf32>
    %46 = vector.shape_cast %45 : vector<1x96x16xf32> to vector<96x16xf32>
    %cst_52 = arith.constant dense<0.000000e+00> : vector<1x16xf32>
    %47 = tpu.matmul %44, %46, %cst_52 {dimension_numbers = #tpu.dot_dimension_numbers<[1], [0], [0], [1], [0, 0, 1, 1], [], []>} : vector<1x96xf32>, vector<96x16xf32>, vector<1x16xf32> -> vector<1x16xf32>
    %48 = arith.addf %43, %47 : vector<1x16xf32>
    %c1_53 = arith.constant 1 : index
    %c0_54 = arith.constant 0 : index
    %49 = vector.load %arg11[%c1_53, %c0_54] : memref<12x96xf32, #tpu.memory_space<vmem>>, vector<1x96xf32>
    %c1_55 = arith.constant 1 : index
    %c0_56 = arith.constant 0 : index
    %c0_57 = arith.constant 0 : index
    %50 = vector.load %arg6[%c1_55, %c0_56, %c0_57] : memref<12x96x16xf32, #tpu.memory_space<vmem>>, vector<1x96x16xf32>
    %51 = vector.shape_cast %50 : vector<1x96x16xf32> to vector<96x16xf32>
    %cst_58 = arith.constant dense<0.000000e+00> : vector<1x16xf32>
    %52 = tpu.matmul %49, %51, %cst_58 {dimension_numbers = #tpu.dot_dimension_numbers<[1], [0], [0], [1], [0, 0, 1, 1], [], []>} : vector<1x96xf32>, vector<96x16xf32>, vector<1x16xf32> -> vector<1x16xf32>
    %53 = arith.addf %48, %52 : vector<1x16xf32>
    %c2_59 = arith.constant 2 : index
    %c0_60 = arith.constant 0 : index
    %54 = vector.load %arg11[%c2_59, %c0_60] : memref<12x96xf32, #tpu.memory_space<vmem>>, vector<1x96xf32>
    %c2_61 = arith.constant 2 : index
    %c0_62 = arith.constant 0 : index
    %c0_63 = arith.constant 0 : index
    %55 = vector.load %arg6[%c2_61, %c0_62, %c0_63] : memref<12x96x16xf32, #tpu.memory_space<vmem>>, vector<1x96x16xf32>
    %56 = vector.shape_cast %55 : vector<1x96x16xf32> to vector<96x16xf32>
    %cst_64 = arith.constant dense<0.000000e+00> : vector<1x16xf32>
    %57 = tpu.matmul %54, %56, %cst_64 {dimension_numbers = #tpu.dot_dimension_numbers<[1], [0], [0], [1], [0, 0, 1, 1], [], []>} : vector<1x96xf32>, vector<96x16xf32>, vector<1x16xf32> -> vector<1x16xf32>
    %58 = arith.addf %53, %57 : vector<1x16xf32>
    %c3 = arith.constant 3 : index
    %c0_65 = arith.constant 0 : index
    %59 = vector.load %arg11[%c3, %c0_65] : memref<12x96xf32, #tpu.memory_space<vmem>>, vector<1x96xf32>
    %c3_66 = arith.constant 3 : index
    %c0_67 = arith.constant 0 : index
    %c0_68 = arith.constant 0 : index
    %60 = vector.load %arg6[%c3_66, %c0_67, %c0_68] : memref<12x96x16xf32, #tpu.memory_space<vmem>>, vector<1x96x16xf32>
    %61 = vector.shape_cast %60 : vector<1x96x16xf32> to vector<96x16xf32>
    %cst_69 = arith.constant dense<0.000000e+00> : vector<1x16xf32>
    %62 = tpu.matmul %59, %61, %cst_69 {dimension_numbers = #tpu.dot_dimension_numbers<[1], [0], [0], [1], [0, 0, 1, 1], [], []>} : vector<1x96xf32>, vector<96x16xf32>, vector<1x16xf32> -> vector<1x16xf32>
    %63 = arith.addf %58, %62 : vector<1x16xf32>
    %c4 = arith.constant 4 : index
    %c0_70 = arith.constant 0 : index
    %64 = vector.load %arg11[%c4, %c0_70] : memref<12x96xf32, #tpu.memory_space<vmem>>, vector<1x96xf32>
    %c4_71 = arith.constant 4 : index
    %c0_72 = arith.constant 0 : index
    %c0_73 = arith.constant 0 : index
    %65 = vector.load %arg6[%c4_71, %c0_72, %c0_73] : memref<12x96x16xf32, #tpu.memory_space<vmem>>, vector<1x96x16xf32>
    %66 = vector.shape_cast %65 : vector<1x96x16xf32> to vector<96x16xf32>
    %cst_74 = arith.constant dense<0.000000e+00> : vector<1x16xf32>
    %67 = tpu.matmul %64, %66, %cst_74 {dimension_numbers = #tpu.dot_dimension_numbers<[1], [0], [0], [1], [0, 0, 1, 1], [], []>} : vector<1x96xf32>, vector<96x16xf32>, vector<1x16xf32> -> vector<1x16xf32>
    %68 = arith.addf %63, %67 : vector<1x16xf32>
    %c5 = arith.constant 5 : index
    %c0_75 = arith.constant 0 : index
    %69 = vector.load %arg11[%c5, %c0_75] : memref<12x96xf32, #tpu.memory_space<vmem>>, vector<1x96xf32>
    %c5_76 = arith.constant 5 : index
    %c0_77 = arith.constant 0 : index
    %c0_78 = arith.constant 0 : index
    %70 = vector.load %arg6[%c5_76, %c0_77, %c0_78] : memref<12x96x16xf32, #tpu.memory_space<vmem>>, vector<1x96x16xf32>
    %71 = vector.shape_cast %70 : vector<1x96x16xf32> to vector<96x16xf32>
    %cst_79 = arith.constant dense<0.000000e+00> : vector<1x16xf32>
    %72 = tpu.matmul %69, %71, %cst_79 {dimension_numbers = #tpu.dot_dimension_numbers<[1], [0], [0], [1], [0, 0, 1, 1], [], []>} : vector<1x96xf32>, vector<96x16xf32>, vector<1x16xf32> -> vector<1x16xf32>
    %73 = arith.addf %68, %72 : vector<1x16xf32>
    %c6 = arith.constant 6 : index
    %c0_80 = arith.constant 0 : index
    %74 = vector.load %arg11[%c6, %c0_80] : memref<12x96xf32, #tpu.memory_space<vmem>>, vector<1x96xf32>
    %c6_81 = arith.constant 6 : index
    %c0_82 = arith.constant 0 : index
    %c0_83 = arith.constant 0 : index
    %75 = vector.load %arg6[%c6_81, %c0_82, %c0_83] : memref<12x96x16xf32, #tpu.memory_space<vmem>>, vector<1x96x16xf32>
    %76 = vector.shape_cast %75 : vector<1x96x16xf32> to vector<96x16xf32>
    %cst_84 = arith.constant dense<0.000000e+00> : vector<1x16xf32>
    %77 = tpu.matmul %74, %76, %cst_84 {dimension_numbers = #tpu.dot_dimension_numbers<[1], [0], [0], [1], [0, 0, 1, 1], [], []>} : vector<1x96xf32>, vector<96x16xf32>, vector<1x16xf32> -> vector<1x16xf32>
    %78 = arith.addf %73, %77 : vector<1x16xf32>
    %c7 = arith.constant 7 : index
    %c0_85 = arith.constant 0 : index
    %79 = vector.load %arg11[%c7, %c0_85] : memref<12x96xf32, #tpu.memory_space<vmem>>, vector<1x96xf32>
    %c7_86 = arith.constant 7 : index
    %c0_87 = arith.constant 0 : index
    %c0_88 = arith.constant 0 : index
    %80 = vector.load %arg6[%c7_86, %c0_87, %c0_88] : memref<12x96x16xf32, #tpu.memory_space<vmem>>, vector<1x96x16xf32>
    %81 = vector.shape_cast %80 : vector<1x96x16xf32> to vector<96x16xf32>
    %cst_89 = arith.constant dense<0.000000e+00> : vector<1x16xf32>
    %82 = tpu.matmul %79, %81, %cst_89 {dimension_numbers = #tpu.dot_dimension_numbers<[1], [0], [0], [1], [0, 0, 1, 1], [], []>} : vector<1x96xf32>, vector<96x16xf32>, vector<1x16xf32> -> vector<1x16xf32>
    %83 = arith.addf %78, %82 : vector<1x16xf32>
    %c8 = arith.constant 8 : index
    %c0_90 = arith.constant 0 : index
    %84 = vector.load %arg11[%c8, %c0_90] : memref<12x96xf32, #tpu.memory_space<vmem>>, vector<1x96xf32>
    %c8_91 = arith.constant 8 : index
    %c0_92 = arith.constant 0 : index
    %c0_93 = arith.constant 0 : index
    %85 = vector.load %arg6[%c8_91, %c0_92, %c0_93] : memref<12x96x16xf32, #tpu.memory_space<vmem>>, vector<1x96x16xf32>
    %86 = vector.shape_cast %85 : vector<1x96x16xf32> to vector<96x16xf32>
    %cst_94 = arith.constant dense<0.000000e+00> : vector<1x16xf32>
    %87 = tpu.matmul %84, %86, %cst_94 {dimension_numbers = #tpu.dot_dimension_numbers<[1], [0], [0], [1], [0, 0, 1, 1], [], []>} : vector<1x96xf32>, vector<96x16xf32>, vector<1x16xf32> -> vector<1x16xf32>
    %88 = arith.addf %83, %87 : vector<1x16xf32>
    %c9 = arith.constant 9 : index
    %c0_95 = arith.constant 0 : index
    %89 = vector.load %arg11[%c9, %c0_95] : memref<12x96xf32, #tpu.memory_space<vmem>>, vector<1x96xf32>
    %c9_96 = arith.constant 9 : index
    %c0_97 = arith.constant 0 : index
    %c0_98 = arith.constant 0 : index
    %90 = vector.load %arg6[%c9_96, %c0_97, %c0_98] : memref<12x96x16xf32, #tpu.memory_space<vmem>>, vector<1x96x16xf32>
    %91 = vector.shape_cast %90 : vector<1x96x16xf32> to vector<96x16xf32>
    %cst_99 = arith.constant dense<0.000000e+00> : vector<1x16xf32>
    %92 = tpu.matmul %89, %91, %cst_99 {dimension_numbers = #tpu.dot_dimension_numbers<[1], [0], [0], [1], [0, 0, 1, 1], [], []>} : vector<1x96xf32>, vector<96x16xf32>, vector<1x16xf32> -> vector<1x16xf32>
    %93 = arith.addf %88, %92 : vector<1x16xf32>
    %c10 = arith.constant 10 : index
    %c0_100 = arith.constant 0 : index
    %94 = vector.load %arg11[%c10, %c0_100] : memref<12x96xf32, #tpu.memory_space<vmem>>, vector<1x96xf32>
    %c10_101 = arith.constant 10 : index
    %c0_102 = arith.constant 0 : index
    %c0_103 = arith.constant 0 : index
    %95 = vector.load %arg6[%c10_101, %c0_102, %c0_103] : memref<12x96x16xf32, #tpu.memory_space<vmem>>, vector<1x96x16xf32>
    %96 = vector.shape_cast %95 : vector<1x96x16xf32> to vector<96x16xf32>
    %cst_104 = arith.constant dense<0.000000e+00> : vector<1x16xf32>
    %97 = tpu.matmul %94, %96, %cst_104 {dimension_numbers = #tpu.dot_dimension_numbers<[1], [0], [0], [1], [0, 0, 1, 1], [], []>} : vector<1x96xf32>, vector<96x16xf32>, vector<1x16xf32> -> vector<1x16xf32>
    %98 = arith.addf %93, %97 : vector<1x16xf32>
    %c11 = arith.constant 11 : index
    %c0_105 = arith.constant 0 : index
    %99 = vector.load %arg11[%c11, %c0_105] : memref<12x96xf32, #tpu.memory_space<vmem>>, vector<1x96xf32>
    %c11_106 = arith.constant 11 : index
    %c0_107 = arith.constant 0 : index
    %c0_108 = arith.constant 0 : index
    %100 = vector.load %arg6[%c11_106, %c0_107, %c0_108] : memref<12x96x16xf32, #tpu.memory_space<vmem>>, vector<1x96x16xf32>
    %101 = vector.shape_cast %100 : vector<1x96x16xf32> to vector<96x16xf32>
    %cst_109 = arith.constant dense<0.000000e+00> : vector<1x16xf32>
    %102 = tpu.matmul %99, %101, %cst_109 {dimension_numbers = #tpu.dot_dimension_numbers<[1], [0], [0], [1], [0, 0, 1, 1], [], []>} : vector<1x96xf32>, vector<96x16xf32>, vector<1x16xf32> -> vector<1x16xf32>
    %103 = arith.addf %98, %102 : vector<1x16xf32>
    %104 = vector.extract_strided_slice %103 {offsets = [0, 0], sizes = [1, 8], strides = [1, 1]} : vector<1x16xf32> to vector<1x8xf32>
    %c0_110 = arith.constant 0 : index
    %c0_111 = arith.constant 0 : index
    %c0_112 = arith.constant 0 : index
    %105 = vector.load %arg8[%c0_110, %c0_111, %c0_112] : memref<1x1x8xf32, #tpu.memory_space<vmem>>, vector<1x1x8xf32>
    %106 = vector.shape_cast %105 : vector<1x1x8xf32> to vector<1x8xf32>
    %107 = vector.shape_cast %104 : vector<1x8xf32> to vector<1x1x8xf32>
    tpu.vector_store %arg8[%c0_110, %c0_111, %c0_112], %107 {strides = array<i32>} : memref<1x1x8xf32, #tpu.memory_space<vmem>>, vector<1x1x8xf32>,
    %108 = vector.extract_strided_slice %103 {offsets = [0, 8], sizes = [1, 8], strides = [1, 1]} : vector<1x16xf32> to vector<1x8xf32>
    %c0_113 = arith.constant 0 : index
    %c0_114 = arith.constant 0 : index
    %c0_115 = arith.constant 0 : index
    %109 = vector.load %arg9[%c0_113, %c0_114, %c0_115] : memref<1x1x8xf32, #tpu.memory_space<vmem>>, vector<1x1x8xf32>
    %110 = vector.shape_cast %109 : vector<1x1x8xf32> to vector<1x8xf32>
    %111 = vector.shape_cast %108 : vector<1x8xf32> to vector<1x1x8xf32>
    tpu.vector_store %arg9[%c0_113, %c0_114, %c0_115], %111 {strides = array<i32>} : memref<1x1x8xf32, #tpu.memory_space<vmem>>, vector<1x1x8xf32>,
    return
  }
  func.func @transform_0(%arg0: i32) -> (i32, i32, i32) {
    %c0_i32 = arith.constant 0 : i32
    %c0_i32_0 = arith.constant 0 : i32
    %c0_i32_1 = arith.constant 0 : i32
    return %arg0, %c0_i32, %c0_i32_0 : i32, i32, i32
  }
  func.func @transform_1(%arg0: i32) -> (i32, i32, i32) {
    %c0_i32 = arith.constant 0 : i32
    %c0_i32_0 = arith.constant 0 : i32
    %c0_i32_1 = arith.constant 0 : i32
    %c0_i32_2 = arith.constant 0 : i32
    return %c0_i32, %c0_i32_0, %c0_i32_1 : i32, i32, i32
  }
  func.func @transform_2(%arg0: i32) -> (i32, i32) {
    %c0_i32 = arith.constant 0 : i32
    %c0_i32_0 = arith.constant 0 : i32
    %c0_i32_1 = arith.constant 0 : i32
    return %c0_i32, %c0_i32_0 : i32, i32
  }
  func.func @transform_3(%arg0: i32) -> (i32, i32, i32) {
    %c0_i32 = arith.constant 0 : i32
    %c0_i32_0 = arith.constant 0 : i32
    %c0_i32_1 = arith.constant 0 : i32
    %c0_i32_2 = arith.constant 0 : i32
    return %c0_i32, %c0_i32_0, %c0_i32_1 : i32, i32, i32
  }
  func.func @transform_4(%arg0: i32) -> (i32, i32) {
    %c0_i32 = arith.constant 0 : i32
    %c0_i32_0 = arith.constant 0 : i32
    %c0_i32_1 = arith.constant 0 : i32
    return %c0_i32, %c0_i32_0 : i32, i32
  }
  func.func @transform_5(%arg0: i32) -> (i32, i32, i32) {
    %c0_i32 = arith.constant 0 : i32
    %c0_i32_0 = arith.constant 0 : i32
    %c0_i32_1 = arith.constant 0 : i32
    %c0_i32_2 = arith.constant 0 : i32
    return %c0_i32, %c0_i32_0, %c0_i32_1 : i32, i32, i32
  }
  func.func @transform_6(%arg0: i32) -> (i32, i32) {
    %c0_i32 = arith.constant 0 : i32
    %c0_i32_0 = arith.constant 0 : i32
    %c0_i32_1 = arith.constant 0 : i32
    return %c0_i32, %c0_i32_0 : i32, i32
  }
  func.func @transform_7(%arg0: i32) -> (i32, i32, i32) {
    %c0_i32 = arith.constant 0 : i32
    %c0_i32_0 = arith.constant 0 : i32
    %c0_i32_1 = arith.constant 0 : i32
    return %arg0, %c0_i32, %c0_i32_0 : i32, i32, i32
  }
  func.func @transform_8(%arg0: i32) -> (i32, i32, i32) {
    %c0_i32 = arith.constant 0 : i32
    %c0_i32_0 = arith.constant 0 : i32
    %c0_i32_1 = arith.constant 0 : i32
    return %arg0, %c0_i32, %c0_i32_0 : i32, i32, i32
  }
}

module attributes {stable_mosaic.version = 11 : i64} {
  func.func @kernel(%arg0: i32, %arg1: memref<1x1x8xf32, #tpu.memory_space<vmem>>, %arg2: memref<1x1x8xf32, #tpu.memory_space<vmem>>, %arg3: memref<1x1x8xf32, #tpu.memory_space<vmem>>, %arg4: memref<12x8x96xf32, #tpu.memory_space<vmem>>, %arg5: memref<12x96xf32, #tpu.memory_space<vmem>>, %arg6: memref<3x96x56xf32, #tpu.memory_space<vmem>>, %arg7: memref<1x56xf32, #tpu.memory_space<vmem>>, %arg8: memref<3x56x16xf32, #tpu.memory_space<vmem>>, %arg9: memref<1x16xf32, #tpu.memory_space<vmem>>, %arg10: memref<1x1x8xf32, #tpu.memory_space<vmem>>, %arg11: memref<1x16x16xf32, #tpu.memory_space<vmem>>, %arg12: memref<16x96xf32, #tpu.memory_space<vmem>>, %arg13: memref<18x56xf32, #tpu.memory_space<vmem>>) attributes {dimension_semantics = [#tpu.dimension_semantics<parallel>], iteration_bounds = array<i64: 4>, scalar_prefetch = 0 : i64, scratch_operands = 2 : i64, tpu.core_type = #tpu.core_type<tc>, window_params = [{transform_indices = @transform_0, window_bounds = array<i64: 1, 1, 8>}, {transform_indices = @transform_1, window_bounds = array<i64: 1, 1, 8>}, {transform_indices = @transform_2, window_bounds = array<i64: 1, 1, 8>}, {pipeline_mode = #tpu.pipeline_mode<synchronous>, transform_indices = @transform_3, window_bounds = array<i64: 12, 8, 96>}, {pipeline_mode = #tpu.pipeline_mode<synchronous>, transform_indices = @transform_4, window_bounds = array<i64: 12, 96>}, {pipeline_mode = #tpu.pipeline_mode<synchronous>, transform_indices = @transform_5, window_bounds = array<i64: 3, 96, 56>}, {pipeline_mode = #tpu.pipeline_mode<synchronous>, transform_indices = @transform_6, window_bounds = array<i64: 1, 56>}, {pipeline_mode = #tpu.pipeline_mode<synchronous>, transform_indices = @transform_7, window_bounds = array<i64: 3, 56, 16>}, {pipeline_mode = #tpu.pipeline_mode<synchronous>, transform_indices = @transform_8, window_bounds = array<i64: 1, 16>}, {transform_indices = @transform_9, window_bounds = array<i64: 1, 1, 8>}, {transform_indices = @transform_10, window_bounds = array<i64: 1, 16, 16>}]} {
    %c0 = arith.constant 0 : index
    %c0_0 = arith.constant 0 : index
    %c0_1 = arith.constant 0 : index
    %0 = vector.load %arg1[%c0, %c0_0, %c0_1] : memref<1x1x8xf32, #tpu.memory_space<vmem>>, vector<1x1x8xf32>
    %1 = vector.shape_cast %0 : vector<1x1x8xf32> to vector<1x8xf32>
    %c0_2 = arith.constant 0 : index
    %c0_3 = arith.constant 0 : index
    %c0_4 = arith.constant 0 : index
    %2 = vector.load %arg2[%c0_2, %c0_3, %c0_4] : memref<1x1x8xf32, #tpu.memory_space<vmem>>, vector<1x1x8xf32>
    %3 = vector.shape_cast %2 : vector<1x1x8xf32> to vector<1x8xf32>
    %cst = arith.constant 5.000000e-01 : f32
    %4 = vector.broadcast %cst : f32 to vector<1x8xf32>
    %5 = arith.mulf %4, %3 : vector<1x8xf32>
    %6 = math.exp %5 : vector<1x8xf32>
    %c0_5 = arith.constant 0 : index
    %c0_6 = arith.constant 0 : index
    %c0_7 = arith.constant 0 : index
    %7 = vector.load %arg3[%c0_5, %c0_6, %c0_7] : memref<1x1x8xf32, #tpu.memory_space<vmem>>, vector<1x1x8xf32>
    %8 = vector.shape_cast %7 : vector<1x1x8xf32> to vector<1x8xf32>
    %9 = arith.mulf %6, %8 : vector<1x8xf32>
    %10 = arith.addf %1, %9 : vector<1x8xf32>
    %c0_8 = arith.constant 0 : index
    %c0_9 = arith.constant 0 : index
    %c0_10 = arith.constant 0 : index
    %11 = vector.load %arg10[%c0_8, %c0_9, %c0_10] : memref<1x1x8xf32, #tpu.memory_space<vmem>>, vector<1x1x8xf32>
    %12 = vector.shape_cast %11 : vector<1x1x8xf32> to vector<1x8xf32>
    %13 = vector.shape_cast %10 : vector<1x8xf32> to vector<1x1x8xf32>
    tpu.vector_store %arg10[%c0_8, %c0_9, %c0_10], %13 {strides = array<i32>} : memref<1x1x8xf32, #tpu.memory_space<vmem>>, vector<1x1x8xf32>,
    %cst_11 = arith.constant 0.000000e+00 : f32
    %14 = vector.broadcast %cst_11 : f32 to vector<16x96xf32>
    %c0_12 = arith.constant 0 : index
    %c0_13 = arith.constant 0 : index
    %15 = vector.load %arg12[%c0_12, %c0_13] : memref<16x96xf32, #tpu.memory_space<vmem>>, vector<16x96xf32>
    tpu.vector_store %arg12[%c0_12, %c0_13], %14 {strides = array<i32>} : memref<16x96xf32, #tpu.memory_space<vmem>>, vector<16x96xf32>,
    %cst_14 = arith.constant 0.000000e+00 : f32
    %16 = vector.broadcast %cst_14 : f32 to vector<18x56xf32>
    %c0_15 = arith.constant 0 : index
    %c0_16 = arith.constant 0 : index
    %17 = vector.load %arg13[%c0_15, %c0_16] : memref<18x56xf32, #tpu.memory_space<vmem>>, vector<18x56xf32>
    tpu.vector_store %arg13[%c0_15, %c0_16], %16 {strides = array<i32>} : memref<18x56xf32, #tpu.memory_space<vmem>>, vector<18x56xf32>,
    %c0_17 = arith.constant 0 : index
    %c0_18 = arith.constant 0 : index
    %c0_19 = arith.constant 0 : index
    %18 = vector.load %arg4[%c0_17, %c0_18, %c0_19] : memref<12x8x96xf32, #tpu.memory_space<vmem>>, vector<1x8x96xf32>
    %19 = vector.shape_cast %18 : vector<1x8x96xf32> to vector<8x96xf32>
    %cst_20 = arith.constant dense<0.000000e+00> : vector<1x96xf32>
    %20 = tpu.matmul %10, %19, %cst_20 {dimension_numbers = #tpu.dot_dimension_numbers<[1], [0], [0], [1], [0, 0, 1, 1], [], []>} : vector<1x8xf32>, vector<8x96xf32>, vector<1x96xf32> -> vector<1x96xf32>
    %c0_21 = arith.constant 0 : index
    %c0_22 = arith.constant 0 : index
    %21 = vector.load %arg5[%c0_21, %c0_22] : memref<12x96xf32, #tpu.memory_space<vmem>>, vector<1x96xf32>
    %22 = arith.addf %20, %21 : vector<1x96xf32>
    %cst_23 = arith.constant 0.000000e+00 : f32
    %23 = vector.broadcast %cst_23 : f32 to vector<1x96xf32>
    %24 = arith.maximumf %22, %23 : vector<1x96xf32>
    %c2 = arith.constant 2 : index
    %c0_24 = arith.constant 0 : index
    %25 = vector.load %arg12[%c2, %c0_24] : memref<16x96xf32, #tpu.memory_space<vmem>>, vector<1x96xf32>
    tpu.vector_store %arg12[%c2, %c0_24], %24 {strides = array<i32>} : memref<16x96xf32, #tpu.memory_space<vmem>>, vector<1x96xf32>,
    %c1 = arith.constant 1 : index
    %c0_25 = arith.constant 0 : index
    %c0_26 = arith.constant 0 : index
    %26 = vector.load %arg4[%c1, %c0_25, %c0_26] : memref<12x8x96xf32, #tpu.memory_space<vmem>>, vector<1x8x96xf32>
    %27 = vector.shape_cast %26 : vector<1x8x96xf32> to vector<8x96xf32>
    %cst_27 = arith.constant dense<0.000000e+00> : vector<1x96xf32>
    %28 = tpu.matmul %10, %27, %cst_27 {dimension_numbers = #tpu.dot_dimension_numbers<[1], [0], [0], [1], [0, 0, 1, 1], [], []>} : vector<1x8xf32>, vector<8x96xf32>, vector<1x96xf32> -> vector<1x96xf32>
    %c1_28 = arith.constant 1 : index
    %c0_29 = arith.constant 0 : index
    %29 = vector.load %arg5[%c1_28, %c0_29] : memref<12x96xf32, #tpu.memory_space<vmem>>, vector<1x96xf32>
    %30 = arith.addf %28, %29 : vector<1x96xf32>
    %cst_30 = arith.constant 0.000000e+00 : f32
    %31 = vector.broadcast %cst_30 : f32 to vector<1x96xf32>
    %32 = arith.maximumf %30, %31 : vector<1x96xf32>
    %c3 = arith.constant 3 : index
    %c0_31 = arith.constant 0 : index
    %33 = vector.load %arg12[%c3, %c0_31] : memref<16x96xf32, #tpu.memory_space<vmem>>, vector<1x96xf32>
    tpu.vector_store %arg12[%c3, %c0_31], %32 {strides = array<i32>} : memref<16x96xf32, #tpu.memory_space<vmem>>, vector<1x96xf32>,
    %c2_32 = arith.constant 2 : index
    %c0_33 = arith.constant 0 : index
    %c0_34 = arith.constant 0 : index
    %34 = vector.load %arg4[%c2_32, %c0_33, %c0_34] : memref<12x8x96xf32, #tpu.memory_space<vmem>>, vector<1x8x96xf32>
    %35 = vector.shape_cast %34 : vector<1x8x96xf32> to vector<8x96xf32>
    %cst_35 = arith.constant dense<0.000000e+00> : vector<1x96xf32>
    %36 = tpu.matmul %10, %35, %cst_35 {dimension_numbers = #tpu.dot_dimension_numbers<[1], [0], [0], [1], [0, 0, 1, 1], [], []>} : vector<1x8xf32>, vector<8x96xf32>, vector<1x96xf32> -> vector<1x96xf32>
    %c2_36 = arith.constant 2 : index
    %c0_37 = arith.constant 0 : index
    %37 = vector.load %arg5[%c2_36, %c0_37] : memref<12x96xf32, #tpu.memory_space<vmem>>, vector<1x96xf32>
    %38 = arith.addf %36, %37 : vector<1x96xf32>
    %cst_38 = arith.constant 0.000000e+00 : f32
    %39 = vector.broadcast %cst_38 : f32 to vector<1x96xf32>
    %40 = arith.maximumf %38, %39 : vector<1x96xf32>
    %c4 = arith.constant 4 : index
    %c0_39 = arith.constant 0 : index
    %41 = vector.load %arg12[%c4, %c0_39] : memref<16x96xf32, #tpu.memory_space<vmem>>, vector<1x96xf32>
    tpu.vector_store %arg12[%c4, %c0_39], %40 {strides = array<i32>} : memref<16x96xf32, #tpu.memory_space<vmem>>, vector<1x96xf32>,
    %c3_40 = arith.constant 3 : index
    %c0_41 = arith.constant 0 : index
    %c0_42 = arith.constant 0 : index
    %42 = vector.load %arg4[%c3_40, %c0_41, %c0_42] : memref<12x8x96xf32, #tpu.memory_space<vmem>>, vector<1x8x96xf32>
    %43 = vector.shape_cast %42 : vector<1x8x96xf32> to vector<8x96xf32>
    %cst_43 = arith.constant dense<0.000000e+00> : vector<1x96xf32>
    %44 = tpu.matmul %10, %43, %cst_43 {dimension_numbers = #tpu.dot_dimension_numbers<[1], [0], [0], [1], [0, 0, 1, 1], [], []>} : vector<1x8xf32>, vector<8x96xf32>, vector<1x96xf32> -> vector<1x96xf32>
    %c3_44 = arith.constant 3 : index
    %c0_45 = arith.constant 0 : index
    %45 = vector.load %arg5[%c3_44, %c0_45] : memref<12x96xf32, #tpu.memory_space<vmem>>, vector<1x96xf32>
    %46 = arith.addf %44, %45 : vector<1x96xf32>
    %cst_46 = arith.constant 0.000000e+00 : f32
    %47 = vector.broadcast %cst_46 : f32 to vector<1x96xf32>
    %48 = arith.maximumf %46, %47 : vector<1x96xf32>
    %c5 = arith.constant 5 : index
    %c0_47 = arith.constant 0 : index
    %49 = vector.load %arg12[%c5, %c0_47] : memref<16x96xf32, #tpu.memory_space<vmem>>, vector<1x96xf32>
    tpu.vector_store %arg12[%c5, %c0_47], %48 {strides = array<i32>} : memref<16x96xf32, #tpu.memory_space<vmem>>, vector<1x96xf32>,
    %c4_48 = arith.constant 4 : index
    %c0_49 = arith.constant 0 : index
    %c0_50 = arith.constant 0 : index
    %50 = vector.load %arg4[%c4_48, %c0_49, %c0_50] : memref<12x8x96xf32, #tpu.memory_space<vmem>>, vector<1x8x96xf32>
    %51 = vector.shape_cast %50 : vector<1x8x96xf32> to vector<8x96xf32>
    %cst_51 = arith.constant dense<0.000000e+00> : vector<1x96xf32>
    %52 = tpu.matmul %10, %51, %cst_51 {dimension_numbers = #tpu.dot_dimension_numbers<[1], [0], [0], [1], [0, 0, 1, 1], [], []>} : vector<1x8xf32>, vector<8x96xf32>, vector<1x96xf32> -> vector<1x96xf32>
    %c4_52 = arith.constant 4 : index
    %c0_53 = arith.constant 0 : index
    %53 = vector.load %arg5[%c4_52, %c0_53] : memref<12x96xf32, #tpu.memory_space<vmem>>, vector<1x96xf32>
    %54 = arith.addf %52, %53 : vector<1x96xf32>
    %cst_54 = arith.constant 0.000000e+00 : f32
    %55 = vector.broadcast %cst_54 : f32 to vector<1x96xf32>
    %56 = arith.maximumf %54, %55 : vector<1x96xf32>
    %c6 = arith.constant 6 : index
    %c0_55 = arith.constant 0 : index
    %57 = vector.load %arg12[%c6, %c0_55] : memref<16x96xf32, #tpu.memory_space<vmem>>, vector<1x96xf32>
    tpu.vector_store %arg12[%c6, %c0_55], %56 {strides = array<i32>} : memref<16x96xf32, #tpu.memory_space<vmem>>, vector<1x96xf32>,
    %c5_56 = arith.constant 5 : index
    %c0_57 = arith.constant 0 : index
    %c0_58 = arith.constant 0 : index
    %58 = vector.load %arg4[%c5_56, %c0_57, %c0_58] : memref<12x8x96xf32, #tpu.memory_space<vmem>>, vector<1x8x96xf32>
    %59 = vector.shape_cast %58 : vector<1x8x96xf32> to vector<8x96xf32>
    %cst_59 = arith.constant dense<0.000000e+00> : vector<1x96xf32>
    %60 = tpu.matmul %10, %59, %cst_59 {dimension_numbers = #tpu.dot_dimension_numbers<[1], [0], [0], [1], [0, 0, 1, 1], [], []>} : vector<1x8xf32>, vector<8x96xf32>, vector<1x96xf32> -> vector<1x96xf32>
    %c5_60 = arith.constant 5 : index
    %c0_61 = arith.constant 0 : index
    %61 = vector.load %arg5[%c5_60, %c0_61] : memref<12x96xf32, #tpu.memory_space<vmem>>, vector<1x96xf32>
    %62 = arith.addf %60, %61 : vector<1x96xf32>
    %cst_62 = arith.constant 0.000000e+00 : f32
    %63 = vector.broadcast %cst_62 : f32 to vector<1x96xf32>
    %64 = arith.maximumf %62, %63 : vector<1x96xf32>
    %c7 = arith.constant 7 : index
    %c0_63 = arith.constant 0 : index
    %65 = vector.load %arg12[%c7, %c0_63] : memref<16x96xf32, #tpu.memory_space<vmem>>, vector<1x96xf32>
    tpu.vector_store %arg12[%c7, %c0_63], %64 {strides = array<i32>} : memref<16x96xf32, #tpu.memory_space<vmem>>, vector<1x96xf32>,
    %c6_64 = arith.constant 6 : index
    %c0_65 = arith.constant 0 : index
    %c0_66 = arith.constant 0 : index
    %66 = vector.load %arg4[%c6_64, %c0_65, %c0_66] : memref<12x8x96xf32, #tpu.memory_space<vmem>>, vector<1x8x96xf32>
    %67 = vector.shape_cast %66 : vector<1x8x96xf32> to vector<8x96xf32>
    %cst_67 = arith.constant dense<0.000000e+00> : vector<1x96xf32>
    %68 = tpu.matmul %10, %67, %cst_67 {dimension_numbers = #tpu.dot_dimension_numbers<[1], [0], [0], [1], [0, 0, 1, 1], [], []>} : vector<1x8xf32>, vector<8x96xf32>, vector<1x96xf32> -> vector<1x96xf32>
    %c6_68 = arith.constant 6 : index
    %c0_69 = arith.constant 0 : index
    %69 = vector.load %arg5[%c6_68, %c0_69] : memref<12x96xf32, #tpu.memory_space<vmem>>, vector<1x96xf32>
    %70 = arith.addf %68, %69 : vector<1x96xf32>
    %cst_70 = arith.constant 0.000000e+00 : f32
    %71 = vector.broadcast %cst_70 : f32 to vector<1x96xf32>
    %72 = arith.maximumf %70, %71 : vector<1x96xf32>
    %c8 = arith.constant 8 : index
    %c0_71 = arith.constant 0 : index
    %73 = vector.load %arg12[%c8, %c0_71] : memref<16x96xf32, #tpu.memory_space<vmem>>, vector<1x96xf32>
    tpu.vector_store %arg12[%c8, %c0_71], %72 {strides = array<i32>} : memref<16x96xf32, #tpu.memory_space<vmem>>, vector<1x96xf32>,
    %c7_72 = arith.constant 7 : index
    %c0_73 = arith.constant 0 : index
    %c0_74 = arith.constant 0 : index
    %74 = vector.load %arg4[%c7_72, %c0_73, %c0_74] : memref<12x8x96xf32, #tpu.memory_space<vmem>>, vector<1x8x96xf32>
    %75 = vector.shape_cast %74 : vector<1x8x96xf32> to vector<8x96xf32>
    %cst_75 = arith.constant dense<0.000000e+00> : vector<1x96xf32>
    %76 = tpu.matmul %10, %75, %cst_75 {dimension_numbers = #tpu.dot_dimension_numbers<[1], [0], [0], [1], [0, 0, 1, 1], [], []>} : vector<1x8xf32>, vector<8x96xf32>, vector<1x96xf32> -> vector<1x96xf32>
    %c7_76 = arith.constant 7 : index
    %c0_77 = arith.constant 0 : index
    %77 = vector.load %arg5[%c7_76, %c0_77] : memref<12x96xf32, #tpu.memory_space<vmem>>, vector<1x96xf32>
    %78 = arith.addf %76, %77 : vector<1x96xf32>
    %cst_78 = arith.constant 0.000000e+00 : f32
    %79 = vector.broadcast %cst_78 : f32 to vector<1x96xf32>
    %80 = arith.maximumf %78, %79 : vector<1x96xf32>
    %c9 = arith.constant 9 : index
    %c0_79 = arith.constant 0 : index
    %81 = vector.load %arg12[%c9, %c0_79] : memref<16x96xf32, #tpu.memory_space<vmem>>, vector<1x96xf32>
    tpu.vector_store %arg12[%c9, %c0_79], %80 {strides = array<i32>} : memref<16x96xf32, #tpu.memory_space<vmem>>, vector<1x96xf32>,
    %c8_80 = arith.constant 8 : index
    %c0_81 = arith.constant 0 : index
    %c0_82 = arith.constant 0 : index
    %82 = vector.load %arg4[%c8_80, %c0_81, %c0_82] : memref<12x8x96xf32, #tpu.memory_space<vmem>>, vector<1x8x96xf32>
    %83 = vector.shape_cast %82 : vector<1x8x96xf32> to vector<8x96xf32>
    %cst_83 = arith.constant dense<0.000000e+00> : vector<1x96xf32>
    %84 = tpu.matmul %10, %83, %cst_83 {dimension_numbers = #tpu.dot_dimension_numbers<[1], [0], [0], [1], [0, 0, 1, 1], [], []>} : vector<1x8xf32>, vector<8x96xf32>, vector<1x96xf32> -> vector<1x96xf32>
    %c8_84 = arith.constant 8 : index
    %c0_85 = arith.constant 0 : index
    %85 = vector.load %arg5[%c8_84, %c0_85] : memref<12x96xf32, #tpu.memory_space<vmem>>, vector<1x96xf32>
    %86 = arith.addf %84, %85 : vector<1x96xf32>
    %cst_86 = arith.constant 0.000000e+00 : f32
    %87 = vector.broadcast %cst_86 : f32 to vector<1x96xf32>
    %88 = arith.maximumf %86, %87 : vector<1x96xf32>
    %c10 = arith.constant 10 : index
    %c0_87 = arith.constant 0 : index
    %89 = vector.load %arg12[%c10, %c0_87] : memref<16x96xf32, #tpu.memory_space<vmem>>, vector<1x96xf32>
    tpu.vector_store %arg12[%c10, %c0_87], %88 {strides = array<i32>} : memref<16x96xf32, #tpu.memory_space<vmem>>, vector<1x96xf32>,
    %c9_88 = arith.constant 9 : index
    %c0_89 = arith.constant 0 : index
    %c0_90 = arith.constant 0 : index
    %90 = vector.load %arg4[%c9_88, %c0_89, %c0_90] : memref<12x8x96xf32, #tpu.memory_space<vmem>>, vector<1x8x96xf32>
    %91 = vector.shape_cast %90 : vector<1x8x96xf32> to vector<8x96xf32>
    %cst_91 = arith.constant dense<0.000000e+00> : vector<1x96xf32>
    %92 = tpu.matmul %10, %91, %cst_91 {dimension_numbers = #tpu.dot_dimension_numbers<[1], [0], [0], [1], [0, 0, 1, 1], [], []>} : vector<1x8xf32>, vector<8x96xf32>, vector<1x96xf32> -> vector<1x96xf32>
    %c9_92 = arith.constant 9 : index
    %c0_93 = arith.constant 0 : index
    %93 = vector.load %arg5[%c9_92, %c0_93] : memref<12x96xf32, #tpu.memory_space<vmem>>, vector<1x96xf32>
    %94 = arith.addf %92, %93 : vector<1x96xf32>
    %cst_94 = arith.constant 0.000000e+00 : f32
    %95 = vector.broadcast %cst_94 : f32 to vector<1x96xf32>
    %96 = arith.maximumf %94, %95 : vector<1x96xf32>
    %c11 = arith.constant 11 : index
    %c0_95 = arith.constant 0 : index
    %97 = vector.load %arg12[%c11, %c0_95] : memref<16x96xf32, #tpu.memory_space<vmem>>, vector<1x96xf32>
    tpu.vector_store %arg12[%c11, %c0_95], %96 {strides = array<i32>} : memref<16x96xf32, #tpu.memory_space<vmem>>, vector<1x96xf32>,
    %c10_96 = arith.constant 10 : index
    %c0_97 = arith.constant 0 : index
    %c0_98 = arith.constant 0 : index
    %98 = vector.load %arg4[%c10_96, %c0_97, %c0_98] : memref<12x8x96xf32, #tpu.memory_space<vmem>>, vector<1x8x96xf32>
    %99 = vector.shape_cast %98 : vector<1x8x96xf32> to vector<8x96xf32>
    %cst_99 = arith.constant dense<0.000000e+00> : vector<1x96xf32>
    %100 = tpu.matmul %10, %99, %cst_99 {dimension_numbers = #tpu.dot_dimension_numbers<[1], [0], [0], [1], [0, 0, 1, 1], [], []>} : vector<1x8xf32>, vector<8x96xf32>, vector<1x96xf32> -> vector<1x96xf32>
    %c10_100 = arith.constant 10 : index
    %c0_101 = arith.constant 0 : index
    %101 = vector.load %arg5[%c10_100, %c0_101] : memref<12x96xf32, #tpu.memory_space<vmem>>, vector<1x96xf32>
    %102 = arith.addf %100, %101 : vector<1x96xf32>
    %cst_102 = arith.constant 0.000000e+00 : f32
    %103 = vector.broadcast %cst_102 : f32 to vector<1x96xf32>
    %104 = arith.maximumf %102, %103 : vector<1x96xf32>
    %c12 = arith.constant 12 : index
    %c0_103 = arith.constant 0 : index
    %105 = vector.load %arg12[%c12, %c0_103] : memref<16x96xf32, #tpu.memory_space<vmem>>, vector<1x96xf32>
    tpu.vector_store %arg12[%c12, %c0_103], %104 {strides = array<i32>} : memref<16x96xf32, #tpu.memory_space<vmem>>, vector<1x96xf32>,
    %c11_104 = arith.constant 11 : index
    %c0_105 = arith.constant 0 : index
    %c0_106 = arith.constant 0 : index
    %106 = vector.load %arg4[%c11_104, %c0_105, %c0_106] : memref<12x8x96xf32, #tpu.memory_space<vmem>>, vector<1x8x96xf32>
    %107 = vector.shape_cast %106 : vector<1x8x96xf32> to vector<8x96xf32>
    %cst_107 = arith.constant dense<0.000000e+00> : vector<1x96xf32>
    %108 = tpu.matmul %10, %107, %cst_107 {dimension_numbers = #tpu.dot_dimension_numbers<[1], [0], [0], [1], [0, 0, 1, 1], [], []>} : vector<1x8xf32>, vector<8x96xf32>, vector<1x96xf32> -> vector<1x96xf32>
    %c11_108 = arith.constant 11 : index
    %c0_109 = arith.constant 0 : index
    %109 = vector.load %arg5[%c11_108, %c0_109] : memref<12x96xf32, #tpu.memory_space<vmem>>, vector<1x96xf32>
    %110 = arith.addf %108, %109 : vector<1x96xf32>
    %cst_110 = arith.constant 0.000000e+00 : f32
    %111 = vector.broadcast %cst_110 : f32 to vector<1x96xf32>
    %112 = arith.maximumf %110, %111 : vector<1x96xf32>
    %c13 = arith.constant 13 : index
    %c0_111 = arith.constant 0 : index
    %113 = vector.load %arg12[%c13, %c0_111] : memref<16x96xf32, #tpu.memory_space<vmem>>, vector<1x96xf32>
    tpu.vector_store %arg12[%c13, %c0_111], %112 {strides = array<i32>} : memref<16x96xf32, #tpu.memory_space<vmem>>, vector<1x96xf32>,
    %c0_112 = arith.constant 0 : index
    %c0_113 = arith.constant 0 : index
    %114 = vector.load %arg12[%c0_112, %c0_113] : memref<16x96xf32, #tpu.memory_space<vmem>>, vector<14x96xf32>
    %c0_114 = arith.constant 0 : index
    %c0_115 = arith.constant 0 : index
    %c0_116 = arith.constant 0 : index
    %115 = vector.load %arg6[%c0_114, %c0_115, %c0_116] : memref<3x96x56xf32, #tpu.memory_space<vmem>>, vector<1x96x56xf32>
    %116 = vector.shape_cast %115 : vector<1x96x56xf32> to vector<96x56xf32>
    %cst_117 = arith.constant dense<0.000000e+00> : vector<14x56xf32>
    %117 = tpu.matmul %114, %116, %cst_117 {dimension_numbers = #tpu.dot_dimension_numbers<[1], [0], [0], [1], [0, 0, 1, 1], [], []>} : vector<14x96xf32>, vector<96x56xf32>, vector<14x56xf32> -> vector<14x56xf32>
    %c1_118 = arith.constant 1 : index
    %c0_119 = arith.constant 0 : index
    %118 = vector.load %arg12[%c1_118, %c0_119] : memref<16x96xf32, #tpu.memory_space<vmem>>, vector<14x96xf32>
    %c1_120 = arith.constant 1 : index
    %c0_121 = arith.constant 0 : index
    %c0_122 = arith.constant 0 : index
    %119 = vector.load %arg6[%c1_120, %c0_121, %c0_122] : memref<3x96x56xf32, #tpu.memory_space<vmem>>, vector<1x96x56xf32>
    %120 = vector.shape_cast %119 : vector<1x96x56xf32> to vector<96x56xf32>
    %cst_123 = arith.constant dense<0.000000e+00> : vector<14x56xf32>
    %121 = tpu.matmul %118, %120, %cst_123 {dimension_numbers = #tpu.dot_dimension_numbers<[1], [0], [0], [1], [0, 0, 1, 1], [], []>} : vector<14x96xf32>, vector<96x56xf32>, vector<14x56xf32> -> vector<14x56xf32>
    %122 = arith.addf %117, %121 : vector<14x56xf32>
    %c2_124 = arith.constant 2 : index
    %c0_125 = arith.constant 0 : index
    %123 = vector.load %arg12[%c2_124, %c0_125] : memref<16x96xf32, #tpu.memory_space<vmem>>, vector<14x96xf32>
    %c2_126 = arith.constant 2 : index
    %c0_127 = arith.constant 0 : index
    %c0_128 = arith.constant 0 : index
    %124 = vector.load %arg6[%c2_126, %c0_127, %c0_128] : memref<3x96x56xf32, #tpu.memory_space<vmem>>, vector<1x96x56xf32>
    %125 = vector.shape_cast %124 : vector<1x96x56xf32> to vector<96x56xf32>
    %cst_129 = arith.constant dense<0.000000e+00> : vector<14x56xf32>
    %126 = tpu.matmul %123, %125, %cst_129 {dimension_numbers = #tpu.dot_dimension_numbers<[1], [0], [0], [1], [0, 0, 1, 1], [], []>} : vector<14x96xf32>, vector<96x56xf32>, vector<14x56xf32> -> vector<14x56xf32>
    %127 = arith.addf %122, %126 : vector<14x56xf32>
    %c0_130 = arith.constant 0 : index
    %c0_131 = arith.constant 0 : index
    %128 = vector.load %arg7[%c0_130, %c0_131] : memref<1x56xf32, #tpu.memory_space<vmem>>, vector<1x56xf32>
    %129 = vector.broadcast %128 : vector<1x56xf32> to vector<14x56xf32>
    %130 = arith.addf %127, %129 : vector<14x56xf32>
    %cst_132 = arith.constant 0.000000e+00 : f32
    %131 = vector.broadcast %cst_132 : f32 to vector<14x56xf32>
    %132 = arith.maximumf %130, %131 : vector<14x56xf32>
    %c2_133 = arith.constant 2 : index
    %c0_134 = arith.constant 0 : index
    %133 = vector.load %arg13[%c2_133, %c0_134] : memref<18x56xf32, #tpu.memory_space<vmem>>, vector<14x56xf32>
    tpu.vector_store %arg13[%c2_133, %c0_134], %132 {strides = array<i32>} : memref<18x56xf32, #tpu.memory_space<vmem>>, vector<14x56xf32>,
    %c0_135 = arith.constant 0 : index
    %c0_136 = arith.constant 0 : index
    %134 = vector.load %arg13[%c0_135, %c0_136] : memref<18x56xf32, #tpu.memory_space<vmem>>, vector<16x56xf32>
    %c0_137 = arith.constant 0 : index
    %c0_138 = arith.constant 0 : index
    %c0_139 = arith.constant 0 : index
    %135 = vector.load %arg8[%c0_137, %c0_138, %c0_139] : memref<3x56x16xf32, #tpu.memory_space<vmem>>, vector<1x56x16xf32>
    %136 = vector.shape_cast %135 : vector<1x56x16xf32> to vector<56x16xf32>
    %cst_140 = arith.constant dense<0.000000e+00> : vector<16x16xf32>
    %137 = tpu.matmul %134, %136, %cst_140 {dimension_numbers = #tpu.dot_dimension_numbers<[1], [0], [0], [1], [0, 0, 1, 1], [], []>} : vector<16x56xf32>, vector<56x16xf32>, vector<16x16xf32> -> vector<16x16xf32>
    %c1_141 = arith.constant 1 : index
    %c0_142 = arith.constant 0 : index
    %138 = vector.load %arg13[%c1_141, %c0_142] : memref<18x56xf32, #tpu.memory_space<vmem>>, vector<16x56xf32>
    %c1_143 = arith.constant 1 : index
    %c0_144 = arith.constant 0 : index
    %c0_145 = arith.constant 0 : index
    %139 = vector.load %arg8[%c1_143, %c0_144, %c0_145] : memref<3x56x16xf32, #tpu.memory_space<vmem>>, vector<1x56x16xf32>
    %140 = vector.shape_cast %139 : vector<1x56x16xf32> to vector<56x16xf32>
    %cst_146 = arith.constant dense<0.000000e+00> : vector<16x16xf32>
    %141 = tpu.matmul %138, %140, %cst_146 {dimension_numbers = #tpu.dot_dimension_numbers<[1], [0], [0], [1], [0, 0, 1, 1], [], []>} : vector<16x56xf32>, vector<56x16xf32>, vector<16x16xf32> -> vector<16x16xf32>
    %142 = arith.addf %137, %141 : vector<16x16xf32>
    %c2_147 = arith.constant 2 : index
    %c0_148 = arith.constant 0 : index
    %143 = vector.load %arg13[%c2_147, %c0_148] : memref<18x56xf32, #tpu.memory_space<vmem>>, vector<16x56xf32>
    %c2_149 = arith.constant 2 : index
    %c0_150 = arith.constant 0 : index
    %c0_151 = arith.constant 0 : index
    %144 = vector.load %arg8[%c2_149, %c0_150, %c0_151] : memref<3x56x16xf32, #tpu.memory_space<vmem>>, vector<1x56x16xf32>
    %145 = vector.shape_cast %144 : vector<1x56x16xf32> to vector<56x16xf32>
    %cst_152 = arith.constant dense<0.000000e+00> : vector<16x16xf32>
    %146 = tpu.matmul %143, %145, %cst_152 {dimension_numbers = #tpu.dot_dimension_numbers<[1], [0], [0], [1], [0, 0, 1, 1], [], []>} : vector<16x56xf32>, vector<56x16xf32>, vector<16x16xf32> -> vector<16x16xf32>
    %147 = arith.addf %142, %146 : vector<16x16xf32>
    %c0_153 = arith.constant 0 : index
    %c0_154 = arith.constant 0 : index
    %148 = vector.load %arg9[%c0_153, %c0_154] : memref<1x16xf32, #tpu.memory_space<vmem>>, vector<1x16xf32>
    %149 = vector.broadcast %148 : vector<1x16xf32> to vector<16x16xf32>
    %150 = arith.addf %147, %149 : vector<16x16xf32>
    %151 = arith.negf %150 : vector<16x16xf32>
    %152 = math.exp %151 : vector<16x16xf32>
    %cst_155 = arith.constant 1.000000e+00 : f32
    %153 = vector.broadcast %cst_155 : f32 to vector<16x16xf32>
    %154 = arith.addf %153, %152 : vector<16x16xf32>
    %155 = arith.divf %153, %154 : vector<16x16xf32>
    %c0_156 = arith.constant 0 : index
    %c0_157 = arith.constant 0 : index
    %c0_158 = arith.constant 0 : index
    %156 = vector.load %arg11[%c0_156, %c0_157, %c0_158] : memref<1x16x16xf32, #tpu.memory_space<vmem>>, vector<1x16x16xf32>
    %157 = vector.shape_cast %156 : vector<1x16x16xf32> to vector<16x16xf32>
    %158 = vector.shape_cast %155 : vector<16x16xf32> to vector<1x16x16xf32>
    tpu.vector_store %arg11[%c0_156, %c0_157, %c0_158], %158 {strides = array<i32>} : memref<1x16x16xf32, #tpu.memory_space<vmem>>, vector<1x16x16xf32>,
    return
  }
  func.func @transform_0(%arg0: i32) -> (i32, i32, i32) {
    %c2_i32 = arith.constant 2 : i32
    %c0_i32 = arith.constant 0 : i32
    %0 = arith.cmpi eq, %c2_i32, %c0_i32 : i32
    %c1_i32 = arith.constant 1 : i32
    %1 = arith.select %0, %c1_i32, %c2_i32 : i32
    %2 = arith.remsi %arg0, %1 : i32
    %c0_i32_0 = arith.constant 0 : i32
    %3 = arith.cmpi ne, %2, %c0_i32_0 : i32
    %c0_i32_1 = arith.constant 0 : i32
    %4 = arith.cmpi slt, %2, %c0_i32_1 : i32
    %c0_i32_2 = arith.constant 0 : i32
    %5 = arith.cmpi slt, %1, %c0_i32_2 : i32
    %6 = arith.xori %4, %5 : i1
    %7 = arith.andi %6, %3 : i1
    %8 = arith.addi %2, %1 : i32
    %9 = arith.select %7, %8, %2 : i32
    %c0_i32_3 = arith.constant 0 : i32
    %c0_i32_4 = arith.constant 0 : i32
    %c0_i32_5 = arith.constant 0 : i32
    return %9, %c0_i32_3, %c0_i32_4 : i32, i32, i32
  }
  func.func @transform_1(%arg0: i32) -> (i32, i32, i32) {
    %c2_i32 = arith.constant 2 : i32
    %c0_i32 = arith.constant 0 : i32
    %0 = arith.cmpi eq, %c2_i32, %c0_i32 : i32
    %c1_i32 = arith.constant 1 : i32
    %1 = arith.select %0, %c1_i32, %c2_i32 : i32
    %2 = arith.remsi %arg0, %1 : i32
    %c0_i32_0 = arith.constant 0 : i32
    %3 = arith.cmpi ne, %2, %c0_i32_0 : i32
    %c0_i32_1 = arith.constant 0 : i32
    %4 = arith.cmpi slt, %2, %c0_i32_1 : i32
    %c0_i32_2 = arith.constant 0 : i32
    %5 = arith.cmpi slt, %1, %c0_i32_2 : i32
    %6 = arith.xori %4, %5 : i1
    %7 = arith.andi %6, %3 : i1
    %8 = arith.addi %2, %1 : i32
    %9 = arith.select %7, %8, %2 : i32
    %c0_i32_3 = arith.constant 0 : i32
    %c0_i32_4 = arith.constant 0 : i32
    %c0_i32_5 = arith.constant 0 : i32
    return %9, %c0_i32_3, %c0_i32_4 : i32, i32, i32
  }
  func.func @transform_2(%arg0: i32) -> (i32, i32, i32) {
    %c0_i32 = arith.constant 0 : i32
    %c0_i32_0 = arith.constant 0 : i32
    %c0_i32_1 = arith.constant 0 : i32
    return %arg0, %c0_i32, %c0_i32_0 : i32, i32, i32
  }
  func.func @transform_3(%arg0: i32) -> (i32, i32, i32) {
    %c0_i32 = arith.constant 0 : i32
    %c0_i32_0 = arith.constant 0 : i32
    %c0_i32_1 = arith.constant 0 : i32
    %c0_i32_2 = arith.constant 0 : i32
    return %c0_i32, %c0_i32_0, %c0_i32_1 : i32, i32, i32
  }
  func.func @transform_4(%arg0: i32) -> (i32, i32) {
    %c0_i32 = arith.constant 0 : i32
    %c0_i32_0 = arith.constant 0 : i32
    %c0_i32_1 = arith.constant 0 : i32
    return %c0_i32, %c0_i32_0 : i32, i32
  }
  func.func @transform_5(%arg0: i32) -> (i32, i32, i32) {
    %c0_i32 = arith.constant 0 : i32
    %c0_i32_0 = arith.constant 0 : i32
    %c0_i32_1 = arith.constant 0 : i32
    %c0_i32_2 = arith.constant 0 : i32
    return %c0_i32, %c0_i32_0, %c0_i32_1 : i32, i32, i32
  }
  func.func @transform_6(%arg0: i32) -> (i32, i32) {
    %c0_i32 = arith.constant 0 : i32
    %c0_i32_0 = arith.constant 0 : i32
    %c0_i32_1 = arith.constant 0 : i32
    return %c0_i32, %c0_i32_0 : i32, i32
  }
  func.func @transform_7(%arg0: i32) -> (i32, i32, i32) {
    %c0_i32 = arith.constant 0 : i32
    %c0_i32_0 = arith.constant 0 : i32
    %c0_i32_1 = arith.constant 0 : i32
    %c0_i32_2 = arith.constant 0 : i32
    return %c0_i32, %c0_i32_0, %c0_i32_1 : i32, i32, i32
  }
  func.func @transform_8(%arg0: i32) -> (i32, i32) {
    %c0_i32 = arith.constant 0 : i32
    %c0_i32_0 = arith.constant 0 : i32
    %c0_i32_1 = arith.constant 0 : i32
    return %c0_i32, %c0_i32_0 : i32, i32
  }
  func.func @transform_9(%arg0: i32) -> (i32, i32, i32) {
    %c0_i32 = arith.constant 0 : i32
    %c0_i32_0 = arith.constant 0 : i32
    %c0_i32_1 = arith.constant 0 : i32
    return %arg0, %c0_i32, %c0_i32_0 : i32, i32, i32
  }
  func.func @transform_10(%arg0: i32) -> (i32, i32, i32) {
    %c0_i32 = arith.constant 0 : i32
    %c0_i32_0 = arith.constant 0 : i32
    %c0_i32_1 = arith.constant 0 : i32
    return %arg0, %c0_i32, %c0_i32_0 : i32, i32, i32
  }
}

</mosaic_0001>

<bundles_post_ra>
// kernel: autoencoder_forward.2
= control target key start
LH: loop header
LB: loop body
LE: loop exit
PB: predicated region body
PF: predicated region fallthrough
CT: control target
= control target key end

     0   :  { %s2858_s27 = smov 0   ;;  %s3599_s0 = inlined_call_operand.vmem [shape: f32[2,16,16], index: 0, kind: input, shape index: {}]   ;;  %s3600_s1 = inlined_call_operand.vmem [shape: f32[3,16,56], index: 1, kind: input, shape index: {}]   ;;  %s3601_s2 = inlined_call_operand.vmem [shape: f32[1,56], index: 2, kind: input, shape index: {}]   ;;  %s3602_s3 = inlined_call_operand.vmem [shape: f32[3,56,96], index: 3, kind: input, shape index: {}]   ;;  %s3603_s4 = inlined_call_operand.vmem [shape: f32[1,96], index: 4, kind: input, shape index: {}]   ;;  %s3604_s5 = inlined_call_operand.vmem [shape: f32[12,96,16], index: 5, kind: input, shape index: {}]   ;;  %s3605_s6 = inlined_call_operand.vmem [shape: f32[1,16], index: 6, kind: input, shape index: {}]   ;;  %s3606_s7 = inlined_call_operand.vmem [shape: f32[2,1,8], index: 7, kind: output, shape index: {0}]   ;;  %s3607_s8 = inlined_call_operand.vmem [shape: f32[2,1,8], index: 8, kind: output, shape index: {1}]  }
   0x1 LB: > { %s2014_s28 = sadd.s32 4294967295, %s2808_s27   ;;  %p2018_p0 = scmp.ge.s32.totalorder %s2808_s27, 1  ;;  %s2808_s27 = sphi %s2858_s27, %s19_s27  }
   0x2   : > { %p265_p1 = scmp.lt.s32.totalorder %s2808_s27, 3 }
   0x4   : > { %p266_p2 = pnand %p2018_p0, %p265_p1 }
   0x5   : > { %p300_p3 = scmp.lt.s32.totalorder (!%p266_p2), %s2014_s28, 1  ;;  %s2812_s22 = smov (!%p266_p2), 120  }
   0x6   : > { %269 = sbr.rel (%p266_p2) target bundleno = 901 (0x385), region = 48 }
   0xb   : > { %v2022_v0 = vld [vmem:[%s3600_s1 + $0x18] sm:$0xff]  ;;  %v2021_v1 = vld [vmem:[%s3600_s1 + $0x10] sm:$0xff]  ;;  %s3609_s28 = smov (!%p300_p3, %s2014_s28), 1  ;;  %v314_v2 = vld [vmem:[%s3600_s1 + $0x8] sm:$0xff]  ;;  %vm320_vm0 = vcmask 130048   ;;  %vm584_vm1 = vcmask 455680  }
   0xc   : > { %2395 = vmatprep.subr.mxu0 %v2022_v0  ;;  %s2199_s13 = sshll.u32 %s3609_s28, 4  ;;  %v313_v6 = vld [vmem:[%s3600_s1] sm:$0xff]  ;;  %v2028_v7 = vld [vmem:[%s3600_s1 + $0x28] sm:$0xff]  ;;  %v594_v13 = vld [vmem:[%s3602_s3 + $0x30] sm:$0xff]  ;;  %vm582_vm2 = vcmask 457728   ;;  %v2810_v56 = vmov 0.0   ;;  %s307_s21 = scalar_lea.vmem %s3606_s7, %s3609_s28 }
   0xd   : > { %2396 = vmatpush3.msra.mxu0 %v2022_v0  ;;  %s304_s16 = scalar_lea.vmem %s3599_s0, %s2199_s13  ;;  %v2027_v10 = vld [vmem:[%s3600_s1 + $0x20] sm:$0xff]  ;;  %v2038_v12 = vld [vmem:[%s3602_s3 + $0x68] sm:$0xff]  ;;  %v2036_v16 = vld [vmem:[%s3602_s3 + $0x58] sm:$0xff]  ;;  %vm2811_vm3 = vmmov 0   ;;  %vm873_vm4 = vcmask 781312   ;;  %vm871_vm5 = vcmask 785408   ;;  %s310_s25 = scalar_lea.vmem %s3607_s8, %s3609_s28 }
   0xe   : > { %2397 = vmatprep.subr.mxu0 %v2021_v1  ;;  %v315_v3 = vld [vmem:[%s304_s16 + $0x1] sm:$0xff]  ;;  %v316_v4 = vld [vmem:[%s304_s16 + $0x9] sm:$0x3f]  ;;  %2416 = vmatprep.subr.mxu1 %v2038_v12  ;;  %v2035_v18 = vld [vmem:[%s3602_s3 + $0x50] sm:$0xff]  ;;  %vm1931_vm6 = vcmask 57344  }
   0xf   : > { %2398 = vmatpush3.msra.mxu0 %v2021_v1  ;;  %v311_v5 = vld [vmem:[%s304_s16] sm:$0xff]  ;;  %2399 = vmatprep.mubr.msk.f32.mxu0 %vm320_vm0, %v315_v3  ;;  %v312_v8 = vld [vmem:[%s304_s16 + $0x8] sm:$0x3f]  ;;  %v591_v19 = vld [vmem:[%s3602_s3 + $0x18] sm:$0xff] }
  0x10   : > { %2402 = vmatprep.subr.mxu0 %v314_v2  ;;  %2400 = vmatmul.mubr.msk.f32.vlgmr.msra.gmra.mxu0 %vm320_vm0, %v316_v4  ;;  %v483_v9 = vld [vmem:[%s304_s16 + $0x2] sm:$0xff]  ;;  %v484_v11 = vld [vmem:[%s304_s16 + $0xa] sm:$0x3f]  ;;  %v590_v21 = vld [vmem:[%s3602_s3 + $0x10] sm:$0xff] }
  0x11   : > { %2403 = vmatpush3.msra.mxu0 %v314_v2  ;;  %2406 = vmatprep.mubr.msk.f32.mxu0 %vm320_vm0, %v311_v5  ;;  %v2037_v14 = vld [vmem:[%s3602_s3 + $0x60] sm:$0xff]  ;;  %v593_v15 = vld [vmem:[%s3602_s3 + $0x28] sm:$0xff]  ;;  %v2032_v24 = vld [vmem:[%s3602_s3 + $0x38] sm:$0xff] }
  0x12   : > { %2404 = vmatprep.subr.mxu0 %v313_v6  ;;  %2417 = vmatpush3.msra.mxu1 %v2038_v12  ;;  %v592_v17 = vld [vmem:[%s3602_s3 + $0x20] sm:$0xff]  ;;  %v2034_v20 = vld [vmem:[%s3602_s3 + $0x48] sm:$0xff]  ;;  %v2048_v46 = vld [vmem:[%s3602_s3 + $0x98] sm:$0xff] }
  0x13   : > { %2405 = vmatpush3.msra.mxu0 %v313_v6  ;;  %2418 = vmatprep.subr.mxu1 %v2037_v14  ;;  %v2033_v22 = vld [vmem:[%s3602_s3 + $0x40] sm:$0xff]  ;;  %v589_v23 = vld [vmem:[%s3602_s3 + $0x8] sm:$0xff]  ;;  %v2047_v48 = vld [vmem:[%s3602_s3 + $0x90] sm:$0xff] }
  0x14   : > { %2409 = vmatprep.subr.mxu0 %v2028_v7  ;;  %2407 = vmatmul.mubr.msk.f32.vlgmr.msra.gmra.mxu0 %vm320_vm0, %v312_v8  ;;  %v588_v25 = vld [vmem:[%s3602_s3] sm:$0xff]  ;;  %v2046_v49 = vld [vmem:[%s3602_s3 + $0x88] sm:$0xff]  ;;  %v2044_v51 = vld [vmem:[%s3602_s3 + $0x78] sm:$0xff] }
  0x15   : > { %2410 = vmatpush3.msra.mxu0 %v2028_v7  ;;  %2413 = vmatprep.mubr.msk.f32.mxu0 %vm320_vm0, %v483_v9  ;;  %v2049_v26 = vld [vmem:[%s3602_s3 + $0xa0] sm:$0xff]  ;;  %v2043_v52 = vld [vmem:[%s3602_s3 + $0x70] sm:$0xff]  ;;  %v888_v54 = vld [vmem:[%s3604_s5 + $0x58] sm:$0xff] }
  0x16   : > { %2411 = vmatprep.subr.mxu0 %v2027_v10  ;;  %2419 = vmatpush3.msra.mxu1 %v2037_v14  ;;  %v2031_v33 = vld [vmem:[%s3601_s2] ss:$0 sm:$0xff]  ;;  %v2065_v55 = vld [vmem:[%s3604_s5 + $0xb8] sm:$0xff]  ;;  %v887_v57 = vld [vmem:[%s3604_s5 + $0x50] sm:$0xff] }
  0x17   : > { %2412 = vmatpush3.msra.mxu0 %v2027_v10  ;;  %2420 = vmatprep.subr.mxu1 %v2036_v16  ;;  %v2045_v50 = vld [vmem:[%s3602_s3 + $0x80] sm:$0xff]  ;;  %v2064_v58 = vld [vmem:[%s3604_s5 + $0xb0] sm:$0xff]  ;;  %v886_v59 = vld [vmem:[%s3604_s5 + $0x48] sm:$0xff] }
  0x18   : > { %2414 = vmatmul.mubr.msk.f32.vlgmr.msra.gmra.mxu0 %vm320_vm0, %v484_v11  ;;  %2433 = vmatprep.subr.mxu0 %v594_v13  ;;  %v2063_v60 = vld [vmem:[%s3604_s5 + $0xa8] sm:$0xff]  ;;  %v885_v61 = vld [vmem:[%s3604_s5 + $0x40] sm:$0xff]  ;;  %v884_v63 = vld [vmem:[%s3604_s5 + $0x38] sm:$0xff] }
  0x19   : > { %2434 = vmatpush3.msra.mxu0 %v594_v13  ;;  %2421 = vmatpush3.msra.mxu1 %v2036_v16  ;;  %v2062_v62 = vld [vmem:[%s3604_s5 + $0xa0] sm:$0xff]  ;;  %v2061_v0 = vld [vmem:[%s3604_s5 + $0x98] sm:$0xff]  ;;  %v883_v1 = vld [vmem:[%s3604_s5 + $0x30] sm:$0xff] }
  0x1a   : > { %2435 = vmatprep.subr.mxu0 %v593_v15  ;;  %2422 = vmatprep.subr.mxu1 %v2035_v18  ;;  %v2060_v2 = vld [vmem:[%s3604_s5 + $0x90] sm:$0xff]  ;;  %v882_v3 = vld [vmem:[%s3604_s5 + $0x28] sm:$0xff]  ;;  %v881_v5 = vld [vmem:[%s3604_s5 + $0x20] sm:$0xff] }
  0x1b   : > { %2436 = vmatpush3.msra.mxu0 %v593_v15  ;;  %2423 = vmatpush3.msra.mxu1 %v2035_v18  ;;  %v2059_v4 = vld [vmem:[%s3604_s5 + $0x88] sm:$0xff]  ;;  %v2058_v6 = vld [vmem:[%s3604_s5 + $0x80] sm:$0xff]  ;;  %v880_v7 = vld [vmem:[%s3604_s5 + $0x18] sm:$0xff] }
  0x1c   : > { %2437 = vmatprep.subr.mxu0 %v592_v17  ;;  %2424 = vmatprep.subr.mxu1 %v2034_v20  ;;  %v2057_v8 = vld [vmem:[%s3604_s5 + $0x78] sm:$0xff]  ;;  %v879_v9 = vld [vmem:[%s3604_s5 + $0x10] sm:$0xff]  ;;  %v878_v11 = vld [vmem:[%s3604_s5 + $0x8] sm:$0xff] }
  0x1d   : > { %2438 = vmatpush3.msra.mxu0 %v592_v17  ;;  %2425 = vmatpush3.msra.mxu1 %v2034_v20  ;;  %v2056_v10 = vld [vmem:[%s3604_s5 + $0x70] sm:$0xff]  ;;  %v2055_v12 = vld [vmem:[%s3604_s5 + $0x68] sm:$0xff]  ;;  %v877_v13 = vld [vmem:[%s3604_s5] sm:$0xff] }
  0x1e   : > { %2439 = vmatprep.subr.mxu0 %v591_v19  ;;  %2426 = vmatprep.subr.mxu1 %v2033_v22  ;;  %v2054_v14 = vld [vmem:[%s3604_s5 + $0x60] sm:$0xff] }
  0x1f   : > { %2440 = vmatpush3.msra.mxu0 %v591_v19  ;;  %2427 = vmatpush3.msra.mxu1 %v2033_v22 }
  0x20   : > { %2441 = vmatprep.subr.mxu0 %v590_v21  ;;  %2428 = vmatprep.subr.mxu1 %v2032_v24 }
  0x21   : > { %2442 = vmatpush3.msra.mxu0 %v590_v21  ;;  %2429 = vmatpush3.msra.mxu1 %v2032_v24  ;;  %v2052_v21 = vld [vmem:[%s3603_s4] ss:$0 sm:$0xff] }
  0x22   : > { %2443 = vmatprep.subr.mxu0 %v589_v23  ;;  %2450 = vmatprep.subr.mxu1 %v2049_v26 }
  0x23   : > { %2444 = vmatpush3.msra.mxu0 %v589_v23 }
  0x24   : > { %2445 = vmatprep.subr.mxu0 %v588_v25 }
  0x25   : > { %2446 = vmatpush3.msra.mxu0 %v588_v25 }
  0x26   : > { %2467 = vmatprep.subr.mxu0 %v2810_v56 }
  0xd0   : > { %v2401_v27 = vpop.f32.mrf.mxu0 }
  0xd2   : > { %v393_v28 = vpop.f32.mrf.mxu0 }
  0xd4   : > { %v2408_v29 = vpop.f32.mrf.mxu0 }
  0xd5   : > { %v480_v31 = vadd.f32 %v2408_v29, %v2401_v27 }
  0xd6   : > { %v474_v30 = vpop.f32.mrf.mxu0 }
  0xd7   : > { %v475_v34 = vadd.f32 %v474_v30, %v393_v28  ;;  %v2078_v30 = vld [vmem:[%s3604_s5 + $0x118] sm:$0xff] }
  0xd8   : > { %v2415_v32 = vpop.f32.mrf.mxu0 }
  0xd9   : > { %v570_v35 = vadd.f32 %v2415_v32, %v480_v31  ;;  %v2091_v31 = vld [vmem:[%s3604_s5 + $0x178] sm:$0xff] }
  0xda   : > { %v560_v36 = vpop.f32.mrf.mxu0 }
  0xdb   : > { %v579_v37 = vadd.f32 %v2031_v33, %v570_v35  ;;  %v569_v38 = vadd.f32 %v560_v36, %v475_v34  ;;  %v2077_v34 = vld [vmem:[%s3604_s5 + $0x110] sm:$0xff]  ;;  %v2076_v36 = vld [vmem:[%s3604_s5 + $0x108] sm:$0xff] }
  0xdc   : > { %v2090_v35 = vld [vmem:[%s3604_s5 + $0x170] sm:$0xff] }
  0xdd   : > { %v581_v39 = vmax.f32 %v579_v37, 0.0  ;;  %v578_v40 = vadd.f32 %v2031_v33, %v569_v38  ;;  %v2089_v37 = vld [vmem:[%s3604_s5 + $0x168] sm:$0xff]  ;;  %v2075_v38 = vld [vmem:[%s3604_s5 + $0x100] sm:$0xff] }
  0xdf   : > { %585 = vst.msk [vmem:[#allocation2 + $0x8] sm:$0x3f] %vm584_vm1, %v581_v39  ;;  %v580_v41 = vmax.f32 %v578_v40, 0.0  ;;  %v2088_v39 = vld [vmem:[%s3604_s5 + $0x160] sm:$0xff]  ;;  %v2074_v40 = vld [vmem:[%s3604_s5 + $0xf8] sm:$0xff] }
  0xe1   : > { %583 = vst.msk [vmem:[#allocation2] sm:$0xff] %vm582_vm2, %v580_v41  ;;  %v2087_v41 = vld [vmem:[%s3604_s5 + $0x158] sm:$0xff] }
  0xe6   : > { %v596_v44 = vld [vmem:[#allocation2 + $0x9] sm:$0xf] }
  0xe7   : > { %v587_v45 = vld [vmem:[#allocation2 + $0x8] sm:$0xf] }
  0xe8   : > { %v595_v42 = vld [vmem:[#allocation2 + $0x1] sm:$0xff]  ;;  %v768_v53 = vld [vmem:[#allocation2 + $0xa] sm:$0xf] }
  0xe9   : > { %v586_v43 = vld [vmem:[#allocation2] sm:$0xff]  ;;  %2430 = vmatprep.mubr.msk.f32.mxu1 %vm582_vm2, %v595_v42  ;;  %v2073_v42 = vld [vmem:[%s3604_s5 + $0xf0] sm:$0xff] }
  0xea   : > { %2447 = vmatprep.mubr.msk.f32.mxu0 %vm582_vm2, %v586_v43  ;;  %2431 = vmatmul.mubr.msk.f32.vlgmr.msra.gmra.mxu1 %vm582_vm2, %v596_v44  ;;  %v767_v47 = vld [vmem:[#allocation2 + $0x2] sm:$0xff]  ;;  %v2086_v43 = vld [vmem:[%s3604_s5 + $0x150] sm:$0xff] }
  0xeb   : > { %2448 = vmatmul.mubr.msk.f32.vlgmr.msra.gmra.mxu0 %vm582_vm2, %v587_v45  ;;  %2451 = vmatpush3.msra.mxu1 %v2049_v26  ;;  %v2072_v44 = vld [vmem:[%s3604_s5 + $0xe8] sm:$0xff] }
  0xec   : > { %2464 = vmatprep.mubr.msk.f32.mxu1 %vm582_vm2, %v767_v47  ;;  %2452 = vmatprep.subr.mxu1 %v2048_v46  ;;  %v2085_v45 = vld [vmem:[%s3604_s5 + $0x148] sm:$0xff]  ;;  %v2084_v47 = vld [vmem:[%s3604_s5 + $0x140] sm:$0xff] }
  0xed   : > { %2453 = vmatpush3.msra.mxu1 %v2048_v46  ;;  %2468 = vmatpush3.msra.mxu0 %v888_v54  ;;  %v2071_v46 = vld [vmem:[%s3604_s5 + $0xe0] sm:$0xff] }
  0xee   : > { %2454 = vmatprep.subr.mxu1 %v2047_v48  ;;  %2469 = vmatprep.subr.mxu0 %v2810_v56  ;;  %v2067_v54 = vld [vmem:[%s3604_s5 + $0xc0] sm:$0xff] }
  0xef   : > { %2455 = vmatpush3.msra.mxu1 %v2047_v48  ;;  %2470 = vmatpush3.msra.mxu0 %v887_v57  ;;  %v2070_v48 = vld [vmem:[%s3604_s5 + $0xd8] sm:$0xff] }
  0xf0   : > { %2456 = vmatprep.subr.mxu1 %v2046_v49  ;;  %2471 = vmatprep.subr.mxu0 %v2810_v56  ;;  %v2104_v57 = vld [vmem:[%s3604_s5 + $0x1d8] sm:$0xff] }
  0xf1   : > { %2457 = vmatpush3.msra.mxu1 %v2046_v49  ;;  %2472 = vmatpush3.msra.mxu0 %v886_v59  ;;  %v2083_v49 = vld [vmem:[%s3604_s5 + $0x138] sm:$0xff] }
  0xf2   : > { %2458 = vmatprep.subr.mxu1 %v2045_v50  ;;  %2473 = vmatprep.subr.mxu0 %v2810_v56 }
  0xf3   : > { %2459 = vmatpush3.msra.mxu1 %v2045_v50  ;;  %2474 = vmatpush3.msra.mxu0 %v885_v61  ;;  %v2069_v50 = vld [vmem:[%s3604_s5 + $0xd0] sm:$0xff] }
  0xf4   : > { %2460 = vmatprep.subr.mxu1 %v2044_v51  ;;  %2475 = vmatprep.subr.mxu0 %v2810_v56  ;;  %v2103_v61 = vld [vmem:[%s3604_s5 + $0x1d0] sm:$0xff] }
  0xf5   : > { %2461 = vmatpush3.msra.mxu1 %v2044_v51  ;;  %2476 = vmatpush3.msra.mxu0 %v884_v63  ;;  %v2082_v51 = vld [vmem:[%s3604_s5 + $0x130] sm:$0xff]  ;;  %v2102_v63 = vld [vmem:[%s3604_s5 + $0x1c8] sm:$0xff] }
  0xf6   : > { %2462 = vmatprep.subr.mxu1 %v2043_v52  ;;  %2477 = vmatprep.subr.mxu0 %v2810_v56 }
  0xf7   : > { %2463 = vmatpush3.msra.mxu1 %v2043_v52  ;;  %2478 = vmatpush3.msra.mxu0 %v883_v1  ;;  %v2068_v52 = vld [vmem:[%s3604_s5 + $0xc8] sm:$0xff]  ;;  %v2101_v1 = vld [vmem:[%s3604_s5 + $0x1c0] sm:$0xff] }
  0xf8   : > { %2465 = vmatmul.mubr.msk.f32.vlgmr.msra.gmra.mxu1 %vm582_vm2, %v768_v53  ;;  %2494 = vmatprep.subr.mxu1 %v2810_v56  ;;  %v2081_v53 = vld [vmem:[%s3604_s5 + $0x128] sm:$0xff] }
  0xf9   : > { %2495 = vmatpush3.msra.mxu1 %v2065_v55  ;;  %2479 = vmatprep.subr.mxu0 %v2810_v56  ;;  %v2080_v55 = vld [vmem:[%s3604_s5 + $0x120] sm:$0xff] }
  0xfa   : > { %2496 = vmatprep.subr.mxu1 %v2810_v56  ;;  %2480 = vmatpush3.msra.mxu0 %v882_v3  ;;  %v2100_v3 = vld [vmem:[%s3604_s5 + $0x1b8] sm:$0xff] }
  0xfb   : > { %2497 = vmatpush3.msra.mxu1 %v2064_v58  ;;  %2481 = vmatprep.subr.mxu0 %v2810_v56 }
  0xfc   : > { %2498 = vmatprep.subr.mxu1 %v2810_v56  ;;  %2482 = vmatpush3.msra.mxu0 %v881_v5  ;;  %v2099_v5 = vld [vmem:[%s3604_s5 + $0x1b0] sm:$0xff] }
  0xfd   : > { %2499 = vmatpush3.msra.mxu1 %v2063_v60  ;;  %2483 = vmatprep.subr.mxu0 %v2810_v56  ;;  %v2117_v60 = vld [vmem:[%s3604_s5 + $0x238] sm:$0xff] }
  0xfe   : > { %2500 = vmatprep.subr.mxu1 %v2810_v56  ;;  %2484 = vmatpush3.msra.mxu0 %v880_v7  ;;  %v2098_v7 = vld [vmem:[%s3604_s5 + $0x1a8] sm:$0xff] }
  0xff   : > { %2501 = vmatpush3.msra.mxu1 %v2062_v62  ;;  %2485 = vmatprep.subr.mxu0 %v2810_v56  ;;  %v2116_v62 = vld [vmem:[%s3604_s5 + $0x230] sm:$0xff] }
 0x100   : > { %2502 = vmatprep.subr.mxu1 %v2810_v56  ;;  %2486 = vmatpush3.msra.mxu0 %v879_v9  ;;  %v2097_v9 = vld [vmem:[%s3604_s5 + $0x1a0] sm:$0xff] }
 0x101   : > { %2503 = vmatpush3.msra.mxu1 %v2061_v0  ;;  %2487 = vmatprep.subr.mxu0 %v2810_v56  ;;  %v2115_v0 = vld [vmem:[%s3604_s5 + $0x228] sm:$0xff] }
 0x102   : > { %2504 = vmatprep.subr.mxu1 %v2810_v56  ;;  %2488 = vmatpush3.msra.mxu0 %v878_v11  ;;  %v2096_v11 = vld [vmem:[%s3604_s5 + $0x198] sm:$0xff] }
 0x103   : > { %2505 = vmatpush3.msra.mxu1 %v2060_v2  ;;  %2489 = vmatprep.subr.mxu0 %v2810_v56  ;;  %v2114_v2 = vld [vmem:[%s3604_s5 + $0x220] sm:$0xff] }
 0x104   : > { %2506 = vmatprep.subr.mxu1 %v2810_v56  ;;  %2490 = vmatpush3.msra.mxu0 %v877_v13  ;;  %v2095_v13 = vld [vmem:[%s3604_s5 + $0x190] sm:$0xff] }
 0x105   : > { %2507 = vmatpush3.msra.mxu1 %v2059_v4  ;;  %2491 = vmatprep.mubr.msk.f32.mxu0 %vm2811_vm3, %v2810_v56  ;;  %v2113_v4 = vld [vmem:[%s3604_s5 + $0x218] sm:$0xff] }
 0x106   : > { %2508 = vmatprep.subr.mxu1 %v2810_v56  ;;  %2518 = vmatprep.mubr.msk.f32.mxu1 %vm2811_vm3, %v2810_v56 }
 0x107   : > { %2509 = vmatpush3.msra.mxu1 %v2058_v6  ;;  %2521 = vmatprep.subr.mxu0 %v2810_v56  ;;  %v2112_v6 = vld [vmem:[%s3604_s5 + $0x210] sm:$0xff] }
 0x108   : > { %2510 = vmatprep.subr.mxu1 %v2810_v56 }
 0x109   : > { %2511 = vmatpush3.msra.mxu1 %v2057_v8  ;;  %v2111_v8 = vld [vmem:[%s3604_s5 + $0x208] sm:$0xff] }
 0x10a   : > { %2512 = vmatprep.subr.mxu1 %v2810_v56 }
 0x10b   : > { %2513 = vmatpush3.msra.mxu1 %v2056_v10  ;;  %v2110_v10 = vld [vmem:[%s3604_s5 + $0x200] sm:$0xff] }
 0x10c   : > { %2514 = vmatprep.subr.mxu1 %v2810_v56 }
 0x10d   : > { %2515 = vmatpush3.msra.mxu1 %v2055_v12  ;;  %v2109_v12 = vld [vmem:[%s3604_s5 + $0x1f8] sm:$0xff] }
 0x10e   : > { %2516 = vmatprep.subr.mxu1 %v2810_v56 }
 0x10f   : > { %2517 = vmatpush3.msra.mxu1 %v2054_v14  ;;  %v2108_v14 = vld [vmem:[%s3604_s5 + $0x1f0] sm:$0xff] }
 0x110   : > { %2548 = vmatprep.subr.mxu1 %v2810_v56 }
 0x1aa   : > { %v2432_v15 = vpop.f32.mrf.mxu1 }
 0x1ab   : > { %v2449_v16 = vpop.f32.mrf.mxu0 }
 0x1ac   : > { %v677_v17 = vpop.f32.mrf.mxu1  ;;  %v764_v19 = vadd.f32 %v2449_v16, %v2432_v15  ;;  %v2094_v15 = vld [vmem:[%s3604_s5 + $0x188] sm:$0xff] }
 0x1ad   : > { %v758_v18 = vpop.f32.mrf.mxu0  ;;  %v2107_v16 = vld [vmem:[%s3604_s5 + $0x1e8] sm:$0xff] }
 0x1ae   : > { %v759_v22 = vadd.f32 %v758_v18, %v677_v17  ;;  %v2093_v17 = vld [vmem:[%s3604_s5 + $0x180] sm:$0xff] }
 0x1af   : > { %v2106_v18 = vld [vmem:[%s3604_s5 + $0x1e0] sm:$0xff] }
 0x1b8   : > { %v2466_v20 = vpop.f32.mrf.mxu1 }
 0x1b9   : > { %v859_v23 = vadd.f32 %v2466_v20, %v764_v19  ;;  %v2130_v19 = vld [vmem:[%s3604_s5 + $0x298] sm:$0xff] }
 0x1ba   : > { %v849_v24 = vpop.f32.mrf.mxu1 }
 0x1bb   : > { %v868_v25 = vadd.f32 %v2052_v21, %v859_v23  ;;  %v858_v26 = vadd.f32 %v849_v24, %v759_v22  ;;  %v2143_v22 = vld [vmem:[%s3604_s5 + $0x2f8] sm:$0xff]  ;;  %v2129_v23 = vld [vmem:[%s3604_s5 + $0x290] sm:$0xff] }
 0x1bc   : > { %v2142_v24 = vld [vmem:[%s3604_s5 + $0x2f0] sm:$0xff] }
 0x1bd   : > { %v870_v27 = vmax.f32 %v868_v25, 0.0  ;;  %v867_v28 = vadd.f32 %v2052_v21, %v858_v26  ;;  %v2128_v25 = vld [vmem:[%s3604_s5 + $0x288] sm:$0xff] }
 0x1be   : > { %v2141_v26 = vld [vmem:[%s3604_s5 + $0x2e8] sm:$0xff] }
 0x1bf   : > { %874 = vst.msk [vmem:[#allocation3 + $0x8] sm:$0xf] %vm873_vm4, %v870_v27  ;;  %v869_v29 = vmax.f32 %v867_v28, 0.0  ;;  %v2127_v27 = vld [vmem:[%s3604_s5 + $0x280] sm:$0xff] }
 0x1c0   : > { %v2140_v28 = vld [vmem:[%s3604_s5 + $0x2e0] sm:$0xff] }
 0x1c1   : > { %872 = vst.msk [vmem:[#allocation3] sm:$0xff] %vm871_vm5, %v869_v29  ;;  %v2126_v29 = vld [vmem:[%s3604_s5 + $0x278] sm:$0xff] }
 0x1c8   : > { %v876_v32 = vld [vmem:[#allocation3] sm:$0x1]  ;;  %v963_v33 = vld [vmem:[#allocation3 + $0x1] sm:$0x1]  ;;  %v1051_v58 = vld [vmem:[#allocation3 + $0x2] sm:$0x1] }
 0x1c9   : > { %2492 = vmatmul.mubr.msk.f32.vlgmr.msra.gmra.mxu0 %vm871_vm5, %v876_v32  ;;  %2519 = vmatmul.mubr.msk.f32.vlgmr.msra.gmra.mxu1 %vm871_vm5, %v963_v33  ;;  %v1139_v59 = vld [vmem:[#allocation3 + $0x3] sm:$0x1]  ;;  %v1227_v20 = vld [vmem:[#allocation3 + $0x4] sm:$0x1]  ;;  %v1315_v21 = vld [vmem:[#allocation3 + $0x5] sm:$0x1] }
 0x1ca   : > { %2522 = vmatpush3.msra.mxu0 %v2078_v30  ;;  %2549 = vmatpush3.msra.mxu1 %v2091_v31  ;;  %v2139_v30 = vld [vmem:[%s3604_s5 + $0x2d8] sm:$0xff]  ;;  %v2125_v31 = vld [vmem:[%s3604_s5 + $0x270] sm:$0xff]  ;;  %v2124_v33 = vld [vmem:[%s3604_s5 + $0x268] sm:$0xff] }
 0x1cb   : > { %2523 = vmatprep.subr.mxu0 %v2810_v56  ;;  %2550 = vmatprep.subr.mxu1 %v2810_v56  ;;  %v2138_v32 = vld [vmem:[%s3604_s5 + $0x2d0] sm:$0xff] }
 0x1cc   : > { %2524 = vmatpush3.msra.mxu0 %v2077_v34  ;;  %2551 = vmatpush3.msra.mxu1 %v2090_v35  ;;  %v2137_v34 = vld [vmem:[%s3604_s5 + $0x2c8] sm:$0xff]  ;;  %v2123_v35 = vld [vmem:[%s3604_s5 + $0x260] sm:$0xff] }
 0x1cd   : > { %2525 = vmatprep.subr.mxu0 %v2810_v56  ;;  %2552 = vmatprep.subr.mxu1 %v2810_v56 }
 0x1ce   : > { %2526 = vmatpush3.msra.mxu0 %v2076_v36  ;;  %2553 = vmatpush3.msra.mxu1 %v2089_v37  ;;  %v2136_v36 = vld [vmem:[%s3604_s5 + $0x2c0] sm:$0xff]  ;;  %v2122_v37 = vld [vmem:[%s3604_s5 + $0x258] sm:$0xff] }
 0x1cf   : > { %2527 = vmatprep.subr.mxu0 %v2810_v56  ;;  %2554 = vmatprep.subr.mxu1 %v2810_v56 }
 0x1d0   : > { %2528 = vmatpush3.msra.mxu0 %v2075_v38  ;;  %2555 = vmatpush3.msra.mxu1 %v2088_v39  ;;  %v2135_v38 = vld [vmem:[%s3604_s5 + $0x2b8] sm:$0xff]  ;;  %v2121_v39 = vld [vmem:[%s3604_s5 + $0x250] sm:$0xff] }
 0x1d1   : > { %2529 = vmatprep.subr.mxu0 %v2810_v56  ;;  %2556 = vmatprep.subr.mxu1 %v2810_v56 }
 0x1d2   : > { %2530 = vmatpush3.msra.mxu0 %v2074_v40  ;;  %2557 = vmatpush3.msra.mxu1 %v2087_v41  ;;  %v2134_v40 = vld [vmem:[%s3604_s5 + $0x2b0] sm:$0xff]  ;;  %v2120_v41 = vld [vmem:[%s3604_s5 + $0x248] sm:$0xff] }
 0x1d3   : > { %2531 = vmatprep.subr.mxu0 %v2810_v56  ;;  %2558 = vmatprep.subr.mxu1 %v2810_v56 }
 0x1d4   : > { %2532 = vmatpush3.msra.mxu0 %v2073_v42  ;;  %2559 = vmatpush3.msra.mxu1 %v2086_v43  ;;  %v2133_v42 = vld [vmem:[%s3604_s5 + $0x2a8] sm:$0xff]  ;;  %v2119_v43 = vld [vmem:[%s3604_s5 + $0x240] sm:$0xff] }
 0x1d5   : > { %2533 = vmatprep.subr.mxu0 %v2810_v56  ;;  %2560 = vmatprep.subr.mxu1 %v2810_v56 }
 0x1d6   : > { %2534 = vmatpush3.msra.mxu0 %v2072_v44  ;;  %2561 = vmatpush3.msra.mxu1 %v2085_v45  ;;  %v2132_v44 = vld [vmem:[%s3604_s5 + $0x2a0] sm:$0xff]  ;;  %v2156_v45 = vld [vmem:[%s3604_s5 + $0x358] sm:$0xff] }
 0x1d7   : > { %2535 = vmatprep.subr.mxu0 %v2810_v56  ;;  %2562 = vmatprep.subr.mxu1 %v2810_v56 }
 0x1d8   : > { %2536 = vmatpush3.msra.mxu0 %v2071_v46  ;;  %2563 = vmatpush3.msra.mxu1 %v2084_v47  ;;  %v1403_v46 = vld [vmem:[#allocation3 + $0x6] sm:$0x1]  ;;  %v1491_v47 = vld [vmem:[#allocation3 + $0x7] sm:$0x1] }
 0x1d9   : > { %2537 = vmatprep.subr.mxu0 %v2810_v56  ;;  %2564 = vmatprep.subr.mxu1 %v2810_v56 }
 0x1da   : > { %2538 = vmatpush3.msra.mxu0 %v2070_v48  ;;  %2565 = vmatpush3.msra.mxu1 %v2083_v49  ;;  %v2169_v48 = vld [vmem:[%s3604_s5 + $0x3b8] sm:$0xff]  ;;  %v2155_v49 = vld [vmem:[%s3604_s5 + $0x350] sm:$0xff] }
 0x1db   : > { %2539 = vmatprep.subr.mxu0 %v2810_v56  ;;  %2566 = vmatprep.subr.mxu1 %v2810_v56 }
 0x1dc   : > { %2540 = vmatpush3.msra.mxu0 %v2069_v50  ;;  %2567 = vmatpush3.msra.mxu1 %v2082_v51  ;;  %v2168_v50 = vld [vmem:[%s3604_s5 + $0x3b0] sm:$0xff]  ;;  %v2154_v51 = vld [vmem:[%s3604_s5 + $0x348] sm:$0xff] }
 0x1dd   : > { %2541 = vmatprep.subr.mxu0 %v2810_v56  ;;  %2568 = vmatprep.subr.mxu1 %v2810_v56 }
 0x1de   : > { %2542 = vmatpush3.msra.mxu0 %v2068_v52  ;;  %2569 = vmatpush3.msra.mxu1 %v2081_v53  ;;  %v2167_v52 = vld [vmem:[%s3604_s5 + $0x3a8] sm:$0xff]  ;;  %v2153_v53 = vld [vmem:[%s3604_s5 + $0x340] sm:$0xff] }
 0x1df   : > { %2543 = vmatprep.subr.mxu0 %v2810_v56  ;;  %2570 = vmatprep.subr.mxu1 %v2810_v56 }
 0x1e0   : > { %2544 = vmatpush3.msra.mxu0 %v2067_v54  ;;  %2545 = vmatprep.mubr.msk.f32.mxu0 %vm2811_vm3, %v2810_v56  ;;  %v2166_v54 = vld [vmem:[%s3604_s5 + $0x3a0] sm:$0xff] }
 0x1e1   : > { %2571 = vmatpush3.msra.mxu1 %v2080_v55  ;;  %2572 = vmatprep.mubr.msk.f32.mxu1 %vm2811_vm3, %v2810_v56  ;;  %v2152_v55 = vld [vmem:[%s3604_s5 + $0x338] sm:$0xff] }
 0x1e2   : > { %2546 = vmatmul.mubr.msk.f32.vlgmr.msra.gmra.mxu0 %vm871_vm5, %v1051_v58  ;;  %2573 = vmatmul.mubr.msk.f32.vlgmr.msra.gmra.mxu1 %vm871_vm5, %v1139_v59  ;;  %v2151_v58 = vld [vmem:[%s3604_s5 + $0x330] sm:$0xff] }
 0x1e3   : > { %2575 = vmatprep.subr.mxu0 %v2810_v56  ;;  %2602 = vmatprep.subr.mxu1 %v2810_v56  ;;  %v2164_v59 = vld [vmem:[%s3604_s5 + $0x390] sm:$0xff] }
 0x1e4   : > { %2576 = vmatpush3.msra.mxu0 %v2104_v57  ;;  %2603 = vmatpush3.msra.mxu1 %v2117_v60  ;;  %v2165_v57 = vld [vmem:[%s3604_s5 + $0x398] sm:$0xff]  ;;  %v2150_v60 = vld [vmem:[%s3604_s5 + $0x328] sm:$0xff] }
 0x1e5   : > { %2577 = vmatprep.subr.mxu0 %v2810_v56  ;;  %2604 = vmatprep.subr.mxu1 %v2810_v56 }
 0x1e6   : > { %2578 = vmatpush3.msra.mxu0 %v2103_v61  ;;  %2605 = vmatpush3.msra.mxu1 %v2116_v62  ;;  %v2163_v61 = vld [vmem:[%s3604_s5 + $0x388] sm:$0xff]  ;;  %v2149_v62 = vld [vmem:[%s3604_s5 + $0x320] sm:$0xff] }
 0x1e7   : > { %2579 = vmatprep.subr.mxu0 %v2810_v56  ;;  %2606 = vmatprep.subr.mxu1 %v2810_v56 }
 0x1e8   : > { %2580 = vmatpush3.msra.mxu0 %v2102_v63  ;;  %2607 = vmatpush3.msra.mxu1 %v2115_v0  ;;  %v2162_v63 = vld [vmem:[%s3604_s5 + $0x380] sm:$0xff]  ;;  %v2148_v0 = vld [vmem:[%s3604_s5 + $0x318] sm:$0xff] }
 0x1e9   : > { %2581 = vmatprep.subr.mxu0 %v2810_v56  ;;  %2608 = vmatprep.subr.mxu1 %v2810_v56 }
 0x1ea   : > { %2582 = vmatpush3.msra.mxu0 %v2101_v1  ;;  %2609 = vmatpush3.msra.mxu1 %v2114_v2  ;;  %v2161_v1 = vld [vmem:[%s3604_s5 + $0x378] sm:$0xff]  ;;  %v2147_v2 = vld [vmem:[%s3604_s5 + $0x310] sm:$0xff] }
 0x1eb   : > { %2583 = vmatprep.subr.mxu0 %v2810_v56  ;;  %2610 = vmatprep.subr.mxu1 %v2810_v56 }
 0x1ec   : > { %2584 = vmatpush3.msra.mxu0 %v2100_v3  ;;  %2611 = vmatpush3.msra.mxu1 %v2113_v4  ;;  %v2160_v3 = vld [vmem:[%s3604_s5 + $0x370] sm:$0xff]  ;;  %v2146_v4 = vld [vmem:[%s3604_s5 + $0x308] sm:$0xff] }
 0x1ed   : > { %2585 = vmatprep.subr.mxu0 %v2810_v56  ;;  %2612 = vmatprep.subr.mxu1 %v2810_v56 }
 0x1ee   : > { %2586 = vmatpush3.msra.mxu0 %v2099_v5  ;;  %2613 = vmatpush3.msra.mxu1 %v2112_v6  ;;  %v2159_v5 = vld [vmem:[%s3604_s5 + $0x368] sm:$0xff]  ;;  %v2145_v6 = vld [vmem:[%s3604_s5 + $0x300] sm:$0xff] }
 0x1ef   : > { %2587 = vmatprep.subr.mxu0 %v2810_v56  ;;  %2614 = vmatprep.subr.mxu1 %v2810_v56 }
 0x1f0   : > { %2588 = vmatpush3.msra.mxu0 %v2098_v7  ;;  %2615 = vmatpush3.msra.mxu1 %v2111_v8  ;;  %v2158_v7 = vld [vmem:[%s3604_s5 + $0x360] sm:$0xff]  ;;  %v2182_v8 = vld [vmem:[%s3604_s5 + $0x418] sm:$0xff] }
 0x1f1   : > { %2589 = vmatprep.subr.mxu0 %v2810_v56  ;;  %2616 = vmatprep.subr.mxu1 %v2810_v56 }
 0x1f2   : > { %2590 = vmatpush3.msra.mxu0 %v2097_v9  ;;  %2617 = vmatpush3.msra.mxu1 %v2110_v10  ;;  %v1579_v9 = vld [vmem:[#allocation3 + $0x8] sm:$0x1]  ;;  %v1667_v10 = vld [vmem:[#allocation3 + $0x9] sm:$0x1] }
 0x1f3   : > { %2591 = vmatprep.subr.mxu0 %v2810_v56  ;;  %2618 = vmatprep.subr.mxu1 %v2810_v56 }
 0x1f4   : > { %2592 = vmatpush3.msra.mxu0 %v2096_v11  ;;  %2619 = vmatpush3.msra.mxu1 %v2109_v12  ;;  %v2195_v11 = vld [vmem:[%s3604_s5 + $0x478] sm:$0xff]  ;;  %v2181_v12 = vld [vmem:[%s3604_s5 + $0x410] sm:$0xff] }
 0x1f5   : > { %2593 = vmatprep.subr.mxu0 %v2810_v56  ;;  %2620 = vmatprep.subr.mxu1 %v2810_v56 }
 0x1f6   : > { %2594 = vmatpush3.msra.mxu0 %v2095_v13  ;;  %2621 = vmatpush3.msra.mxu1 %v2108_v14  ;;  %v2194_v13 = vld [vmem:[%s3604_s5 + $0x470] sm:$0xff]  ;;  %v2180_v14 = vld [vmem:[%s3604_s5 + $0x408] sm:$0xff] }
 0x1f7   : > { %2595 = vmatprep.subr.mxu0 %v2810_v56  ;;  %2622 = vmatprep.subr.mxu1 %v2810_v56 }
 0x1f8   : > { %2596 = vmatpush3.msra.mxu0 %v2094_v15  ;;  %2623 = vmatpush3.msra.mxu1 %v2107_v16  ;;  %v2193_v15 = vld [vmem:[%s3604_s5 + $0x468] sm:$0xff]  ;;  %v2179_v16 = vld [vmem:[%s3604_s5 + $0x400] sm:$0xff] }
 0x1f9   : > { %2597 = vmatprep.subr.mxu0 %v2810_v56  ;;  %2624 = vmatprep.subr.mxu1 %v2810_v56 }
 0x1fa   : > { %2598 = vmatpush3.msra.mxu0 %v2093_v17  ;;  %2599 = vmatprep.mubr.msk.f32.mxu0 %vm2811_vm3, %v2810_v56  ;;  %v2192_v17 = vld [vmem:[%s3604_s5 + $0x460] sm:$0xff] }
 0x1fb   : > { %2625 = vmatpush3.msra.mxu1 %v2106_v18  ;;  %2626 = vmatprep.mubr.msk.f32.mxu1 %vm2811_vm3, %v2810_v56  ;;  %v2178_v18 = vld [vmem:[%s3604_s5 + $0x3f8] sm:$0xff] }
 0x1fc   : > { %2600 = vmatmul.mubr.msk.f32.vlgmr.msra.gmra.mxu0 %vm871_vm5, %v1227_v20  ;;  %2627 = vmatmul.mubr.msk.f32.vlgmr.msra.gmra.mxu1 %vm871_vm5, %v1315_v21  ;;  %v2177_v20 = vld [vmem:[%s3604_s5 + $0x3f0] sm:$0xff] }
 0x1fd   : > { %2629 = vmatprep.subr.mxu0 %v2810_v56  ;;  %2656 = vmatprep.subr.mxu1 %v2810_v56  ;;  %v2190_v21 = vld [vmem:[%s3604_s5 + $0x450] sm:$0xff] }
 0x1fe   : > { %2630 = vmatpush3.msra.mxu0 %v2130_v19  ;;  %2657 = vmatpush3.msra.mxu1 %v2143_v22  ;;  %v2191_v19 = vld [vmem:[%s3604_s5 + $0x458] sm:$0xff]  ;;  %v2176_v22 = vld [vmem:[%s3604_s5 + $0x3e8] sm:$0xff] }
 0x1ff   : > { %2631 = vmatprep.subr.mxu0 %v2810_v56  ;;  %2658 = vmatprep.subr.mxu1 %v2810_v56 }
 0x200   : > { %2632 = vmatpush3.msra.mxu0 %v2129_v23  ;;  %2659 = vmatpush3.msra.mxu1 %v2142_v24  ;;  %v2189_v23 = vld [vmem:[%s3604_s5 + $0x448] sm:$0xff]  ;;  %v2175_v24 = vld [vmem:[%s3604_s5 + $0x3e0] sm:$0xff] }
 0x201   : > { %2633 = vmatprep.subr.mxu0 %v2810_v56  ;;  %2660 = vmatprep.subr.mxu1 %v2810_v56 }
 0x202   : > { %2634 = vmatpush3.msra.mxu0 %v2128_v25  ;;  %2661 = vmatpush3.msra.mxu1 %v2141_v26  ;;  %v2188_v25 = vld [vmem:[%s3604_s5 + $0x440] sm:$0xff]  ;;  %v2174_v26 = vld [vmem:[%s3604_s5 + $0x3d8] sm:$0xff] }
 0x203   : > { %2635 = vmatprep.subr.mxu0 %v2810_v56  ;;  %2662 = vmatprep.subr.mxu1 %v2810_v56 }
 0x204   : > { %2636 = vmatpush3.msra.mxu0 %v2127_v27  ;;  %2663 = vmatpush3.msra.mxu1 %v2140_v28  ;;  %v2187_v27 = vld [vmem:[%s3604_s5 + $0x438] sm:$0xff]  ;;  %v2173_v28 = vld [vmem:[%s3604_s5 + $0x3d0] sm:$0xff] }
 0x205   : > { %2637 = vmatprep.subr.mxu0 %v2810_v56  ;;  %2664 = vmatprep.subr.mxu1 %v2810_v56 }
 0x206   : > { %2638 = vmatpush3.msra.mxu0 %v2126_v29  ;;  %2665 = vmatpush3.msra.mxu1 %v2139_v30  ;;  %v2186_v29 = vld [vmem:[%s3604_s5 + $0x430] sm:$0xff]  ;;  %v2172_v30 = vld [vmem:[%s3604_s5 + $0x3c8] sm:$0xff] }
 0x207   : > { %2639 = vmatprep.subr.mxu0 %v2810_v56  ;;  %2666 = vmatprep.subr.mxu1 %v2810_v56 }
 0x208   : > { %2640 = vmatpush3.msra.mxu0 %v2125_v31  ;;  %2667 = vmatpush3.msra.mxu1 %v2138_v32  ;;  %v2185_v31 = vld [vmem:[%s3604_s5 + $0x428] sm:$0xff]  ;;  %v2171_v32 = vld [vmem:[%s3604_s5 + $0x3c0] sm:$0xff] }
 0x209   : > { %2641 = vmatprep.subr.mxu0 %v2810_v56  ;;  %2668 = vmatprep.subr.mxu1 %v2810_v56 }
 0x20a   : > { %2642 = vmatpush3.msra.mxu0 %v2124_v33  ;;  %2669 = vmatpush3.msra.mxu1 %v2137_v34  ;;  %v2184_v33 = vld [vmem:[%s3604_s5 + $0x420] sm:$0xff]  ;;  %v1755_v34 = vld [vmem:[#allocation3 + $0xa] sm:$0x1] }
 0x20b   : > { %2643 = vmatprep.subr.mxu0 %v2810_v56  ;;  %2670 = vmatprep.subr.mxu1 %v2810_v56 }
 0x20c   : > { %2644 = vmatpush3.msra.mxu0 %v2123_v35  ;;  %2671 = vmatpush3.msra.mxu1 %v2136_v36  ;;  %v1843_v35 = vld [vmem:[#allocation3 + $0xb] sm:$0x1]  ;;  %v875_v36 = vld [vmem:[%s3605_s6] sm:$0x1] }
 0x20d   : > { %2645 = vmatprep.subr.mxu0 %v2810_v56  ;;  %2672 = vmatprep.subr.mxu1 %v2810_v56 }
 0x20e   : > { %2646 = vmatpush3.msra.mxu0 %v2122_v37  ;;  %2673 = vmatpush3.msra.mxu1 %v2135_v38 }
 0x20f   : > { %2647 = vmatprep.subr.mxu0 %v2810_v56  ;;  %2674 = vmatprep.subr.mxu1 %v2810_v56 }
 0x210   : > { %2648 = vmatpush3.msra.mxu0 %v2121_v39  ;;  %2675 = vmatpush3.msra.mxu1 %v2134_v40 }
 0x211   : > { %2649 = vmatprep.subr.mxu0 %v2810_v56  ;;  %2676 = vmatprep.subr.mxu1 %v2810_v56 }
 0x212   : > { %2650 = vmatpush3.msra.mxu0 %v2120_v41  ;;  %2677 = vmatpush3.msra.mxu1 %v2133_v42 }
 0x213   : > { %2651 = vmatprep.subr.mxu0 %v2810_v56  ;;  %2678 = vmatprep.subr.mxu1 %v2810_v56 }
 0x214   : > { %2652 = vmatpush3.msra.mxu0 %v2119_v43  ;;  %2653 = vmatprep.mubr.msk.f32.mxu0 %vm2811_vm3, %v2810_v56 }
 0x215   : > { %2679 = vmatpush3.msra.mxu1 %v2132_v44  ;;  %2680 = vmatprep.mubr.msk.f32.mxu1 %vm2811_vm3, %v2810_v56 }
 0x216   : > { %2654 = vmatmul.mubr.msk.f32.vlgmr.msra.gmra.mxu0 %vm871_vm5, %v1403_v46  ;;  %2681 = vmatmul.mubr.msk.f32.vlgmr.msra.gmra.mxu1 %vm871_vm5, %v1491_v47 }
 0x217   : > { %2683 = vmatprep.subr.mxu0 %v2810_v56  ;;  %2710 = vmatprep.subr.mxu1 %v2810_v56 }
 0x218   : > { %2684 = vmatpush3.msra.mxu0 %v2156_v45  ;;  %2711 = vmatpush3.msra.mxu1 %v2169_v48 }
 0x219   : > { %2685 = vmatprep.subr.mxu0 %v2810_v56  ;;  %2712 = vmatprep.subr.mxu1 %v2810_v56 }
 0x21a   : > { %2686 = vmatpush3.msra.mxu0 %v2155_v49  ;;  %2713 = vmatpush3.msra.mxu1 %v2168_v50 }
 0x21b   : > { %2687 = vmatprep.subr.mxu0 %v2810_v56  ;;  %2714 = vmatprep.subr.mxu1 %v2810_v56 }
 0x21c   : > { %2688 = vmatpush3.msra.mxu0 %v2154_v51  ;;  %2715 = vmatpush3.msra.mxu1 %v2167_v52 }
 0x21d   : > { %2689 = vmatprep.subr.mxu0 %v2810_v56  ;;  %2716 = vmatprep.subr.mxu1 %v2810_v56 }
 0x21e   : > { %2690 = vmatpush3.msra.mxu0 %v2153_v53  ;;  %2717 = vmatpush3.msra.mxu1 %v2166_v54 }
 0x21f   : > { %2691 = vmatprep.subr.mxu0 %v2810_v56  ;;  %2718 = vmatprep.subr.mxu1 %v2810_v56 }
 0x220   : > { %2692 = vmatpush3.msra.mxu0 %v2152_v55  ;;  %2719 = vmatpush3.msra.mxu1 %v2165_v57 }
 0x221   : > { %2693 = vmatprep.subr.mxu0 %v2810_v56  ;;  %2720 = vmatprep.subr.mxu1 %v2810_v56 }
 0x222   : > { %2694 = vmatpush3.msra.mxu0 %v2151_v58  ;;  %2721 = vmatpush3.msra.mxu1 %v2164_v59 }
 0x223   : > { %2695 = vmatprep.subr.mxu0 %v2810_v56  ;;  %2722 = vmatprep.subr.mxu1 %v2810_v56 }
 0x224   : > { %2696 = vmatpush3.msra.mxu0 %v2150_v60  ;;  %2723 = vmatpush3.msra.mxu1 %v2163_v61 }
 0x225   : > { %2697 = vmatprep.subr.mxu0 %v2810_v56  ;;  %2724 = vmatprep.subr.mxu1 %v2810_v56 }
 0x226   : > { %2698 = vmatpush3.msra.mxu0 %v2149_v62  ;;  %2725 = vmatpush3.msra.mxu1 %v2162_v63 }
 0x227   : > { %2699 = vmatprep.subr.mxu0 %v2810_v56  ;;  %2726 = vmatprep.subr.mxu1 %v2810_v56 }
 0x228   : > { %2700 = vmatpush3.msra.mxu0 %v2148_v0  ;;  %2727 = vmatpush3.msra.mxu1 %v2161_v1  ;;  %v1934_v1 = vlaneseq }
 0x229   : > { %2701 = vmatprep.subr.mxu0 %v2810_v56  ;;  %2728 = vmatprep.subr.mxu1 %v2810_v56 }
 0x22a   : > { %2702 = vmatpush3.msra.mxu0 %v2147_v2  ;;  %2729 = vmatpush3.msra.mxu1 %v2160_v3  ;;  %v1935_v3 = vshrl.u32 %v1934_v1, 7 }
 0x22b   : > { %2703 = vmatprep.subr.mxu0 %v2810_v56  ;;  %2730 = vmatprep.subr.mxu1 %v2810_v56 }
 0x22c   : > { %2704 = vmatpush3.msra.mxu0 %v2146_v4  ;;  %2731 = vmatpush3.msra.mxu1 %v2159_v5 }
 0x22d   : > { %2705 = vmatprep.subr.mxu0 %v2810_v56  ;;  %2732 = vmatprep.subr.mxu1 %v2810_v56 }
 0x22e   : > { %2706 = vmatpush3.msra.mxu0 %v2145_v6  ;;  %2707 = vmatprep.mubr.msk.f32.mxu0 %vm2811_vm3, %v2810_v56 }
 0x22f   : > { %2733 = vmatpush3.msra.mxu1 %v2158_v7  ;;  %2734 = vmatprep.mubr.msk.f32.mxu1 %vm2811_vm3, %v2810_v56 }
 0x230   : > { %2708 = vmatmul.mubr.msk.f32.vlgmr.msra.gmra.mxu0 %vm871_vm5, %v1579_v9  ;;  %2735 = vmatmul.mubr.msk.f32.vlgmr.msra.gmra.mxu1 %vm871_vm5, %v1667_v10 }
 0x231   : > { %2737 = vmatprep.subr.mxu0 %v2810_v56  ;;  %2764 = vmatprep.subr.mxu1 %v2810_v56 }
 0x232   : > { %2738 = vmatpush3.msra.mxu0 %v2182_v8  ;;  %2765 = vmatpush3.msra.mxu1 %v2195_v11  ;;  %v1936_v8 = vsub.s32 0, %v1935_v3 }
 0x233   : > { %2739 = vmatprep.subr.mxu0 %v2810_v56  ;;  %2766 = vmatprep.subr.mxu1 %v2810_v56 }
 0x234   : > { %2740 = vmatpush3.msra.mxu0 %v2181_v12  ;;  %2767 = vmatpush3.msra.mxu1 %v2194_v13 }
 0x235   : > { %2741 = vmatprep.subr.mxu0 %v2810_v56  ;;  %2768 = vmatprep.subr.mxu1 %v2810_v56 }
 0x236   : > { %2742 = vmatpush3.msra.mxu0 %v2180_v14  ;;  %2769 = vmatpush3.msra.mxu1 %v2193_v15 }
 0x237   : > { %2743 = vmatprep.subr.mxu0 %v2810_v56  ;;  %2770 = vmatprep.subr.mxu1 %v2810_v56 }
 0x238   : > { %2744 = vmatpush3.msra.mxu0 %v2179_v16  ;;  %2771 = vmatpush3.msra.mxu1 %v2192_v17 }
 0x239   : > { %2745 = vmatprep.subr.mxu0 %v2810_v56  ;;  %2772 = vmatprep.subr.mxu1 %v2810_v56 }
 0x23a   : > { %2746 = vmatpush3.msra.mxu0 %v2178_v18  ;;  %2773 = vmatpush3.msra.mxu1 %v2191_v19 }
 0x23b   : > { %2747 = vmatprep.subr.mxu0 %v2810_v56  ;;  %2774 = vmatprep.subr.mxu1 %v2810_v56 }
 0x23c   : > { %2748 = vmatpush3.msra.mxu0 %v2177_v20  ;;  %2775 = vmatpush3.msra.mxu1 %v2190_v21 }
 0x23d   : > { %2749 = vmatprep.subr.mxu0 %v2810_v56  ;;  %2776 = vmatprep.subr.mxu1 %v2810_v56 }
 0x23e   : > { %2750 = vmatpush3.msra.mxu0 %v2176_v22  ;;  %2777 = vmatpush3.msra.mxu1 %v2189_v23 }
 0x23f   : > { %2751 = vmatprep.subr.mxu0 %v2810_v56  ;;  %2778 = vmatprep.subr.mxu1 %v2810_v56 }
 0x240   : > { %2752 = vmatpush3.msra.mxu0 %v2175_v24  ;;  %2779 = vmatpush3.msra.mxu1 %v2188_v25 }
 0x241   : > { %2753 = vmatprep.subr.mxu0 %v2810_v56  ;;  %2780 = vmatprep.subr.mxu1 %v2810_v56 }
 0x242   : > { %2754 = vmatpush3.msra.mxu0 %v2174_v26  ;;  %2781 = vmatpush3.msra.mxu1 %v2187_v27 }
 0x243   : > { %2755 = vmatprep.subr.mxu0 %v2810_v56  ;;  %2782 = vmatprep.subr.mxu1 %v2810_v56 }
 0x244   : > { %2756 = vmatpush3.msra.mxu0 %v2173_v28  ;;  %2783 = vmatpush3.msra.mxu1 %v2186_v29 }
 0x245   : > { %2757 = vmatprep.subr.mxu0 %v2810_v56  ;;  %2784 = vmatprep.subr.mxu1 %v2810_v56 }
 0x246   : > { %2758 = vmatpush3.msra.mxu0 %v2172_v30  ;;  %2785 = vmatpush3.msra.mxu1 %v2185_v31 }
 0x247   : > { %2759 = vmatprep.subr.mxu0 %v2810_v56  ;;  %2786 = vmatprep.subr.mxu1 %v2810_v56 }
 0x248   : > { %2760 = vmatpush3.msra.mxu0 %v2171_v32  ;;  %2761 = vmatprep.mubr.msk.f32.mxu0 %vm2811_vm3, %v2810_v56 }
 0x249   : > { %2787 = vmatpush3.msra.mxu1 %v2184_v33  ;;  %2788 = vmatprep.mubr.msk.f32.mxu1 %vm2811_vm3, %v2810_v56 }
 0x24a   : > { %2762 = vmatmul.mubr.msk.f32.vlgmr.msra.gmra.mxu0 %vm871_vm5, %v1755_v34  ;;  %2789 = vmatmul.mubr.msk.f32.vlgmr.msra.gmra.mxu1 %vm871_vm5, %v1843_v35 }
 0x289   : > { %v958_v37 = vpop.f32.mrf.mxu0  ;;  %v1046_v38 = vpop.f32.mrf.mxu1 }
 0x28a   : > { %v962_v39 = vadd.f32 %v958_v37, %v875_v36 }
 0x28b   : > { %v2493_v40 = vpop.f32.mrf.mxu0  ;;  %v2520_v41 = vpop.f32.mrf.mxu1 }
 0x28c   : > { %v1050_v42 = vadd.f32 %v1046_v38, %v962_v39 }
 0x2a2   : > { %v1134_v43 = vpop.f32.mrf.mxu0  ;;  %v1222_v44 = vpop.f32.mrf.mxu1 }
 0x2a3   : > { %v1138_v45 = vadd.f32 %v1134_v43, %v1050_v42 }
 0x2a4   : > { %v2547_v56 = vpop.f32.mrf.mxu0  ;;  %v2574_v46 = vpop.f32.mrf.mxu1 }
 0x2a5   : > { %v1226_v47 = vadd.f32 %v1222_v44, %v1138_v45 }
 0x2bc   : > { %v1310_v48 = vpop.f32.mrf.mxu0  ;;  %v1398_v49 = vpop.f32.mrf.mxu1 }
 0x2bd   : > { %v1314_v50 = vadd.f32 %v1310_v48, %v1226_v47 }
 0x2be   : > { %v2601_v51 = vpop.f32.mrf.mxu0  ;;  %v2628_v52 = vpop.f32.mrf.mxu1 }
 0x2bf   : > { %v1402_v53 = vadd.f32 %v1398_v49, %v1314_v50 }
 0x2d6   : > { %v1486_v54 = vpop.f32.mrf.mxu0  ;;  %v1574_v55 = vpop.f32.mrf.mxu1 }
 0x2d7   : > { %v1490_v63 = vadd.f32 %v1486_v54, %v1402_v53 }
 0x2d8   : > { %v2655_v57 = vpop.f32.mrf.mxu0  ;;  %v2682_v58 = vpop.f32.mrf.mxu1 }
 0x2d9   : > { %v1578_v0 = vadd.f32 %v1574_v55, %v1490_v63 }
 0x2f0   : > { %v1662_v59 = vpop.f32.mrf.mxu0  ;;  %v1750_v60 = vpop.f32.mrf.mxu1 }
 0x2f1   : > { %v1666_v2 = vadd.f32 %v1662_v59, %v1578_v0 }
 0x2f2   : > { %v2709_v61 = vpop.f32.mrf.mxu0  ;;  %v2736_v62 = vpop.f32.mrf.mxu1 }
 0x2f3   : > { %v1754_v4 = vadd.f32 %v1750_v60, %v1666_v2 }
 0x30a   : > { %v1838_v5 = vpop.f32.mrf.mxu0  ;;  %v1926_v6 = vpop.f32.mrf.mxu1 }
 0x30b   : > { %v1842_v7 = vadd.f32 %v1838_v5, %v1754_v4 }
 0x30c   : > { %v2763_v9 = vpop.f32.mrf.mxu0  ;;  %v2790_v10 = vpop.f32.mrf.mxu1 }
 0x30d   : > { %v1930_v11 = vadd.f32 %v1926_v6, %v1842_v7 }
 0x30f   : > { %v1937_v12 = vrot.slane %v1930_v11, %v1936_v8  ;;  %1932 = vst.msk [vmem:[%s307_s21] sm:$0x1] %vm1931_vm6, %v1930_v11 }
 0x311   : > { %1938 = vrot.lane.b32.xlu0 %v1937_v12, %s2812_s22 }
 0x383   : > { %v1939_v13 = vpop.permute.xlu0 %1938 }
 0x384   : > { %1941 = vst.msk [vmem:[%s310_s25] sm:$0x1] %vm1931_vm6, %v1939_v13 }
 0x385 PF: > { %s19_s27 = sadd.s32 1, %s2808_s27  }
 0x386   : > { %p16_p4 = scmp.ge.s32.totalorder %s19_s27, 4  }
 0x388   :  { %18 = sbr.rel (!%p16_p4) target bundleno = 1 (0x1), region = 105 }

// kernel: autoencoder_forward.3
= control target key start
LH: loop header
LB: loop body
LE: loop exit
PB: predicated region body
PF: predicated region fallthrough
CT: control target
= control target key end

     0   :  { %s3304_s0 = inlined_call_operand.vmem [shape: f32[2,1,8], index: 0, kind: input, shape index: {}]   ;;  %s3305_s1 = inlined_call_operand.vmem [shape: f32[2,1,8], index: 1, kind: input, shape index: {}]   ;;  %s3306_s2 = inlined_call_operand.vmem [shape: f32[4,1,8], index: 2, kind: input, shape index: {}]   ;;  %s3307_s3 = inlined_call_operand.vmem [shape: f32[12,8,96], index: 3, kind: input, shape index: {}]   ;;  %s3308_s4 = inlined_call_operand.vmem [shape: f32[12,96], index: 4, kind: input, shape index: {}]   ;;  %s3309_s5 = inlined_call_operand.vmem [shape: f32[3,96,56], index: 5, kind: input, shape index: {}]   ;;  %s3310_s6 = inlined_call_operand.vmem [shape: f32[1,56], index: 6, kind: input, shape index: {}]   ;;  %s3311_s7 = inlined_call_operand.vmem [shape: f32[3,56,16], index: 7, kind: input, shape index: {}]   ;;  %s3312_s8 = inlined_call_operand.vmem [shape: f32[1,16], index: 8, kind: input, shape index: {}]   ;;  %s3313_s9 = inlined_call_operand.hbm [shape: f32[4,1,8], index: 9, kind: output, shape index: {0}]   ;;  %s3314_s10 = inlined_call_operand.hbm [shape: f32[4,16,16], index: 10, kind: output, shape index: {1}]  }
   0x1   :  { %3315 = sst [smem:[#allocation10_spill]] %s3304_s0 }
   0x2   :  { %3316 = sst [smem:[#allocation11_spill]] %s3305_s1 }
   0x3   :  { %3317 = sst [smem:[#allocation12_spill]] %s3306_s2 }
   0x4   :  { %16 = vsyncpa [#allocation5], 0 }
   0x5   :  { %18 = vsyncpa [#allocation5 + $0x1], 0 }
   0x6   :  { %19 = vsyncpa [#allocation7], 0 }
   0x7   :  { %21 = vsyncpa [#allocation7 + $0x1], 0  ;;  %s2820_s13 = smov 0   ;;  %s2822_s14 = smov 0  }
   0x8   :  { %s2824_s15 = smov 0   ;;  %s2826_s16 = smov 0  }
   0x9 LB: > { %s2841_s17 = sadd.s32 4294967295, %s2757_s16   ;;  %s2217_s18 = sadd.s32 4294967294, %s2757_s16   ;;  %s2757_s16 = sphi %s2826_s16, %s3326_s16   ;;  %s2753_s15 = sphi %s2824_s15, %s3325_s15   ;;  %s2749_s14 = sphi %s2822_s14, %s3324_s14   ;;  %s2745_s13 = sphi %s2820_s13, %s3323_s13  }
   0xa   : > { %s2845_s19 = sadd.s32 1, %s2757_s16   ;;  %s286_s20 = sadd.s32 1, %s2753_s15 }
   0xb   : > { %s283_s21 = ssub.s32 %s2757_s16, %s2845_s19  ;;  %p296_p0 = scmp.ne.s32.totalorder %s2753_s15, %s2749_s14 }
   0xc   : > { %p284_p1 = scmp.eq.s32.totalorder %s283_s21, 0  ;;  %p297_p2 = scmp.eq.s32.totalorder %s2841_s17, 3 }
   0xd   : > { %p302_p3 = scmp.ne.s32.totalorder %s2749_s14, %s2745_s13  ;;  %p303_p4 = scmp.eq.s32.totalorder %s2217_s18, 3 }
   0xe   : > { %s2856_s22 = scalar_select %p284_p1, %s2753_s15, %s286_s20  }
   0xf   : > { %p2858_p5 = por %p297_p2, %p296_p0  ;;  %p2862_p6 = por %p303_p4, %p302_p3 }
  0x10   : > { %p2232_p7 = scmp.ge.s32.totalorder %s2757_s16, 1  ;;  %p431_p8 = scmp.lt.s32.totalorder %s2757_s16, 5 }
  0x12   : > { %p432_p9 = pnand %p2232_p7, %p431_p8 }
  0x13   : > { %p501_p10 = scmp.lt.s32.totalorder (!%p432_p9), %s2841_s17, 0  ;;  %s502_s27 = ssub.s32 (!%p432_p9), 0, %s2841_s17 }
  0x14   : > { %435 = sbr.rel (%p432_p9) target bundleno = 780 (0x30c), region = 56  ;;  %s2234_s28 = smin.u32 (!%p432_p9), %s2841_s17, %s502_s27 }
  0x15   : > { %s504_s11 = sand.u32 (!%p432_p9), 1, %s2234_s28   ;;  %s3320_s1 = sld [smem:[#allocation11_spill]] (!%p432_p9) }
  0x16   : > { %s505_s12 = ssub.s32 (!%p432_p9), 0, %s504_s11  ;;  %p555_p13 = scmp.lt.s32.totalorder (!%p432_p9), %s2841_s17, 3 }
  0x17   : > { %s3321_s2 = sld [smem:[#allocation12_spill]] (!%p432_p9)  ;;  %s2761_s20 = smov (!%p432_p9), [#allocation4]  }
  0x18   : > { %s3322_s0 = sld [smem:[#allocation10_spill]] (!%p432_p9)  ;;  %s2671_s21 = sshll.u32 (!%p432_p9), %s2761_s20, 4  ;;  %s2672_s21 = int_to_ptr.vmem [resolvable:$false] %s2671_s21 }
  0x19   : > { %v576_v0 = vld [vmem:[%s3307_s3] sm:$0xff]  ;;  %v2759_v1 = vmov 0.0   ;;  %vm2760_vm0 = vmmov 0   ;;  %v2243_v2 = vld [vmem:[%s3307_s3 + $0x10] sm:$0xff]  ;;  %vm568_vm1 = vcmask 785408   ;;  %s3328_s12 = smov (!%p501_p10, %s505_s12), %s504_s11  ;;  %vm578_vm2 = vcmask 64512  }
  0x1a   : > { %2417 = vmatprep.subr.mxu1 %v2759_v1  ;;  %2419 = vmatprep.mubr.msk.f32.mxu1 %vm2760_vm0, %v2759_v1  ;;  %569 = vst.msk [vmem:[#allocation2] sm:$0xff] %vm568_vm1, %v2759_v1  ;;  %570 = vst.msk [vmem:[#allocation2 + $0x8] sm:$0xff] %vm568_vm1, %v2759_v1  ;;  %p2236_p11 = scmp.lt.s32.totalorder %s3328_s12, 0  ;;  %s511_s18 = sadd.s32 2, %s3328_s12  ;;  %v2241_v11 = vld [vmem:[%s3307_s3 + $0x8] sm:$0xff]  ;;  %v2247_v12 = vld [vmem:[%s3307_s3 + $0x20] sm:$0xff] }
  0x1b   : > { %2418 = vmatpush3.msra.mxu1 %v576_v0  ;;  %2427 = vmatprep.subr.mxu0 %v2759_v1  ;;  %s556_s26 = scalar_select %p555_p13, %s2841_s17, 3  ;;  %v2245_v13 = vld [vmem:[%s3307_s3 + $0x18] sm:$0xff]  ;;  %v2251_v14 = vld [vmem:[%s3307_s3 + $0x30] sm:$0xff]  ;;  %v2249_v15 = vld [vmem:[%s3307_s3 + $0x28] sm:$0xff]  ;;  %vm653_vm3 = vcmask 778240   ;;  %vm571_vm4 = vcmask 457728  }
  0x1c   : > { %2422 = vmatprep.subr.mxu1 %v2759_v1  ;;  %2428 = vmatpush3.msra.mxu0 %v2243_v2  ;;  %s3330_s18 = smov (!%p2236_p11, %s511_s18), %s3328_s12  ;;  %v2255_v16 = vld [vmem:[%s3307_s3 + $0x40] sm:$0xff]  ;;  %v2253_v17 = vld [vmem:[%s3307_s3 + $0x38] sm:$0xff]  ;;  %v2259_v18 = vld [vmem:[%s3307_s3 + $0x50] sm:$0xff]  ;;  %573 = vst.msk [vmem:[#allocation3 + $0x8] sm:$0xff] %vm571_vm4, %v2759_v1  ;;  %vm574_vm5 = vcmask 451584   ;;  %vm1781_vm6 = vcmask 455680  }
  0x1d   : > { %2429 = vmatprep.mubr.msk.f32.mxu0 %vm2760_vm0, %v2759_v1  ;;  %2437 = vmatprep.subr.mxu0 %v2759_v1  ;;  %p513_p12 = scmp.lt.s32.totalorder %s3330_s18, 1  ;;  %s557_s29 = scalar_lea.vmem %s3321_s2, %s556_s26  ;;  %v2257_v19 = vld [vmem:[%s3307_s3 + $0x48] sm:$0xff]  ;;  %v2261_v20 = vld [vmem:[%s3307_s3 + $0x58] sm:$0xff]  ;;  %v2273_v23 = vld [vmem:[%s3309_s5 + $0xb0] sm:$0xff]  ;;  %572 = vst.msk [vmem:[#allocation3] sm:$0xff] %vm571_vm4, %v2759_v1  ;;  %vm566_vm7 = vcmask 57344  }
  0x1e   : > { %v563_v6 = vld [vmem:[%s557_s29] sm:$0x1]  ;;  %v2274_v21 = vld [vmem:[%s3309_s5 + $0xb8] sm:$0xff]  ;;  %v1492_v24 = vld [vmem:[%s3309_s5 + $0x50] sm:$0xff]  ;;  %575 = vst.msk [vmem:[#allocation3 + $0x10] sm:$0x3] %vm574_vm5, %v2759_v1 }
  0x1f   : > { %s3332_s18 = smov (!%p513_p12, %s3330_s18), 1  ;;  %v1493_v22 = vld [vmem:[%s3309_s5 + $0x58] sm:$0xff]  ;;  %v2272_v25 = vld [vmem:[%s3309_s5 + $0xa8] sm:$0xff]  ;;  %v2271_v27 = vld [vmem:[%s3309_s5 + $0xa0] sm:$0xff]  ;;  %s2318_s26 = sshll.u32 %s2841_s17, 4 }
  0x20   : > { %s542_s25 = scalar_lea.vmem %s3320_s1, %s3332_s18  ;;  %s515_s12 = scalar_lea.vmem %s3322_s0, %s3332_s18  ;;  %v1491_v26 = vld [vmem:[%s3309_s5 + $0x48] sm:$0xff]  ;;  %v1490_v28 = vld [vmem:[%s3309_s5 + $0x40] sm:$0xff]  ;;  %v2270_v29 = vld [vmem:[%s3309_s5 + $0x98] sm:$0xff] }
  0x21   : > { %v559_v3 = vld [vmem:[%s542_s25] sm:$0x1]  ;;  %v1489_v30 = vld [vmem:[%s3309_s5 + $0x38] sm:$0xff]  ;;  %v2269_v31 = vld [vmem:[%s3309_s5 + $0x90] sm:$0xff]  ;;  %s3231_s18 = sand.u32 1, %s2749_s14   ;;  %s2097_s29 = scalar_lea.hbm %s3313_s9, %s2318_s26 }
  0x22   : > { %v560_v4 = vmul.f32 0.5, %v559_v3  ;;  %v558_v8 = vld [vmem:[%s515_s12] sm:$0x1]  ;;  %v1488_v32 = vld [vmem:[%s3309_s5 + $0x30] sm:$0xff]  ;;  %v2268_v33 = vld [vmem:[%s3309_s5 + $0x88] sm:$0xff]  ;;  %s493_s1 = scalar_lea.vmem [#allocation4], %s3231_s18 }
  0x23   : > { %v1487_v34 = vld [vmem:[%s3309_s5 + $0x28] sm:$0xff]  ;;  %v2267_v35 = vld [vmem:[%s3309_s5 + $0x80] sm:$0xff]  ;;  %v2266_v37 = vld [vmem:[%s3309_s5 + $0x78] sm:$0xff]  ;;  %s2099_s30 = sshll.u32 %s493_s1, 4  ;;  %s2082_s11 = scalar_lea.sflag [#allocation5], %s3231_s18  ;;  %s2100_s30 = int_to_ptr.vmem [resolvable:$true] %s2099_s30 }
  0x24   : > { %v561_v5 = vmul.f32 1.442695, %v560_v4  ;;  %v1486_v36 = vld [vmem:[%s3309_s5 + $0x20] sm:$0xff]  ;;  %v1485_v38 = vld [vmem:[%s3309_s5 + $0x18] sm:$0xff]  ;;  %v2265_v39 = vld [vmem:[%s3309_s5 + $0x70] sm:$0xff]  ;;  %s2667_s12 = scalar_lea.vmem %s2100_s30, 16  ;;  %p2674_p3 = scmp.lt.s32.totalorder %s2100_s30, %s2672_s21 }
  0x25   : > { %v1484_v40 = vld [vmem:[%s3309_s5 + $0x10] sm:$0xff]  ;;  %v2264_v41 = vld [vmem:[%s3309_s5 + $0x68] sm:$0xff]  ;;  %v2263_v43 = vld [vmem:[%s3309_s5 + $0x60] sm:$0xff]  ;;  %p2668_p0 = scmp.ne.s32.totalorder %s2100_s30, %s2667_s12  ;;  %s2673_s25 = scalar_lea.vmem %s2672_s21, 32 }
  0x26   : > { %2657 = vpow2.f32 %v561_v5  ;;  %v1483_v42 = vld [vmem:[%s3309_s5 + $0x8] sm:$0xff]  ;;  %v1482_v44 = vld [vmem:[%s3309_s5] sm:$0xff]  ;;  %v3061_v45 = vld [vmem:[%s3309_s5 + $0x118] sm:$0xff]  ;;  %p2675_p4 = scmp.lt.s32.totalorder %s2673_s25, %s2667_s12 }
  0x27   : > { %v577_v46 = vld [vmem:[%s3308_s4] sm:$0x1]  ;;  %v732_v47 = vld [vmem:[%s3308_s4 + $0x2] sm:$0x1]  ;;  %v657_v53 = vld [vmem:[%s3308_s4 + $0x1] sm:$0x1]  ;;  %p2669_p1 = pnand %p2668_p0, %p2858_p5 }
  0x28   : > { %v882_v55 = vld [vmem:[%s3308_s4 + $0x4] sm:$0x1]  ;;  %v807_v63 = vld [vmem:[%s3308_s4 + $0x3] sm:$0x1]  ;;  %v1032_v2 = vld [vmem:[%s3308_s4 + $0x6] sm:$0x1]  ;;  %p2676_p7 = por %p2675_p4, %p2674_p3 }
  0x29   : > { %p2670_p2 = pneg %p2669_p1 }
  0x2b   : > { %p2677_p8 = pnand %p2676_p7, %p2670_p2 }
  0x33   : > { %v2658_v7 = vpop.eup %2657 }
  0x34   : > { %v564_v9 = vmul.f32 %v2658_v7, %v563_v6 }
  0x36   : > { %v2902_v10 = vadd.f32 %v564_v9, %v558_v8 }
  0x38   : > { %2420 = vmatmul.mubr.msk.f32.vlgmr.msra.gmra.mxu1 %vm578_vm2, %v2902_v10  ;;  %2430 = vmatmul.mubr.msk.f32.vlgmr.msra.gmra.mxu0 %vm578_vm2, %v2902_v10  ;;  %567 = vst.msk [vmem:[%s493_s1] sm:$0x1] %vm566_vm7, %v2902_v10 }
  0x39   : > { %2423 = vmatpush3.msra.mxu1 %v2241_v11  ;;  %2424 = vmatprep.mubr.msk.f32.mxu1 %vm2760_vm0, %v2759_v1  ;;  %v957_v11 = vld [vmem:[%s3308_s4 + $0x5] sm:$0x1] }
  0x3a   : > { %2432 = vmatprep.subr.mxu1 %v2759_v1  ;;  %2438 = vmatpush3.msra.mxu0 %v2247_v12 }
  0x3b   : > { %2439 = vmatprep.mubr.msk.f32.mxu0 %vm2760_vm0, %v2759_v1  ;;  %2447 = vmatprep.subr.mxu0 %v2759_v1 }
  0x3c   : > { %2425 = vmatmul.mubr.msk.f32.vlgmr.msra.gmra.mxu1 %vm578_vm2, %v2902_v10  ;;  %2440 = vmatmul.mubr.msk.f32.vlgmr.msra.gmra.mxu0 %vm578_vm2, %v2902_v10 }
  0x3d   : > { %2433 = vmatpush3.msra.mxu1 %v2245_v13  ;;  %2434 = vmatprep.mubr.msk.f32.mxu1 %vm2760_vm0, %v2759_v1  ;;  %v1182_v13 = vld [vmem:[%s3308_s4 + $0x8] sm:$0x1] }
  0x3e   : > { %2442 = vmatprep.subr.mxu1 %v2759_v1  ;;  %2448 = vmatpush3.msra.mxu0 %v2251_v14 }
  0x3f   : > { %2449 = vmatprep.mubr.msk.f32.mxu0 %vm2760_vm0, %v2759_v1  ;;  %2457 = vmatprep.subr.mxu0 %v2759_v1 }
  0x40   : > { %2435 = vmatmul.mubr.msk.f32.vlgmr.msra.gmra.mxu1 %vm578_vm2, %v2902_v10  ;;  %2450 = vmatmul.mubr.msk.f32.vlgmr.msra.gmra.mxu0 %vm578_vm2, %v2902_v10 }
  0x41   : > { %2443 = vmatpush3.msra.mxu1 %v2249_v15  ;;  %2444 = vmatprep.mubr.msk.f32.mxu1 %vm2760_vm0, %v2759_v1 }
  0x42   : > { %2452 = vmatprep.subr.mxu1 %v2759_v1  ;;  %2458 = vmatpush3.msra.mxu0 %v2255_v16 }
  0x43   : > { %2459 = vmatprep.mubr.msk.f32.mxu0 %vm2760_vm0, %v2759_v1  ;;  %2467 = vmatprep.subr.mxu0 %v2759_v1 }
  0x44   : > { %2445 = vmatmul.mubr.msk.f32.vlgmr.msra.gmra.mxu1 %vm578_vm2, %v2902_v10  ;;  %2460 = vmatmul.mubr.msk.f32.vlgmr.msra.gmra.mxu0 %vm578_vm2, %v2902_v10 }
  0x45   : > { %2453 = vmatpush3.msra.mxu1 %v2253_v17  ;;  %2454 = vmatprep.mubr.msk.f32.mxu1 %vm2760_vm0, %v2759_v1 }
  0x46   : > { %2462 = vmatprep.subr.mxu1 %v2759_v1  ;;  %2468 = vmatpush3.msra.mxu0 %v2259_v18 }
  0x47   : > { %2469 = vmatprep.mubr.msk.f32.mxu0 %vm2760_vm0, %v2759_v1  ;;  %2477 = vmatprep.subr.mxu0 %v2274_v21 }
  0x48   : > { %2455 = vmatmul.mubr.msk.f32.vlgmr.msra.gmra.mxu1 %vm578_vm2, %v2902_v10  ;;  %2470 = vmatmul.mubr.msk.f32.vlgmr.msra.gmra.mxu0 %vm578_vm2, %v2902_v10 }
  0x49   : > { %2463 = vmatpush3.msra.mxu1 %v2257_v19  ;;  %2464 = vmatprep.mubr.msk.f32.mxu1 %vm2760_vm0, %v2759_v1 }
  0x4a   : > { %2472 = vmatprep.subr.mxu1 %v2759_v1  ;;  %2478 = vmatpush3.msra.mxu0 %v2274_v21  ;;  %v1107_v21 = vld [vmem:[%s3308_s4 + $0x7] sm:$0x1] }
  0x4b   : > { %2479 = vmatprep.subr.mxu0 %v2273_v23 }
  0x4c   : > { %2465 = vmatmul.mubr.msk.f32.vlgmr.msra.gmra.mxu1 %vm578_vm2, %v2902_v10  ;;  %2480 = vmatpush3.msra.mxu0 %v2273_v23  ;;  %v1332_v23 = vld [vmem:[%s3308_s4 + $0xa] sm:$0x1] }
  0x4d   : > { %2473 = vmatpush3.msra.mxu1 %v2261_v20  ;;  %2474 = vmatprep.mubr.msk.f32.mxu1 %vm2760_vm0, %v2759_v1  ;;  %v2307_v1 = vld [vmem:[%s3311_s7 + $0x80] sm:$0xff] }
  0x4e   : > { %2504 = vmatprep.subr.mxu1 %v1493_v22  ;;  %2481 = vmatprep.subr.mxu0 %v2272_v25 }
  0x4f   : > { %2482 = vmatpush3.msra.mxu0 %v2272_v25 }
  0x50   : > { %2475 = vmatmul.mubr.msk.f32.vlgmr.msra.gmra.mxu1 %vm578_vm2, %v2902_v10  ;;  %2483 = vmatprep.subr.mxu0 %v2271_v27 }
  0x51   : > { %2505 = vmatpush3.msra.mxu1 %v1493_v22  ;;  %2484 = vmatpush3.msra.mxu0 %v2271_v27 }
  0x52   : > { %2506 = vmatprep.subr.mxu1 %v1492_v24  ;;  %2485 = vmatprep.subr.mxu0 %v2270_v29 }
  0x53   : > { %2507 = vmatpush3.msra.mxu1 %v1492_v24  ;;  %2486 = vmatpush3.msra.mxu0 %v2270_v29 }
  0x54   : > { %2508 = vmatprep.subr.mxu1 %v1491_v26  ;;  %2487 = vmatprep.subr.mxu0 %v2269_v31 }
  0x55   : > { %2509 = vmatpush3.msra.mxu1 %v1491_v26  ;;  %2488 = vmatpush3.msra.mxu0 %v2269_v31  ;;  %v1257_v31 = vld [vmem:[%s3308_s4 + $0x9] sm:$0x1] }
  0x56   : > { %2510 = vmatprep.subr.mxu1 %v1490_v28  ;;  %2489 = vmatprep.subr.mxu0 %v2268_v33 }
  0x57   : > { %2511 = vmatpush3.msra.mxu1 %v1490_v28  ;;  %2490 = vmatpush3.msra.mxu0 %v2268_v33 }
  0x58   : > { %2512 = vmatprep.subr.mxu1 %v1489_v30  ;;  %2491 = vmatprep.subr.mxu0 %v2267_v35 }
  0x59   : > { %2513 = vmatpush3.msra.mxu1 %v1489_v30  ;;  %2492 = vmatpush3.msra.mxu0 %v2267_v35 }
  0x5a   : > { %2514 = vmatprep.subr.mxu1 %v1488_v32  ;;  %2493 = vmatprep.subr.mxu0 %v2266_v37 }
  0x5b   : > { %2515 = vmatpush3.msra.mxu1 %v1488_v32  ;;  %2494 = vmatpush3.msra.mxu0 %v2266_v37 }
  0x5c   : > { %2516 = vmatprep.subr.mxu1 %v1487_v34  ;;  %2495 = vmatprep.subr.mxu0 %v2265_v39 }
  0x5d   : > { %2517 = vmatpush3.msra.mxu1 %v1487_v34  ;;  %2496 = vmatpush3.msra.mxu0 %v2265_v39 }
  0x5e   : > { %2518 = vmatprep.subr.mxu1 %v1486_v36  ;;  %2497 = vmatprep.subr.mxu0 %v2264_v41 }
  0x5f   : > { %2519 = vmatpush3.msra.mxu1 %v1486_v36  ;;  %2498 = vmatpush3.msra.mxu0 %v2264_v41 }
  0x60   : > { %2520 = vmatprep.subr.mxu1 %v1485_v38  ;;  %2499 = vmatprep.subr.mxu0 %v2263_v43 }
  0x61   : > { %2521 = vmatpush3.msra.mxu1 %v1485_v38  ;;  %2500 = vmatpush3.msra.mxu0 %v2263_v43  ;;  %v1407_v38 = vld [vmem:[%s3308_s4 + $0xb] sm:$0x1] }
  0x62   : > { %2522 = vmatprep.subr.mxu1 %v1484_v40  ;;  %2531 = vmatprep.subr.mxu0 %v3061_v45 }
  0x63   : > { %2523 = vmatpush3.msra.mxu1 %v1484_v40 }
  0x64   : > { %2524 = vmatprep.subr.mxu1 %v1483_v42 }
  0x65   : > { %2525 = vmatpush3.msra.mxu1 %v1483_v42 }
  0x66   : > { %2526 = vmatprep.subr.mxu1 %v1482_v44 }
  0x67   : > { %2527 = vmatpush3.msra.mxu1 %v1482_v44 }
  0xf8   : > { %v648_v48 = vpop.f32.mrf.mxu1  ;;  %v799_v49 = vpop.f32.mrf.mxu0 }
  0xf9   : > { %v649_v50 = vadd.f32 %v648_v48, %v577_v46  ;;  %v800_v51 = vadd.f32 %v799_v49, %v732_v47  ;;  %v2289_v49 = vld [vmem:[%s3309_s5 + $0x110] sm:$0xff] }
  0xfa   : > { %v2421_v52 = vpop.f32.mrf.mxu1  ;;  %v2431_v54 = vpop.f32.mrf.mxu0 }
  0xfb   : > { %v652_v56 = vmax.f32 %v649_v50, 0.0  ;;  %v803_v57 = vmax.f32 %v800_v51, 0.0  ;;  %v2288_v51 = vld [vmem:[%s3309_s5 + $0x108] sm:$0xff]  ;;  %v2287_v52 = vld [vmem:[%s3309_s5 + $0x100] sm:$0xff] }
  0xfc   : > { %v724_v58 = vpop.f32.mrf.mxu1  ;;  %v949_v59 = vpop.f32.mrf.mxu0  ;;  %v2284_v54 = vld [vmem:[%s3309_s5 + $0xe8] sm:$0xff] }
  0xfd   : > { %654 = vst.msk [vmem:[#allocation2 + $0x2] sm:$0x1] %vm653_vm3, %v652_v56  ;;  %v725_v60 = vadd.f32 %v724_v58, %v657_v53  ;;  %804 = vst.msk [vmem:[#allocation2 + $0x4] sm:$0x1] %vm653_vm3, %v803_v57  ;;  %v950_v61 = vadd.f32 %v949_v59, %v882_v55  ;;  %v2286_v53 = vld [vmem:[%s3309_s5 + $0xf8] sm:$0xff]  ;;  %v2283_v55 = vld [vmem:[%s3309_s5 + $0xe0] sm:$0xff] }
  0xfe   : > { %v2426_v62 = vpop.f32.mrf.mxu1  ;;  %v2441_v0 = vpop.f32.mrf.mxu0  ;;  %v2282_v56 = vld [vmem:[%s3309_s5 + $0xd8] sm:$0xff]  ;;  %v2281_v57 = vld [vmem:[%s3309_s5 + $0xd0] sm:$0xff]  ;;  %v2280_v58 = vld [vmem:[%s3309_s5 + $0xc8] sm:$0xff] }
  0xff   : > { %v728_v3 = vmax.f32 %v725_v60, 0.0  ;;  %v953_v4 = vmax.f32 %v950_v61, 0.0  ;;  %v2279_v59 = vld [vmem:[%s3309_s5 + $0xc0] sm:$0xff]  ;;  %v2300_v61 = vld [vmem:[%s3311_s7 + $0x68] sm:$0xff]  ;;  %v2310_v0 = vld [vmem:[%s3311_s7 + $0x98] sm:$0xff] }
 0x100   : > { %v874_v5 = vpop.f32.mrf.mxu1  ;;  %v1099_v6 = vpop.f32.mrf.mxu0  ;;  %2558 = vmatprep.subr.mxu1 %v2300_v61  ;;  %v2311_v62 = vld [vmem:[%s3311_s7 + $0xa0] sm:$0xff] }
 0x101   : > { %729 = vst.msk [vmem:[#allocation2 + $0x3] sm:$0x1] %vm653_vm3, %v728_v3  ;;  %v875_v7 = vadd.f32 %v874_v5, %v807_v63  ;;  %954 = vst.msk [vmem:[#allocation2 + $0x6] sm:$0x1] %vm653_vm3, %v953_v4  ;;  %v1100_v8 = vadd.f32 %v1099_v6, %v1032_v2  ;;  %v2299_v63 = vld [vmem:[%s3311_s7 + $0x60] sm:$0xff]  ;;  %v2298_v2 = vld [vmem:[%s3311_s7 + $0x58] sm:$0xff] }
 0x102   : > { %v2436_v9 = vpop.f32.mrf.mxu1  ;;  %v2451_v12 = vpop.f32.mrf.mxu0  ;;  %v2309_v3 = vld [vmem:[%s3311_s7 + $0x90] sm:$0xff]  ;;  %v2308_v5 = vld [vmem:[%s3311_s7 + $0x88] sm:$0xff] }
 0x103   : > { %v878_v14 = vmax.f32 %v875_v7, 0.0  ;;  %v1103_v15 = vmax.f32 %v1100_v8, 0.0  ;;  %v2297_v4 = vld [vmem:[%s3311_s7 + $0x50] sm:$0xff]  ;;  %v2296_v6 = vld [vmem:[%s3311_s7 + $0x48] sm:$0xff]  ;;  %v2295_v7 = vld [vmem:[%s3311_s7 + $0x40] sm:$0xff] }
 0x104   : > { %v1024_v16 = vpop.f32.mrf.mxu1  ;;  %v1249_v17 = vpop.f32.mrf.mxu0  ;;  %v2306_v8 = vld [vmem:[%s3311_s7 + $0x78] sm:$0xff]  ;;  %v1791_v12 = vld [vmem:[%s3311_s7 + $0x30] sm:$0xff] }
 0x105   : > { %879 = vst.msk [vmem:[#allocation2 + $0x5] sm:$0x1] %vm653_vm3, %v878_v14  ;;  %v1025_v18 = vadd.f32 %v1024_v16, %v957_v11  ;;  %1104 = vst.msk [vmem:[#allocation2 + $0x8] sm:$0x1] %vm653_vm3, %v1103_v15  ;;  %v1250_v19 = vadd.f32 %v1249_v17, %v1182_v13  ;;  %v2294_v9 = vld [vmem:[%s3311_s7 + $0x38] sm:$0xff]  ;;  %v2305_v11 = vld [vmem:[%s3311_s7 + $0x70] sm:$0xff] }
 0x106   : > { %v2446_v20 = vpop.f32.mrf.mxu1  ;;  %v2461_v22 = vpop.f32.mrf.mxu0 }
 0x107   : > { %v1028_v24 = vmax.f32 %v1025_v18, 0.0  ;;  %v1253_v25 = vmax.f32 %v1250_v19, 0.0  ;;  %v2293_v19 = vld [vmem:[%s3310_s6] ss:$0 sm:$0xff] }
 0x108   : > { %v1174_v26 = vpop.f32.mrf.mxu1  ;;  %v1399_v27 = vpop.f32.mrf.mxu0 }
 0x109   : > { %1029 = vst.msk [vmem:[#allocation2 + $0x7] sm:$0x1] %vm653_vm3, %v1028_v24  ;;  %v1175_v28 = vadd.f32 %v1174_v26, %v1107_v21  ;;  %1254 = vst.msk [vmem:[#allocation2 + $0xa] sm:$0x1] %vm653_vm3, %v1253_v25  ;;  %v1400_v29 = vadd.f32 %v1399_v27, %v1332_v23 }
 0x10a   : > { %v2456_v30 = vpop.f32.mrf.mxu1  ;;  %v2471_v32 = vpop.f32.mrf.mxu0 }
 0x10b   : > { %v1178_v33 = vmax.f32 %v1175_v28, 0.0  ;;  %v1403_v34 = vmax.f32 %v1400_v29, 0.0  ;;  %v1790_v32 = vld [vmem:[%s3311_s7 + $0x28] sm:$0xff] }
 0x10c   : > { %v1324_v35 = vpop.f32.mrf.mxu1 }
 0x10d   : > { %1179 = vst.msk [vmem:[#allocation2 + $0x9] sm:$0x1] %vm653_vm3, %v1178_v33  ;;  %v1325_v36 = vadd.f32 %v1324_v35, %v1257_v31  ;;  %1404 = vst.msk [vmem:[#allocation2 + $0xc] sm:$0x1] %vm653_vm3, %v1403_v34  ;;  %v1789_v34 = vld [vmem:[%s3311_s7 + $0x20] sm:$0xff]  ;;  %v1788_v35 = vld [vmem:[%s3311_s7 + $0x18] sm:$0xff] }
 0x10e   : > { %v2466_v37 = vpop.f32.mrf.mxu1 }
 0x10f   : > { %v1328_v39 = vmax.f32 %v1325_v36, 0.0  ;;  %v1787_v36 = vld [vmem:[%s3311_s7 + $0x10] sm:$0xff]  ;;  %v1786_v37 = vld [vmem:[%s3311_s7 + $0x8] sm:$0xff] }
 0x110   : > { %v1474_v40 = vpop.f32.mrf.mxu1  ;;  %v1494_v41 = vld [vmem:[#allocation2 + $0x1] sm:$0xff] }
 0x111   : > { %v1480_v42 = vld [vmem:[#allocation2] sm:$0xff]  ;;  %1329 = vst.msk [vmem:[#allocation2 + $0xb] sm:$0x1] %vm653_vm3, %v1328_v39  ;;  %v1475_v43 = vadd.f32 %v1474_v40, %v1407_v38  ;;  %2501 = vmatprep.mubr.msk.f32.mxu0 %vm568_vm1, %v1494_v41 }
 0x112   : > { %2528 = vmatprep.mubr.msk.f32.mxu1 %vm568_vm1, %v1480_v42  ;;  %v2476_v44 = vpop.f32.mrf.mxu1  ;;  %v1785_v38 = vld [vmem:[%s3311_s7] sm:$0xff] }
 0x113   : > { %v1478_v46 = vmax.f32 %v1475_v43, 0.0 }
 0x114   : > { %v1671_v50 = vld [vmem:[#allocation2 + $0x2] sm:$0xff] }
 0x115   : > { %1479 = vst.msk [vmem:[#allocation2 + $0xd] sm:$0x1] %vm653_vm3, %v1478_v46 }
 0x11c   : > { %v1495_v47 = vld [vmem:[#allocation2 + $0x9] sm:$0x3f] }
 0x11d   : > { %v1481_v48 = vld [vmem:[#allocation2 + $0x8] sm:$0x3f]  ;;  %2502 = vmatmul.mubr.msk.f32.vlgmr.msra.gmra.mxu0 %vm568_vm1, %v1495_v47 }
 0x11e   : > { %2529 = vmatmul.mubr.msk.f32.vlgmr.msra.gmra.mxu1 %vm568_vm1, %v1481_v48  ;;  %2532 = vmatpush3.msra.mxu0 %v3061_v45  ;;  %v2285_v45 = vld [vmem:[%s3309_s5 + $0xf0] sm:$0xff]  ;;  %v1672_v60 = vld [vmem:[#allocation2 + $0xa] sm:$0x3f] }
 0x11f   : > { %2555 = vmatprep.mubr.msk.f32.mxu0 %vm568_vm1, %v1671_v50  ;;  %2533 = vmatprep.subr.mxu0 %v2289_v49 }
 0x120   : > { %2534 = vmatpush3.msra.mxu0 %v2289_v49  ;;  %2559 = vmatpush3.msra.mxu1 %v2300_v61 }
 0x121   : > { %2535 = vmatprep.subr.mxu0 %v2288_v51  ;;  %2560 = vmatprep.subr.mxu1 %v2299_v63 }
 0x122   : > { %2536 = vmatpush3.msra.mxu0 %v2288_v51  ;;  %2561 = vmatpush3.msra.mxu1 %v2299_v63 }
 0x123   : > { %2537 = vmatprep.subr.mxu0 %v2287_v52  ;;  %2562 = vmatprep.subr.mxu1 %v2298_v2 }
 0x124   : > { %2538 = vmatpush3.msra.mxu0 %v2287_v52  ;;  %2563 = vmatpush3.msra.mxu1 %v2298_v2 }
 0x125   : > { %2539 = vmatprep.subr.mxu0 %v2286_v53  ;;  %2564 = vmatprep.subr.mxu1 %v2297_v4 }
 0x126   : > { %2540 = vmatpush3.msra.mxu0 %v2286_v53  ;;  %2565 = vmatpush3.msra.mxu1 %v2297_v4 }
 0x127   : > { %2541 = vmatprep.subr.mxu0 %v2285_v45  ;;  %2566 = vmatprep.subr.mxu1 %v2296_v6 }
 0x128   : > { %2542 = vmatpush3.msra.mxu0 %v2285_v45  ;;  %2567 = vmatpush3.msra.mxu1 %v2296_v6 }
 0x129   : > { %2543 = vmatprep.subr.mxu0 %v2284_v54  ;;  %2568 = vmatprep.subr.mxu1 %v2295_v7 }
 0x12a   : > { %2544 = vmatpush3.msra.mxu0 %v2284_v54  ;;  %2569 = vmatpush3.msra.mxu1 %v2295_v7 }
 0x12b   : > { %2545 = vmatprep.subr.mxu0 %v2283_v55  ;;  %2570 = vmatprep.subr.mxu1 %v2294_v9 }
 0x12c   : > { %2546 = vmatpush3.msra.mxu0 %v2283_v55  ;;  %2571 = vmatpush3.msra.mxu1 %v2294_v9 }
 0x12d   : > { %2547 = vmatprep.subr.mxu0 %v2282_v56  ;;  %2575 = vmatprep.subr.mxu1 %v1791_v12 }
 0x12e   : > { %2548 = vmatpush3.msra.mxu0 %v2282_v56 }
 0x12f   : > { %2549 = vmatprep.subr.mxu0 %v2281_v57 }
 0x130   : > { %2550 = vmatpush3.msra.mxu0 %v2281_v57 }
 0x131   : > { %2551 = vmatprep.subr.mxu0 %v2280_v58 }
 0x132   : > { %2552 = vmatpush3.msra.mxu0 %v2280_v58 }
 0x133   : > { %2553 = vmatprep.subr.mxu0 %v2279_v59 }
 0x134   : > { %2554 = vmatpush3.msra.mxu0 %v2279_v59 }
 0x135   : > { %2556 = vmatmul.mubr.msk.f32.vlgmr.msra.gmra.mxu0 %vm568_vm1, %v1672_v60  ;;  %2592 = vmatprep.subr.mxu0 %v2311_v62 }
 0x136   : > { %2593 = vmatpush3.msra.mxu0 %v2311_v62 }
 0x137   : > { %2594 = vmatprep.subr.mxu0 %v2310_v0 }
 0x138   : > { %2595 = vmatpush3.msra.mxu0 %v2310_v0 }
 0x139   : > { %2596 = vmatprep.subr.mxu0 %v2309_v3 }
 0x13a   : > { %2597 = vmatpush3.msra.mxu0 %v2309_v3 }
 0x13b   : > { %2598 = vmatprep.subr.mxu0 %v2308_v5 }
 0x13c   : > { %2599 = vmatpush3.msra.mxu0 %v2308_v5 }
 0x13d   : > { %2600 = vmatprep.subr.mxu0 %v2307_v1 }
 0x13e   : > { %2601 = vmatpush3.msra.mxu0 %v2307_v1 }
 0x13f   : > { %2602 = vmatprep.subr.mxu0 %v2306_v8 }
 0x140   : > { %2603 = vmatpush3.msra.mxu0 %v2306_v8 }
 0x141   : > { %2604 = vmatprep.subr.mxu0 %v2305_v11 }
 0x142   : > { %2605 = vmatpush3.msra.mxu0 %v2305_v11 }
 0x1dd   : > { %v2503_v13 = vpop.f32.mrf.mxu0 }
 0x1de   : > { %v2530_v14 = vpop.f32.mrf.mxu1 }
 0x1df   : > { %v1581_v15 = vpop.f32.mrf.mxu0  ;;  %v1668_v17 = vadd.f32 %v2530_v14, %v2503_v13 }
 0x1e0   : > { %v1662_v16 = vpop.f32.mrf.mxu1 }
 0x1e1   : > { %v1663_v20 = vadd.f32 %v1662_v16, %v1581_v15 }
 0x1f5   : > { %v2557_v18 = vpop.f32.mrf.mxu0 }
 0x1f6   : > { %v1768_v21 = vadd.f32 %v2557_v18, %v1668_v17 }
 0x1f7   : > { %v1758_v22 = vpop.f32.mrf.mxu0 }
 0x1f8   : > { %v1777_v23 = vadd.f32 %v2293_v19, %v1768_v21  ;;  %v1767_v24 = vadd.f32 %v1758_v22, %v1663_v20 }
 0x1fa   : > { %v1779_v25 = vmax.f32 %v1777_v23, 0.0  ;;  %v1776_v26 = vadd.f32 %v2293_v19, %v1767_v24 }
 0x1fc   : > { %1782 = vst.msk [vmem:[#allocation3 + $0xa] sm:$0x3f] %vm1781_vm6, %v1779_v25  ;;  %v1778_v27 = vmax.f32 %v1776_v26, 0.0 }
 0x1fe   : > { %1780 = vst.msk [vmem:[#allocation3 + $0x2] sm:$0xff] %vm571_vm4, %v1778_v27 }
 0x203   : > { %v1965_v31 = vld [vmem:[#allocation3 + $0xa] sm:$0xff] }
 0x205   : > { %v1792_v28 = vld [vmem:[#allocation3 + $0x1] sm:$0xff]  ;;  %v1793_v30 = vld [vmem:[#allocation3 + $0x9] sm:$0xff] }
 0x206   : > { %v1964_v29 = vld [vmem:[#allocation3 + $0x2] sm:$0xff]  ;;  %2572 = vmatprep.mubr.msk.f32.mxu1 %vm571_vm4, %v1792_v28 }
 0x207   : > { %2606 = vmatprep.mubr.msk.f32.mxu0 %vm571_vm4, %v1964_v29  ;;  %2573 = vmatmul.mubr.msk.f32.vlgmr.msra.gmra.mxu1 %vm571_vm4, %v1793_v30  ;;  %v1783_v33 = vld [vmem:[#allocation3] sm:$0xff]  ;;  %v1784_v39 = vld [vmem:[#allocation3 + $0x8] sm:$0xff] }
 0x208   : > { %2607 = vmatmul.mubr.msk.f32.vlgmr.msra.gmra.mxu0 %vm571_vm4, %v1965_v31  ;;  %2576 = vmatpush3.msra.mxu1 %v1791_v12 }
 0x209   : > { %2589 = vmatprep.mubr.msk.f32.mxu1 %vm571_vm4, %v1783_v33  ;;  %2577 = vmatprep.subr.mxu1 %v1790_v32 }
 0x20a   : > { %2578 = vmatpush3.msra.mxu1 %v1790_v32 }
 0x20b   : > { %2579 = vmatprep.subr.mxu1 %v1789_v34 }
 0x20c   : > { %2580 = vmatpush3.msra.mxu1 %v1789_v34 }
 0x20d   : > { %2581 = vmatprep.subr.mxu1 %v1788_v35 }
 0x20e   : > { %2582 = vmatpush3.msra.mxu1 %v1788_v35 }
 0x20f   : > { %2583 = vmatprep.subr.mxu1 %v1787_v36 }
 0x210   : > { %2584 = vmatpush3.msra.mxu1 %v1787_v36 }
 0x211   : > { %2585 = vmatprep.subr.mxu1 %v1786_v37 }
 0x212   : > { %2586 = vmatpush3.msra.mxu1 %v1786_v37 }
 0x213   : > { %2587 = vmatprep.subr.mxu1 %v1785_v38 }
 0x214   : > { %2588 = vmatpush3.msra.mxu1 %v1785_v38 }
 0x215   : > { %2590 = vmatmul.mubr.msk.f32.vlgmr.msra.gmra.mxu1 %vm571_vm4, %v1784_v39 }
 0x216   : > { %2680 = shalt.err (!%p2677_p8)
}
 0x217   : > { %s2681_s0 = scalar_lea.hbm %s2097_s29, 16  ;;  %s2685_s27 = scalar_lea.hbm %s3313_s9, 64 }
 0x218   : > { %p2682_p9 = scmp.ne.s32.totalorder %s2097_s29, %s2681_s0  ;;  %p2686_p12 = scmp.lt.s32.totalorder %s2097_s29, %s3313_s9 }
 0x219   : > { %p2687_p13 = scmp.lt.s32.totalorder %s2685_s27, %s2681_s0 }
 0x21a   : > { %p2683_p10 = pnand %p2682_p9, %p2858_p5 }
 0x21b   : > { %p2688_p0 = por %p2687_p13, %p2686_p12 }
 0x21c   : > { %p2684_p11 = pneg %p2683_p10 }
 0x21e   : > { %p2689_p1 = pnand %p2688_p0, %p2684_p11 }
 0x220   : > { %2692 = shalt.err (!%p2689_p1)
}
 0x221   : > { %2609 = dma.vmem_to_hbm [thread:$0]  (%p2858_p5), %s2100_s30, 16, %s2097_s29, %s2082_s11   ;;  %v2314_v44 = vld [vmem:[%s3312_s8] ss:$0 sm:$0xff]  ;;  %vm2078_vm8 = vcmask 130048  }
 0x222   : > { %s2233_s0 = sshll.u32 %s3231_s18, 4  ;;  %s2323_s2 = sshll.u32 %s2841_s17, 8 }
 0x223   : > { %s500_s29 = scalar_lea.vmem [#allocation6], %s2233_s0  ;;  %s3260_s25 = scalar_lea.hbm %s3314_s10, %s2323_s2 }
 0x224   : > { %s2112_s30 = sshll.u32 %s500_s29, 4  ;;  %s2086_s26 = scalar_lea.sflag [#allocation7], %s3231_s18  ;;  %s3262_s30 = int_to_ptr.vmem [resolvable:$true] %s2112_s30 }
 0x225   : > { %s2693_s1 = scalar_lea.vmem %s3262_s30, 256  ;;  %s2762_s17 = smov [#allocation6]  }
 0x226   : > { %p2694_p2 = scmp.ne.s32.totalorder %s3262_s30, %s2693_s1  ;;  %s2697_s27 = sshll.u32 %s2762_s17, 4  ;;  %s2698_s27 = int_to_ptr.vmem [resolvable:$false] %s2697_s27 }
 0x227   : > { %s2699_s28 = scalar_lea.vmem %s2698_s27, 512  ;;  %p2700_p7 = scmp.lt.s32.totalorder %s3262_s30, %s2698_s27 }
 0x228   : > { %p2695_p3 = pnand %p2694_p2, %p2858_p5  ;;  %p2701_p8 = scmp.lt.s32.totalorder %s2699_s28, %s2693_s1 }
 0x22a   : > { %p2696_p4 = pneg %p2695_p3  ;;  %p2702_p9 = por %p2701_p8, %p2700_p7 }
 0x22c   : > { %p2703_p10 = pnand %p2702_p9, %p2696_p4 }
 0x2c7   : > { %v2574_v10 = vpop.f32.mrf.mxu1 }
 0x2c8   : > { %v2608_v41 = vpop.f32.mrf.mxu0 }
 0x2c9   : > { %v1874_v40 = vpop.f32.mrf.mxu1 }
 0x2ca   : > { %v2046_v49 = vpop.f32.mrf.mxu0 }
 0x2d5   : > { %v2591_v42 = vpop.f32.mrf.mxu1 }
 0x2d6   : > { %v1961_v43 = vadd.f32 %v2591_v42, %v2574_v10 }
 0x2d7   : > { %v1955_v46 = vpop.f32.mrf.mxu1 }
 0x2d8   : > { %v2056_v47 = vadd.f32 %v2608_v41, %v1961_v43  ;;  %v1956_v48 = vadd.f32 %v1955_v46, %v1874_v40 }
 0x2da   : > { %v2065_v50 = vadd.f32 %v2314_v44, %v2056_v47  ;;  %v2055_v51 = vadd.f32 %v2046_v49, %v1956_v48 }
 0x2dc   : > { %v2316_v52 = vmul.f32 -1.442695, %v2065_v50  ;;  %v2064_v53 = vadd.f32 %v2314_v44, %v2055_v51 }
 0x2de   : > { %2659 = vpow2.f32 %v2316_v52  ;;  %v2315_v45 = vmul.f32 -1.442695, %v2064_v53 }
 0x2e0   : > { %2661 = vpow2.f32 %v2315_v45 }
 0x2eb   : > { %v2660_v54 = vpop.eup %2659 }
 0x2ec   : > { %v2073_v55 = vadd.f32 1.0, %v2660_v54 }
 0x2ed   : > { %v2662_v56 = vpop.eup %2661 }
 0x2ee   : > { %2663 = vrcp.f32 %v2073_v55  ;;  %v2072_v57 = vadd.f32 1.0, %v2662_v56 }
 0x2f0   : > { %2665 = vrcp.f32 %v2072_v57 }
 0x2fb   : > { %v2664_v58 = vpop.eup %2663 }
 0x2fc   : > { %2080 = vst.msk [vmem:[%s500_s29 + $0x8] sm:$0xff] %vm2078_vm8, %v2664_v58 }
 0x2fd   : > { %v2666_v59 = vpop.eup %2665 }
 0x2fe   : > { %2079 = vst.msk [vmem:[%s500_s29] sm:$0xff] %vm2078_vm8, %v2666_v59 }
 0x2ff   : > { %2706 = shalt.err (!%p2703_p10)
}
 0x300   : > { %s2707_s12 = scalar_lea.hbm %s3260_s25, 256  ;;  %s2711_s2 = scalar_lea.hbm %s3314_s10, 1024 }
 0x301   : > { %p2708_p11 = scmp.ne.s32.totalorder %s3260_s25, %s2707_s12  ;;  %p2712_p0 = scmp.lt.s32.totalorder %s3260_s25, %s3314_s10 }
 0x302   : > { %p2713_p1 = scmp.lt.s32.totalorder %s2711_s2, %s2707_s12 }
 0x303   : > { %p2709_p12 = pnand %p2708_p11, %p2858_p5 }
 0x304   : > { %p2714_p2 = por %p2713_p1, %p2712_p0 }
 0x305   : > { %p2710_p13 = pneg %p2709_p12 }
 0x307   : > { %p2715_p3 = pnand %p2714_p2, %p2710_p13 }
 0x309   : > { %2718 = shalt.err (!%p2715_p3)
}
 0x30a   : > { %s2763_s21 = smov 128   ;;  %s2764_s1 = smov 8  }
 0x30b   : > { %2610 = dma.vmem_to_hbm [thread:$0]  (%p2858_p5), %s3262_s30, 256, %s3260_s25, %s2086_s26, %s2763_s21, %s2763_s21, %s2764_s1  }
 0x30c PF: > { %p2620_p4 = scmp.ge.s32.totalorder %s2757_s16, 2  ;;  %s2127_s17 = sand.u32 1, %s2745_s13  }
 0x30d   : > { %s2128_s27 = scalar_lea.sflag [#allocation5], %s2127_s17 }
 0x30e   : > { %p2614_p7 = pnand %p2620_p4, %p2862_p6 }
 0x310   : > { %p2615_p8 = pneg %p2614_p7 }
 0x312   : > { %2736 = dma.done.wait (%p2615_p8), %s2128_s27, 16  }
 0x313   : > { %2738 = vsyncadd (%p2615_p8), %s2128_s27, 4294967280  ;;  %s2136_s28 = scalar_lea.sflag [#allocation7], %s2127_s17 }
 0x314   : > { %2740 = dma.done.wait (%p2615_p8), %s2136_s28, 256  }
 0x315   : > { %2742 = vsyncadd (%p2615_p8), %s2136_s28, 4294967040  ;;  %p24_p5 = scmp.ge.s32.totalorder %s2845_s19, 6   ;;  %s3323_s13 = smov %s2749_s14 }
 0x316   : > { %s3324_s14 = smov %s2753_s15  ;;  %s3325_s15 = smov %s2856_s22 }
 0x317   : > { %s3326_s16 = smov %s2845_s19  ;;  %26 = sbr.rel (!%p24_p5) target bundleno = 9 (0x9), region = 129 }
 0x31c   :  { %2141 = vsyncpa [#allocation5], 1 }
 0x31d   :  { %2143 = vsyncpa [#allocation5 + $0x1], 1 }
 0x31e   :  { %2144 = vsyncpa [#allocation7], 1 }
 0x31f   :  { %2146 = vsyncpa [#allocation7 + $0x1], 1 }

</bundles_post_ra>
